<compile_context>
chip_gen: v7x
topology: tpu7x:2x2x1
jax: 0.10.0
libtpu: 0.0.40
codegen_flags: <defaults>
</compile_context>

<pallas_src>
import functools

import jax
import jax.numpy as jnp
from jax import lax
from jax.experimental import pallas as pl
from jax.experimental.pallas import tpu as pltpu


# ----------------------------------------------------------------------------
# Fused CBAM kernel: Bt images per grid step, everything lane-flat (C, H*W)
# ----------------------------------------------------------------------------
def _cbam_kernel(x_ref, w1_ref, w2_ref, wsp_ref, o_ref, vp_ref, *, bt, h, w, ksize):
    # x_ref:  (Bt, C, H*W)   input features (H*W on lanes)
    # w1_ref: (Cr, C), w2_ref: (C, Cr)  shared-MLP 1x1-conv weights (no bias)
    # wsp_ref: SMEM (2*k*k,) spatial conv weights, flat in (c, ky, kx) order
    # o_ref:  (Bt, C, H*W)   output
    # vp_ref: VMEM (2, (H+2P)*W + 2P) f32  flat zero-padded max/mean maps
    C = x_ref.shape[1]
    hw = h * w
    P = ksize // 2
    f32 = jnp.float32
    dt = x_ref.dtype
    base = P * (w + 1)                 # interior start inside the flat padded map
    vlen = vp_ref.shape[1]             # == hw + 2*P*w + 2*P

    # ---- image-invariant values, hoisted out of the per-image loop ----------
    wts = [wsp_ref[i] for i in range(2 * ksize * ksize)]     # 98 SMEM scalars
    w1 = w1_ref[...].astype(f32)                             # (Cr, C)
    w2 = w2_ref[...].astype(f32)                             # (C, Cr)

    # Column index of each flattened pixel (float trick: no integer div/mod).
    jj = lax.broadcasted_iota(jnp.int32, (1, hw), 1).astype(f32)
    row = jnp.floor((jj + 0.5) * (1.0 / w))
    col = jj - row * w
    # Horizontal-validity mask per kx tap (SAME zero padding along W).
    col_masks = [
        jnp.logical_and(col >= float(P - kx), col <= float(w - 1 + P - kx))
        for kx in range(ksize)
    ]
    ones_hw = jnp.ones((hw, 1), dt)
    ones_c = jnp.ones((1, C), dt)

    def process_image(b):
        x = x_ref[b]                                             # (C, HW), input dtype

        # ---- channel attention -------------------------------------------
        # Global avg pool as an MXU matmul (f32 accumulate); max pool on VPU/XLU.
        avg = jnp.dot(x, ones_hw, preferred_element_type=f32) * (1.0 / hw)  # (C, 1)
        mx = jnp.max(x, axis=1, keepdims=True).astype(f32)                   # (C, 1)
        pooled = jnp.concatenate([avg, mx], axis=1)                          # (C, 2)
        hid = jnp.maximum(jnp.dot(w1, pooled, preferred_element_type=f32), 0.0)
        mlp = jnp.dot(w2, hid, preferred_element_type=f32)                   # (C, 2)
        ca = jax.nn.sigmoid(mlp[:, 0:1] + mlp[:, 1:2]).astype(dt)            # (C, 1)

        x_ca = x * ca                                                         # (C, HW)

        # ---- spatial attention maps (flat, f32) ----------------------------
        max_sp = jnp.max(x_ca, axis=0, keepdims=True).astype(f32)            # (1, HW)
        avg_sp = jnp.dot(ones_c, x_ca, preferred_element_type=f32) * (1.0 / C)

        # Flat zero-padded maps: re-zero only the small borders each image
        # (interior is fully overwritten), so correctness never depends on
        # scratch state from other grid steps / cores.
        zb = jnp.zeros((2, base), f32)
        vp_ref[:, 0:base] = zb
        vp_ref[:, base + hw:vlen] = zb
        vp_ref[0:1, base:base + hw] = max_sp
        vp_ref[1:2, base:base + hw] = avg_sp

        # ---- k x k spatial conv, accumulated fully lane-flat ---------------
        # One VMEM band load per (c, ky); kx offsets via in-register lane slices.
        conv = jnp.zeros((1, hw), f32)
        for c in range(2):
            for ky in range(ksize):
                band = vp_ref[c:c + 1, ky * w: ky * w + hw + 2 * P]          # (1, HW+2P)
                for kx in range(ksize):
                    wt = wts[c * ksize * ksize + ky * ksize + kx]
                    term = band[:, kx:kx + hw]                               # (1, HW)
                    conv = conv + wt * jnp.where(col_masks[kx], term, 0.0)

        sa = jax.nn.sigmoid(conv).astype(dt)                                  # (1, HW)
        o_ref[b] = (x_ca * sa).astype(o_ref.dtype)

    if bt == 1:
        process_image(0)
    else:
        @pl.loop(0, bt)
        def _(b):
            process_image(b)


# ----------------------------------------------------------------------------
# Wrapper — single pallas_call, lane-flat blocks, images-per-block heuristic
# ----------------------------------------------------------------------------
def cbam_forward(x_nchw, w1, w2, wsp, *, ksize=7):
    """CBAM forward. x_nchw: (B, C, H, W). w1: (Cr, C), w2: (C, Cr), wsp: (1, 2, k, k)."""
    B, C, H, W = x_nchw.shape
    Cr = w1.shape[0]
    P = ksize // 2
    dt = x_nchw.dtype
    HW = H * W

    x2 = x_nchw.reshape(B, C, HW)                    # free: NCHW is contiguous in (H, W)
    wsp_flat = wsp.reshape(-1).astype(jnp.float32)   # (2*k*k,) in (c, ky, kx) order

    # Several small images per grid step (amortize ~0.35us/step), capped at ~2 MiB
    # of input per block so double-buffered in+out blocks stay well inside VMEM.
    img_bytes = C * HW * x_nchw.dtype.itemsize
    bt = 1
    for cand in range(1, B + 1):
        if B % cand == 0 and cand * img_bytes <= 2 * 1024 * 1024:
            bt = cand
    # TODO(synk): on v7x (2 TensorCores) prefer an even grid; for B == 1 or very
    # large C*H*W tile H with a +/-P halo (two-pass pooling) instead of whole images.
    grid = (B // bt,)
    vlen = (H + 2 * P) * W + 2 * P

    out = pl.pallas_call(
        functools.partial(_cbam_kernel, bt=bt, h=H, w=W, ksize=ksize),
        out_shape=jax.ShapeDtypeStruct((B, C, HW), dt),
        grid_spec=pltpu.PrefetchScalarGridSpec(
            num_scalar_prefetch=0,
            grid=grid,
            in_specs=[
                pl.BlockSpec((bt, C, HW), lambda i: (i, 0, 0)),
                pl.BlockSpec((Cr, C), lambda i: (0, 0)),
                pl.BlockSpec((C, Cr), lambda i: (0, 0)),
                pl.BlockSpec(memory_space=pltpu.MemorySpace.SMEM),
            ],
            out_specs=pl.BlockSpec((bt, C, HW), lambda i: (i, 0, 0)),
            scratch_shapes=[pltpu.VMEM((2, vlen), jnp.float32)],
        ),
        compiler_params=pltpu.CompilerParams(
            dimension_semantics=("parallel",),
            # 48 MiB: ample for the <=2 MiB double-buffered blocks, with headroom
            # below v7x's 64 MiB physical VMEM (fine on v5e/v6e's 128 MiB).
            vmem_limit_bytes=48 * 1024 * 1024,
        ),
    )(x2, w1, w2, wsp_flat)
    return out.reshape(B, C, H, W)


# ----------------------------------------------------------------------------
# Pure-JAX reference (mirrors the PyTorch module semantics, NCHW)
# ----------------------------------------------------------------------------
def cbam_ref(x, w1, w2, wsp, *, ksize=7):
    P = ksize // 2
    avg = jnp.mean(x, axis=(2, 3))                        # (B, C)
    mx = jnp.max(x, axis=(2, 3))                          # (B, C)

    def fc(v):
        h = jnp.maximum(v @ w1.T, 0.0)
        return h @ w2.T

    ca = jax.nn.sigmoid(fc(avg) + fc(mx))[:, :, None, None]
    x1 = x * ca
    mx_sp = jnp.max(x1, axis=1, keepdims=True)
    avg_sp = jnp.mean(x1, axis=1, keepdims=True)
    cat = jnp.concatenate([mx_sp, avg_sp], axis=1)        # (B, 2, H, W)
    conv = jax.lax.conv_general_dilated(
        cat, wsp, window_strides=(1, 1), padding=((P, P), (P, P)),
        dimension_numbers=("NCHW", "OIHW", "NCHW"))
    sa = jax.nn.sigmoid(conv)
    return x1 * sa


if __name__ == "__main__":
    B, C, H, W = 2, 16, 16, 16
    reduction = 4
    Cr = C // reduction
    K = 7

    key = jax.random.PRNGKey(0)
    kx, k1, k2, k3 = jax.random.split(key, 4)
    x = jax.random.normal(kx, (B, C, H, W), jnp.float32)
    # Deterministic synthetic parameters (shapes match the PyTorch module):
    #   fc[0].weight: (C//r, C, 1, 1) -> (Cr, C); fc[2].weight: (C, C//r, 1, 1) -> (C, Cr)
    #   spatial conv.weight: (1, 2, K, K)
    w1 = jax.random.normal(k1, (Cr, C), jnp.float32) * (1.0 / jnp.sqrt(C))
    w2 = jax.random.normal(k2, (C, Cr), jnp.float32) * (1.0 / jnp.sqrt(Cr))
    wsp = jax.random.normal(k3, (1, 2, K, K), jnp.float32) * (1.0 / jnp.sqrt(2.0 * K * K))

    y = cbam_forward(x, w1, w2, wsp, ksize=K)
    jax.block_until_ready(y)

    y_ref = cbam_ref(x, w1, w2, wsp, ksize=K)
    assert y.shape == (B, C, H, W)
    err = float(jnp.max(jnp.abs(y - y_ref)))
    assert err < 2e-4, f"max abs err {err}"
    print("KERNEL_OK")
</pallas_src>

<mosaic_0001>
module attributes {stable_mosaic.version = 11 : i64} {
  func.func @_cbam_kernel(%arg0: i32, %arg1: memref<2x16x256xf32, #tpu.memory_space<vmem>>, %arg2: memref<4x16xf32, #tpu.memory_space<vmem>>, %arg3: memref<16x4xf32, #tpu.memory_space<vmem>>, %arg4: memref<98xf32, #tpu.memory_space<smem>>, %arg5: memref<2x16x256xf32, #tpu.memory_space<vmem>>, %arg6: memref<2x358xf32, #tpu.memory_space<vmem>>) attributes {dimension_semantics = [#tpu.dimension_semantics<parallel>], iteration_bounds = array<i64: 1>, scalar_prefetch = 0 : i64, scratch_operands = 1 : i64, tpu.core_type = #tpu.core_type<tc>, window_params = [{transform_indices = @transform_0, window_bounds = array<i64: 2, 16, 256>}, {pipeline_mode = #tpu.pipeline_mode<synchronous>, transform_indices = @transform_1, window_bounds = array<i64: 4, 16>}, {pipeline_mode = #tpu.pipeline_mode<synchronous>, transform_indices = @transform_2, window_bounds = array<i64: 16, 4>}, {transform_indices = @transform_3, window_bounds = array<i64: 98>}, {transform_indices = @transform_4, window_bounds = array<i64: 2, 16, 256>}]} {
    %c0 = arith.constant 0 : index
    %0 = memref.load %arg4[%c0] : memref<98xf32, #tpu.memory_space<smem>>
    %c1 = arith.constant 1 : index
    %1 = memref.load %arg4[%c1] : memref<98xf32, #tpu.memory_space<smem>>
    %c2 = arith.constant 2 : index
    %2 = memref.load %arg4[%c2] : memref<98xf32, #tpu.memory_space<smem>>
    %c3 = arith.constant 3 : index
    %3 = memref.load %arg4[%c3] : memref<98xf32, #tpu.memory_space<smem>>
    %c4 = arith.constant 4 : index
    %4 = memref.load %arg4[%c4] : memref<98xf32, #tpu.memory_space<smem>>
    %c5 = arith.constant 5 : index
    %5 = memref.load %arg4[%c5] : memref<98xf32, #tpu.memory_space<smem>>
    %c6 = arith.constant 6 : index
    %6 = memref.load %arg4[%c6] : memref<98xf32, #tpu.memory_space<smem>>
    %c7 = arith.constant 7 : index
    %7 = memref.load %arg4[%c7] : memref<98xf32, #tpu.memory_space<smem>>
    %c8 = arith.constant 8 : index
    %8 = memref.load %arg4[%c8] : memref<98xf32, #tpu.memory_space<smem>>
    %c9 = arith.constant 9 : index
    %9 = memref.load %arg4[%c9] : memref<98xf32, #tpu.memory_space<smem>>
    %c10 = arith.constant 10 : index
    %10 = memref.load %arg4[%c10] : memref<98xf32, #tpu.memory_space<smem>>
    %c11 = arith.constant 11 : index
    %11 = memref.load %arg4[%c11] : memref<98xf32, #tpu.memory_space<smem>>
    %c12 = arith.constant 12 : index
    %12 = memref.load %arg4[%c12] : memref<98xf32, #tpu.memory_space<smem>>
    %c13 = arith.constant 13 : index
    %13 = memref.load %arg4[%c13] : memref<98xf32, #tpu.memory_space<smem>>
    %c14 = arith.constant 14 : index
    %14 = memref.load %arg4[%c14] : memref<98xf32, #tpu.memory_space<smem>>
    %c15 = arith.constant 15 : index
    %15 = memref.load %arg4[%c15] : memref<98xf32, #tpu.memory_space<smem>>
    %c16 = arith.constant 16 : index
    %16 = memref.load %arg4[%c16] : memref<98xf32, #tpu.memory_space<smem>>
    %c17 = arith.constant 17 : index
    %17 = memref.load %arg4[%c17] : memref<98xf32, #tpu.memory_space<smem>>
    %c18 = arith.constant 18 : index
    %18 = memref.load %arg4[%c18] : memref<98xf32, #tpu.memory_space<smem>>
    %c19 = arith.constant 19 : index
    %19 = memref.load %arg4[%c19] : memref<98xf32, #tpu.memory_space<smem>>
    %c20 = arith.constant 20 : index
    %20 = memref.load %arg4[%c20] : memref<98xf32, #tpu.memory_space<smem>>
    %c21 = arith.constant 21 : index
    %21 = memref.load %arg4[%c21] : memref<98xf32, #tpu.memory_space<smem>>
    %c22 = arith.constant 22 : index
    %22 = memref.load %arg4[%c22] : memref<98xf32, #tpu.memory_space<smem>>
    %c23 = arith.constant 23 : index
    %23 = memref.load %arg4[%c23] : memref<98xf32, #tpu.memory_space<smem>>
    %c24 = arith.constant 24 : index
    %24 = memref.load %arg4[%c24] : memref<98xf32, #tpu.memory_space<smem>>
    %c25 = arith.constant 25 : index
    %25 = memref.load %arg4[%c25] : memref<98xf32, #tpu.memory_space<smem>>
    %c26 = arith.constant 26 : index
    %26 = memref.load %arg4[%c26] : memref<98xf32, #tpu.memory_space<smem>>
    %c27 = arith.constant 27 : index
    %27 = memref.load %arg4[%c27] : memref<98xf32, #tpu.memory_space<smem>>
    %c28 = arith.constant 28 : index
    %28 = memref.load %arg4[%c28] : memref<98xf32, #tpu.memory_space<smem>>
    %c29 = arith.constant 29 : index
    %29 = memref.load %arg4[%c29] : memref<98xf32, #tpu.memory_space<smem>>
    %c30 = arith.constant 30 : index
    %30 = memref.load %arg4[%c30] : memref<98xf32, #tpu.memory_space<smem>>
    %c31 = arith.constant 31 : index
    %31 = memref.load %arg4[%c31] : memref<98xf32, #tpu.memory_space<smem>>
    %c32 = arith.constant 32 : index
    %32 = memref.load %arg4[%c32] : memref<98xf32, #tpu.memory_space<smem>>
    %c33 = arith.constant 33 : index
    %33 = memref.load %arg4[%c33] : memref<98xf32, #tpu.memory_space<smem>>
    %c34 = arith.constant 34 : index
    %34 = memref.load %arg4[%c34] : memref<98xf32, #tpu.memory_space<smem>>
    %c35 = arith.constant 35 : index
    %35 = memref.load %arg4[%c35] : memref<98xf32, #tpu.memory_space<smem>>
    %c36 = arith.constant 36 : index
    %36 = memref.load %arg4[%c36] : memref<98xf32, #tpu.memory_space<smem>>
    %c37 = arith.constant 37 : index
    %37 = memref.load %arg4[%c37] : memref<98xf32, #tpu.memory_space<smem>>
    %c38 = arith.constant 38 : index
    %38 = memref.load %arg4[%c38] : memref<98xf32, #tpu.memory_space<smem>>
    %c39 = arith.constant 39 : index
    %39 = memref.load %arg4[%c39] : memref<98xf32, #tpu.memory_space<smem>>
    %c40 = arith.constant 40 : index
    %40 = memref.load %arg4[%c40] : memref<98xf32, #tpu.memory_space<smem>>
    %c41 = arith.constant 41 : index
    %41 = memref.load %arg4[%c41] : memref<98xf32, #tpu.memory_space<smem>>
    %c42 = arith.constant 42 : index
    %42 = memref.load %arg4[%c42] : memref<98xf32, #tpu.memory_space<smem>>
    %c43 = arith.constant 43 : index
    %43 = memref.load %arg4[%c43] : memref<98xf32, #tpu.memory_space<smem>>
    %c44 = arith.constant 44 : index
    %44 = memref.load %arg4[%c44] : memref<98xf32, #tpu.memory_space<smem>>
    %c45 = arith.constant 45 : index
    %45 = memref.load %arg4[%c45] : memref<98xf32, #tpu.memory_space<smem>>
    %c46 = arith.constant 46 : index
    %46 = memref.load %arg4[%c46] : memref<98xf32, #tpu.memory_space<smem>>
    %c47 = arith.constant 47 : index
    %47 = memref.load %arg4[%c47] : memref<98xf32, #tpu.memory_space<smem>>
    %c48 = arith.constant 48 : index
    %48 = memref.load %arg4[%c48] : memref<98xf32, #tpu.memory_space<smem>>
    %c49 = arith.constant 49 : index
    %49 = memref.load %arg4[%c49] : memref<98xf32, #tpu.memory_space<smem>>
    %c50 = arith.constant 50 : index
    %50 = memref.load %arg4[%c50] : memref<98xf32, #tpu.memory_space<smem>>
    %c51 = arith.constant 51 : index
    %51 = memref.load %arg4[%c51] : memref<98xf32, #tpu.memory_space<smem>>
    %c52 = arith.constant 52 : index
    %52 = memref.load %arg4[%c52] : memref<98xf32, #tpu.memory_space<smem>>
    %c53 = arith.constant 53 : index
    %53 = memref.load %arg4[%c53] : memref<98xf32, #tpu.memory_space<smem>>
    %c54 = arith.constant 54 : index
    %54 = memref.load %arg4[%c54] : memref<98xf32, #tpu.memory_space<smem>>
    %c55 = arith.constant 55 : index
    %55 = memref.load %arg4[%c55] : memref<98xf32, #tpu.memory_space<smem>>
    %c56 = arith.constant 56 : index
    %56 = memref.load %arg4[%c56] : memref<98xf32, #tpu.memory_space<smem>>
    %c57 = arith.constant 57 : index
    %57 = memref.load %arg4[%c57] : memref<98xf32, #tpu.memory_space<smem>>
    %c58 = arith.constant 58 : index
    %58 = memref.load %arg4[%c58] : memref<98xf32, #tpu.memory_space<smem>>
    %c59 = arith.constant 59 : index
    %59 = memref.load %arg4[%c59] : memref<98xf32, #tpu.memory_space<smem>>
    %c60 = arith.constant 60 : index
    %60 = memref.load %arg4[%c60] : memref<98xf32, #tpu.memory_space<smem>>
    %c61 = arith.constant 61 : index
    %61 = memref.load %arg4[%c61] : memref<98xf32, #tpu.memory_space<smem>>
    %c62 = arith.constant 62 : index
    %62 = memref.load %arg4[%c62] : memref<98xf32, #tpu.memory_space<smem>>
    %c63 = arith.constant 63 : index
    %63 = memref.load %arg4[%c63] : memref<98xf32, #tpu.memory_space<smem>>
    %c64 = arith.constant 64 : index
    %64 = memref.load %arg4[%c64] : memref<98xf32, #tpu.memory_space<smem>>
    %c65 = arith.constant 65 : index
    %65 = memref.load %arg4[%c65] : memref<98xf32, #tpu.memory_space<smem>>
    %c66 = arith.constant 66 : index
    %66 = memref.load %arg4[%c66] : memref<98xf32, #tpu.memory_space<smem>>
    %c67 = arith.constant 67 : index
    %67 = memref.load %arg4[%c67] : memref<98xf32, #tpu.memory_space<smem>>
    %c68 = arith.constant 68 : index
    %68 = memref.load %arg4[%c68] : memref<98xf32, #tpu.memory_space<smem>>
    %c69 = arith.constant 69 : index
    %69 = memref.load %arg4[%c69] : memref<98xf32, #tpu.memory_space<smem>>
    %c70 = arith.constant 70 : index
    %70 = memref.load %arg4[%c70] : memref<98xf32, #tpu.memory_space<smem>>
    %c71 = arith.constant 71 : index
    %71 = memref.load %arg4[%c71] : memref<98xf32, #tpu.memory_space<smem>>
    %c72 = arith.constant 72 : index
    %72 = memref.load %arg4[%c72] : memref<98xf32, #tpu.memory_space<smem>>
    %c73 = arith.constant 73 : index
    %73 = memref.load %arg4[%c73] : memref<98xf32, #tpu.memory_space<smem>>
    %c74 = arith.constant 74 : index
    %74 = memref.load %arg4[%c74] : memref<98xf32, #tpu.memory_space<smem>>
    %c75 = arith.constant 75 : index
    %75 = memref.load %arg4[%c75] : memref<98xf32, #tpu.memory_space<smem>>
    %c76 = arith.constant 76 : index
    %76 = memref.load %arg4[%c76] : memref<98xf32, #tpu.memory_space<smem>>
    %c77 = arith.constant 77 : index
    %77 = memref.load %arg4[%c77] : memref<98xf32, #tpu.memory_space<smem>>
    %c78 = arith.constant 78 : index
    %78 = memref.load %arg4[%c78] : memref<98xf32, #tpu.memory_space<smem>>
    %c79 = arith.constant 79 : index
    %79 = memref.load %arg4[%c79] : memref<98xf32, #tpu.memory_space<smem>>
    %c80 = arith.constant 80 : index
    %80 = memref.load %arg4[%c80] : memref<98xf32, #tpu.memory_space<smem>>
    %c81 = arith.constant 81 : index
    %81 = memref.load %arg4[%c81] : memref<98xf32, #tpu.memory_space<smem>>
    %c82 = arith.constant 82 : index
    %82 = memref.load %arg4[%c82] : memref<98xf32, #tpu.memory_space<smem>>
    %c83 = arith.constant 83 : index
    %83 = memref.load %arg4[%c83] : memref<98xf32, #tpu.memory_space<smem>>
    %c84 = arith.constant 84 : index
    %84 = memref.load %arg4[%c84] : memref<98xf32, #tpu.memory_space<smem>>
    %c85 = arith.constant 85 : index
    %85 = memref.load %arg4[%c85] : memref<98xf32, #tpu.memory_space<smem>>
    %c86 = arith.constant 86 : index
    %86 = memref.load %arg4[%c86] : memref<98xf32, #tpu.memory_space<smem>>
    %c87 = arith.constant 87 : index
    %87 = memref.load %arg4[%c87] : memref<98xf32, #tpu.memory_space<smem>>
    %c88 = arith.constant 88 : index
    %88 = memref.load %arg4[%c88] : memref<98xf32, #tpu.memory_space<smem>>
    %c89 = arith.constant 89 : index
    %89 = memref.load %arg4[%c89] : memref<98xf32, #tpu.memory_space<smem>>
    %c90 = arith.constant 90 : index
    %90 = memref.load %arg4[%c90] : memref<98xf32, #tpu.memory_space<smem>>
    %c91 = arith.constant 91 : index
    %91 = memref.load %arg4[%c91] : memref<98xf32, #tpu.memory_space<smem>>
    %c92 = arith.constant 92 : index
    %92 = memref.load %arg4[%c92] : memref<98xf32, #tpu.memory_space<smem>>
    %c93 = arith.constant 93 : index
    %93 = memref.load %arg4[%c93] : memref<98xf32, #tpu.memory_space<smem>>
    %c94 = arith.constant 94 : index
    %94 = memref.load %arg4[%c94] : memref<98xf32, #tpu.memory_space<smem>>
    %c95 = arith.constant 95 : index
    %95 = memref.load %arg4[%c95] : memref<98xf32, #tpu.memory_space<smem>>
    %c96 = arith.constant 96 : index
    %96 = memref.load %arg4[%c96] : memref<98xf32, #tpu.memory_space<smem>>
    %c97 = arith.constant 97 : index
    %97 = memref.load %arg4[%c97] : memref<98xf32, #tpu.memory_space<smem>>
    %c0_0 = arith.constant 0 : index
    %c0_1 = arith.constant 0 : index
    %98 = vector.load %arg2[%c0_0, %c0_1] : memref<4x16xf32, #tpu.memory_space<vmem>>, vector<4x16xf32>
    %c0_2 = arith.constant 0 : index
    %c0_3 = arith.constant 0 : index
    %99 = vector.load %arg3[%c0_2, %c0_3] : memref<16x4xf32, #tpu.memory_space<vmem>>, vector<16x4xf32>
    %100 = tpu.iota {dimensions = array<i32: 1>} : vector<1x256xi32>
    %101 = arith.sitofp %100 : vector<1x256xi32> to vector<1x256xf32>
    %cst = arith.constant 5.000000e-01 : f32
    %102 = vector.broadcast %cst : f32 to vector<1x256xf32>
    %103 = arith.addf %101, %102 : vector<1x256xf32>
    %cst_4 = arith.constant 6.250000e-02 : f32
    %104 = vector.broadcast %cst_4 : f32 to vector<1x256xf32>
    %105 = arith.mulf %103, %104 : vector<1x256xf32>
    %106 = math.floor %105 : vector<1x256xf32>
    %cst_5 = arith.constant 1.600000e+01 : f32
    %107 = vector.broadcast %cst_5 : f32 to vector<1x256xf32>
    %108 = arith.mulf %106, %107 : vector<1x256xf32>
    %109 = arith.subf %101, %108 : vector<1x256xf32>
    %cst_6 = arith.constant 3.000000e+00 : f32
    %110 = vector.broadcast %cst_6 : f32 to vector<1x256xf32>
    %111 = arith.cmpf oge, %109, %110 : vector<1x256xf32>
    %cst_7 = arith.constant 1.800000e+01 : f32
    %112 = vector.broadcast %cst_7 : f32 to vector<1x256xf32>
    %113 = arith.cmpf ole, %109, %112 : vector<1x256xf32>
    %114 = arith.andi %111, %113 : vector<1x256xi1>
    %cst_8 = arith.constant 2.000000e+00 : f32
    %115 = vector.broadcast %cst_8 : f32 to vector<1x256xf32>
    %116 = arith.cmpf oge, %109, %115 : vector<1x256xf32>
    %cst_9 = arith.constant 1.700000e+01 : f32
    %117 = vector.broadcast %cst_9 : f32 to vector<1x256xf32>
    %118 = arith.cmpf ole, %109, %117 : vector<1x256xf32>
    %119 = arith.andi %116, %118 : vector<1x256xi1>
    %cst_10 = arith.constant 1.000000e+00 : f32
    %120 = vector.broadcast %cst_10 : f32 to vector<1x256xf32>
    %121 = arith.cmpf oge, %109, %120 : vector<1x256xf32>
    %cst_11 = arith.constant 1.600000e+01 : f32
    %122 = vector.broadcast %cst_11 : f32 to vector<1x256xf32>
    %123 = arith.cmpf ole, %109, %122 : vector<1x256xf32>
    %124 = arith.andi %121, %123 : vector<1x256xi1>
    %cst_12 = arith.constant 0.000000e+00 : f32
    %125 = vector.broadcast %cst_12 : f32 to vector<1x256xf32>
    %126 = arith.cmpf oge, %109, %125 : vector<1x256xf32>
    %cst_13 = arith.constant 1.500000e+01 : f32
    %127 = vector.broadcast %cst_13 : f32 to vector<1x256xf32>
    %128 = arith.cmpf ole, %109, %127 : vector<1x256xf32>
    %129 = arith.andi %126, %128 : vector<1x256xi1>
    %cst_14 = arith.constant -1.000000e+00 : f32
    %130 = vector.broadcast %cst_14 : f32 to vector<1x256xf32>
    %131 = arith.cmpf oge, %109, %130 : vector<1x256xf32>
    %cst_15 = arith.constant 1.400000e+01 : f32
    %132 = vector.broadcast %cst_15 : f32 to vector<1x256xf32>
    %133 = arith.cmpf ole, %109, %132 : vector<1x256xf32>
    %134 = arith.andi %131, %133 : vector<1x256xi1>
    %cst_16 = arith.constant -2.000000e+00 : f32
    %135 = vector.broadcast %cst_16 : f32 to vector<1x256xf32>
    %136 = arith.cmpf oge, %109, %135 : vector<1x256xf32>
    %cst_17 = arith.constant 1.300000e+01 : f32
    %137 = vector.broadcast %cst_17 : f32 to vector<1x256xf32>
    %138 = arith.cmpf ole, %109, %137 : vector<1x256xf32>
    %139 = arith.andi %136, %138 : vector<1x256xi1>
    %cst_18 = arith.constant -3.000000e+00 : f32
    %140 = vector.broadcast %cst_18 : f32 to vector<1x256xf32>
    %141 = arith.cmpf oge, %109, %140 : vector<1x256xf32>
    %cst_19 = arith.constant 1.200000e+01 : f32
    %142 = vector.broadcast %cst_19 : f32 to vector<1x256xf32>
    %143 = arith.cmpf ole, %109, %142 : vector<1x256xf32>
    %144 = arith.andi %141, %143 : vector<1x256xi1>
    %cst_20 = arith.constant 1.000000e+00 : f32
    %145 = vector.broadcast %cst_20 : f32 to vector<256x1xf32>
    %cst_21 = arith.constant 1.000000e+00 : f32
    %146 = vector.broadcast %cst_21 : f32 to vector<1x16xf32>
    %c0_i32 = arith.constant 0 : i32
    %c2_i32 = arith.constant 2 : i32
    %147 = arith.addi %c0_i32, %c2_i32 : i32
    %c1_i32 = arith.constant 1 : i32
    scf.for %arg7 = %c0_i32 to %147 step %c1_i32  : i32 {
      %c1_i32_23 = arith.constant 1 : i32
      %148 = arith.muli %arg7, %c1_i32_23 : i32
      %c0_i32_24 = arith.constant 0 : i32
      %149 = arith.addi %c0_i32_24, %148 : i32
      %150 = arith.index_cast %149 : i32 to index
      %c0_25 = arith.constant 0 : index
      %c0_26 = arith.constant 0 : index
      %151 = vector.load %arg1[%150, %c0_25, %c0_26] : memref<2x16x256xf32, #tpu.memory_space<vmem>>, vector<1x16x256xf32>
      %152 = vector.shape_cast %151 : vector<1x16x256xf32> to vector<16x256xf32>
      %cst_27 = arith.constant dense<0.000000e+00> : vector<16x1xf32>
      %153 = tpu.matmul %152, %145, %cst_27 {dimension_numbers = #tpu.dot_dimension_numbers<[1], [0], [0], [1], [0, 0, 1, 1], [], []>} : vector<16x256xf32>, vector<256x1xf32>, vector<16x1xf32> -> vector<16x1xf32>
      %cst_28 = arith.constant 3.906250e-03 : f32
      %154 = vector.broadcast %cst_28 : f32 to vector<16x1xf32>
      %155 = arith.mulf %153, %154 : vector<16x1xf32>
      %cst_29 = arith.constant dense<0xFF800000> : vector<16xf32>
      %156 = vector.multi_reduction <maximumf>, %152, %cst_29 [1] : vector<16x256xf32> to vector<16xf32>
      %157 = vector.shape_cast %156 : vector<16xf32> to vector<16x1xf32>
      %158 = tpu.concatenate %155, %157 in 1 : vector<16x1xf32>, vector<16x1xf32> -> vector<16x2xf32>
      %cst_30 = arith.constant dense<0.000000e+00> : vector<4x2xf32>
      %159 = tpu.matmul %98, %158, %cst_30 {dimension_numbers = #tpu.dot_dimension_numbers<[1], [0], [0], [1], [0, 0, 1, 1], [], []>} : vector<4x16xf32>, vector<16x2xf32>, vector<4x2xf32> -> vector<4x2xf32>
      %cst_31 = arith.constant 0.000000e+00 : f32
      %160 = vector.broadcast %cst_31 : f32 to vector<4x2xf32>
      %161 = arith.maximumf %159, %160 : vector<4x2xf32>
      %cst_32 = arith.constant dense<0.000000e+00> : vector<16x2xf32>
      %162 = tpu.matmul %99, %161, %cst_32 {dimension_numbers = #tpu.dot_dimension_numbers<[1], [0], [0], [1], [0, 0, 1, 1], [], []>} : vector<16x4xf32>, vector<4x2xf32>, vector<16x2xf32> -> vector<16x2xf32>
      %163 = vector.extract_strided_slice %162 {offsets = [0, 0], sizes = [16, 1], strides = [1, 1]} : vector<16x2xf32> to vector<16x1xf32>
      %164 = vector.extract_strided_slice %162 {offsets = [0, 1], sizes = [16, 1], strides = [1, 1]} : vector<16x2xf32> to vector<16x1xf32>
      %165 = arith.addf %163, %164 : vector<16x1xf32>
      %166 = arith.negf %165 : vector<16x1xf32>
      %167 = math.exp %166 : vector<16x1xf32>
      %cst_33 = arith.constant 1.000000e+00 : f32
      %168 = vector.broadcast %cst_33 : f32 to vector<16x1xf32>
      %169 = arith.addf %168, %167 : vector<16x1xf32>
      %170 = arith.divf %168, %169 : vector<16x1xf32>
      %171 = vector.broadcast %170 : vector<16x1xf32> to vector<16x256xf32>
      %172 = arith.mulf %152, %171 : vector<16x256xf32>
      %cst_34 = arith.constant dense<0xFF800000> : vector<256xf32>
      %173 = vector.multi_reduction <maximumf>, %172, %cst_34 [0] : vector<16x256xf32> to vector<256xf32>
      %174 = vector.shape_cast %173 : vector<256xf32> to vector<1x256xf32>
      %cst_35 = arith.constant dense<0.000000e+00> : vector<1x256xf32>
      %175 = tpu.matmul %146, %172, %cst_35 {dimension_numbers = #tpu.dot_dimension_numbers<[1], [0], [0], [1], [0, 0, 1, 1], [], []>} : vector<1x16xf32>, vector<16x256xf32>, vector<1x256xf32> -> vector<1x256xf32>
      %cst_36 = arith.constant 6.250000e-02 : f32
      %176 = vector.broadcast %cst_36 : f32 to vector<1x256xf32>
      %177 = arith.mulf %175, %176 : vector<1x256xf32>
      %cst_37 = arith.constant 0.000000e+00 : f32
      %178 = vector.broadcast %cst_37 : f32 to vector<2x51xf32>
      %c0_38 = arith.constant 0 : index
      %c0_39 = arith.constant 0 : index
      %179 = vector.load %arg6[%c0_38, %c0_39] : memref<2x358xf32, #tpu.memory_space<vmem>>, vector<2x51xf32>
      tpu.vector_store %arg6[%c0_38, %c0_39], %178 {strides = array<i32>} : memref<2x358xf32, #tpu.memory_space<vmem>>, vector<2x51xf32>,
      %c0_40 = arith.constant 0 : index
      %c307 = arith.constant 307 : index
      %180 = vector.load %arg6[%c0_40, %c307] : memref<2x358xf32, #tpu.memory_space<vmem>>, vector<2x51xf32>
      tpu.vector_store %arg6[%c0_40, %c307], %178 {strides = array<i32>} : memref<2x358xf32, #tpu.memory_space<vmem>>, vector<2x51xf32>,
      %c0_41 = arith.constant 0 : index
      %c51_42 = arith.constant 51 : index
      %181 = vector.load %arg6[%c0_41, %c51_42] : memref<2x358xf32, #tpu.memory_space<vmem>>, vector<1x256xf32>
      tpu.vector_store %arg6[%c0_41, %c51_42], %174 {strides = array<i32>} : memref<2x358xf32, #tpu.memory_space<vmem>>, vector<1x256xf32>,
      %c1_43 = arith.constant 1 : index
      %c51_44 = arith.constant 51 : index
      %182 = vector.load %arg6[%c1_43, %c51_44] : memref<2x358xf32, #tpu.memory_space<vmem>>, vector<1x256xf32>
      tpu.vector_store %arg6[%c1_43, %c51_44], %177 {strides = array<i32>} : memref<2x358xf32, #tpu.memory_space<vmem>>, vector<1x256xf32>,
      %cst_45 = arith.constant 0.000000e+00 : f32
      %183 = vector.broadcast %cst_45 : f32 to vector<1x256xf32>
      %c0_46 = arith.constant 0 : index
      %c0_47 = arith.constant 0 : index
      %184 = vector.load %arg6[%c0_46, %c0_47] : memref<2x358xf32, #tpu.memory_space<vmem>>, vector<1x262xf32>
      %185 = vector.extract_strided_slice %184 {offsets = [0, 0], sizes = [1, 256], strides = [1, 1]} : vector<1x262xf32> to vector<1x256xf32>
      %cst_48 = arith.constant 0.000000e+00 : f32
      %186 = vector.broadcast %cst_48 : f32 to vector<1x256xf32>
      %187 = arith.select %114, %185, %186 : vector<1x256xi1>, vector<1x256xf32>
      %188 = vector.broadcast %0 : f32 to vector<1x256xf32>
      %189 = arith.mulf %188, %187 : vector<1x256xf32>
      %190 = arith.addf %183, %189 : vector<1x256xf32>
      %191 = vector.extract_strided_slice %184 {offsets = [0, 1], sizes = [1, 256], strides = [1, 1]} : vector<1x262xf32> to vector<1x256xf32>
      %cst_49 = arith.constant 0.000000e+00 : f32
      %192 = vector.broadcast %cst_49 : f32 to vector<1x256xf32>
      %193 = arith.select %119, %191, %192 : vector<1x256xi1>, vector<1x256xf32>
      %194 = vector.broadcast %1 : f32 to vector<1x256xf32>
      %195 = arith.mulf %194, %193 : vector<1x256xf32>
      %196 = arith.addf %190, %195 : vector<1x256xf32>
      %197 = vector.extract_strided_slice %184 {offsets = [0, 2], sizes = [1, 256], strides = [1, 1]} : vector<1x262xf32> to vector<1x256xf32>
      %cst_50 = arith.constant 0.000000e+00 : f32
      %198 = vector.broadcast %cst_50 : f32 to vector<1x256xf32>
      %199 = arith.select %124, %197, %198 : vector<1x256xi1>, vector<1x256xf32>
      %200 = vector.broadcast %2 : f32 to vector<1x256xf32>
      %201 = arith.mulf %200, %199 : vector<1x256xf32>
      %202 = arith.addf %196, %201 : vector<1x256xf32>
      %203 = vector.extract_strided_slice %184 {offsets = [0, 3], sizes = [1, 256], strides = [1, 1]} : vector<1x262xf32> to vector<1x256xf32>
      %cst_51 = arith.constant 0.000000e+00 : f32
      %204 = vector.broadcast %cst_51 : f32 to vector<1x256xf32>
      %205 = arith.select %129, %203, %204 : vector<1x256xi1>, vector<1x256xf32>
      %206 = vector.broadcast %3 : f32 to vector<1x256xf32>
      %207 = arith.mulf %206, %205 : vector<1x256xf32>
      %208 = arith.addf %202, %207 : vector<1x256xf32>
      %209 = vector.extract_strided_slice %184 {offsets = [0, 4], sizes = [1, 256], strides = [1, 1]} : vector<1x262xf32> to vector<1x256xf32>
      %cst_52 = arith.constant 0.000000e+00 : f32
      %210 = vector.broadcast %cst_52 : f32 to vector<1x256xf32>
      %211 = arith.select %134, %209, %210 : vector<1x256xi1>, vector<1x256xf32>
      %212 = vector.broadcast %4 : f32 to vector<1x256xf32>
      %213 = arith.mulf %212, %211 : vector<1x256xf32>
      %214 = arith.addf %208, %213 : vector<1x256xf32>
      %215 = vector.extract_strided_slice %184 {offsets = [0, 5], sizes = [1, 256], strides = [1, 1]} : vector<1x262xf32> to vector<1x256xf32>
      %cst_53 = arith.constant 0.000000e+00 : f32
      %216 = vector.broadcast %cst_53 : f32 to vector<1x256xf32>
      %217 = arith.select %139, %215, %216 : vector<1x256xi1>, vector<1x256xf32>
      %218 = vector.broadcast %5 : f32 to vector<1x256xf32>
      %219 = arith.mulf %218, %217 : vector<1x256xf32>
      %220 = arith.addf %214, %219 : vector<1x256xf32>
      %221 = vector.extract_strided_slice %184 {offsets = [0, 6], sizes = [1, 256], strides = [1, 1]} : vector<1x262xf32> to vector<1x256xf32>
      %cst_54 = arith.constant 0.000000e+00 : f32
      %222 = vector.broadcast %cst_54 : f32 to vector<1x256xf32>
      %223 = arith.select %144, %221, %222 : vector<1x256xi1>, vector<1x256xf32>
      %224 = vector.broadcast %6 : f32 to vector<1x256xf32>
      %225 = arith.mulf %224, %223 : vector<1x256xf32>
      %226 = arith.addf %220, %225 : vector<1x256xf32>
      %c0_55 = arith.constant 0 : index
      %c16_56 = arith.constant 16 : index
      %227 = vector.load %arg6[%c0_55, %c16_56] : memref<2x358xf32, #tpu.memory_space<vmem>>, vector<1x262xf32>
      %228 = vector.extract_strided_slice %227 {offsets = [0, 0], sizes = [1, 256], strides = [1, 1]} : vector<1x262xf32> to vector<1x256xf32>
      %cst_57 = arith.constant 0.000000e+00 : f32
      %229 = vector.broadcast %cst_57 : f32 to vector<1x256xf32>
      %230 = arith.select %114, %228, %229 : vector<1x256xi1>, vector<1x256xf32>
      %231 = vector.broadcast %7 : f32 to vector<1x256xf32>
      %232 = arith.mulf %231, %230 : vector<1x256xf32>
      %233 = arith.addf %226, %232 : vector<1x256xf32>
      %234 = vector.extract_strided_slice %227 {offsets = [0, 1], sizes = [1, 256], strides = [1, 1]} : vector<1x262xf32> to vector<1x256xf32>
      %cst_58 = arith.constant 0.000000e+00 : f32
      %235 = vector.broadcast %cst_58 : f32 to vector<1x256xf32>
      %236 = arith.select %119, %234, %235 : vector<1x256xi1>, vector<1x256xf32>
      %237 = vector.broadcast %8 : f32 to vector<1x256xf32>
      %238 = arith.mulf %237, %236 : vector<1x256xf32>
      %239 = arith.addf %233, %238 : vector<1x256xf32>
      %240 = vector.extract_strided_slice %227 {offsets = [0, 2], sizes = [1, 256], strides = [1, 1]} : vector<1x262xf32> to vector<1x256xf32>
      %cst_59 = arith.constant 0.000000e+00 : f32
      %241 = vector.broadcast %cst_59 : f32 to vector<1x256xf32>
      %242 = arith.select %124, %240, %241 : vector<1x256xi1>, vector<1x256xf32>
      %243 = vector.broadcast %9 : f32 to vector<1x256xf32>
      %244 = arith.mulf %243, %242 : vector<1x256xf32>
      %245 = arith.addf %239, %244 : vector<1x256xf32>
      %246 = vector.extract_strided_slice %227 {offsets = [0, 3], sizes = [1, 256], strides = [1, 1]} : vector<1x262xf32> to vector<1x256xf32>
      %cst_60 = arith.constant 0.000000e+00 : f32
      %247 = vector.broadcast %cst_60 : f32 to vector<1x256xf32>
      %248 = arith.select %129, %246, %247 : vector<1x256xi1>, vector<1x256xf32>
      %249 = vector.broadcast %10 : f32 to vector<1x256xf32>
      %250 = arith.mulf %249, %248 : vector<1x256xf32>
      %251 = arith.addf %245, %250 : vector<1x256xf32>
      %252 = vector.extract_strided_slice %227 {offsets = [0, 4], sizes = [1, 256], strides = [1, 1]} : vector<1x262xf32> to vector<1x256xf32>
      %cst_61 = arith.constant 0.000000e+00 : f32
      %253 = vector.broadcast %cst_61 : f32 to vector<1x256xf32>
      %254 = arith.select %134, %252, %253 : vector<1x256xi1>, vector<1x256xf32>
      %255 = vector.broadcast %11 : f32 to vector<1x256xf32>
      %256 = arith.mulf %255, %254 : vector<1x256xf32>
      %257 = arith.addf %251, %256 : vector<1x256xf32>
      %258 = vector.extract_strided_slice %227 {offsets = [0, 5], sizes = [1, 256], strides = [1, 1]} : vector<1x262xf32> to vector<1x256xf32>
      %cst_62 = arith.constant 0.000000e+00 : f32
      %259 = vector.broadcast %cst_62 : f32 to vector<1x256xf32>
      %260 = arith.select %139, %258, %259 : vector<1x256xi1>, vector<1x256xf32>
      %261 = vector.broadcast %12 : f32 to vector<1x256xf32>
      %262 = arith.mulf %261, %260 : vector<1x256xf32>
      %263 = arith.addf %257, %262 : vector<1x256xf32>
      %264 = vector.extract_strided_slice %227 {offsets = [0, 6], sizes = [1, 256], strides = [1, 1]} : vector<1x262xf32> to vector<1x256xf32>
      %cst_63 = arith.constant 0.000000e+00 : f32
      %265 = vector.broadcast %cst_63 : f32 to vector<1x256xf32>
      %266 = arith.select %144, %264, %265 : vector<1x256xi1>, vector<1x256xf32>
      %267 = vector.broadcast %13 : f32 to vector<1x256xf32>
      %268 = arith.mulf %267, %266 : vector<1x256xf32>
      %269 = arith.addf %263, %268 : vector<1x256xf32>
      %c0_64 = arith.constant 0 : index
      %c32_65 = arith.constant 32 : index
      %270 = vector.load %arg6[%c0_64, %c32_65] : memref<2x358xf32, #tpu.memory_space<vmem>>, vector<1x262xf32>
      %271 = vector.extract_strided_slice %270 {offsets = [0, 0], sizes = [1, 256], strides = [1, 1]} : vector<1x262xf32> to vector<1x256xf32>
      %cst_66 = arith.constant 0.000000e+00 : f32
      %272 = vector.broadcast %cst_66 : f32 to vector<1x256xf32>
      %273 = arith.select %114, %271, %272 : vector<1x256xi1>, vector<1x256xf32>
      %274 = vector.broadcast %14 : f32 to vector<1x256xf32>
      %275 = arith.mulf %274, %273 : vector<1x256xf32>
      %276 = arith.addf %269, %275 : vector<1x256xf32>
      %277 = vector.extract_strided_slice %270 {offsets = [0, 1], sizes = [1, 256], strides = [1, 1]} : vector<1x262xf32> to vector<1x256xf32>
      %cst_67 = arith.constant 0.000000e+00 : f32
      %278 = vector.broadcast %cst_67 : f32 to vector<1x256xf32>
      %279 = arith.select %119, %277, %278 : vector<1x256xi1>, vector<1x256xf32>
      %280 = vector.broadcast %15 : f32 to vector<1x256xf32>
      %281 = arith.mulf %280, %279 : vector<1x256xf32>
      %282 = arith.addf %276, %281 : vector<1x256xf32>
      %283 = vector.extract_strided_slice %270 {offsets = [0, 2], sizes = [1, 256], strides = [1, 1]} : vector<1x262xf32> to vector<1x256xf32>
      %cst_68 = arith.constant 0.000000e+00 : f32
      %284 = vector.broadcast %cst_68 : f32 to vector<1x256xf32>
      %285 = arith.select %124, %283, %284 : vector<1x256xi1>, vector<1x256xf32>
      %286 = vector.broadcast %16 : f32 to vector<1x256xf32>
      %287 = arith.mulf %286, %285 : vector<1x256xf32>
      %288 = arith.addf %282, %287 : vector<1x256xf32>
      %289 = vector.extract_strided_slice %270 {offsets = [0, 3], sizes = [1, 256], strides = [1, 1]} : vector<1x262xf32> to vector<1x256xf32>
      %cst_69 = arith.constant 0.000000e+00 : f32
      %290 = vector.broadcast %cst_69 : f32 to vector<1x256xf32>
      %291 = arith.select %129, %289, %290 : vector<1x256xi1>, vector<1x256xf32>
      %292 = vector.broadcast %17 : f32 to vector<1x256xf32>
      %293 = arith.mulf %292, %291 : vector<1x256xf32>
      %294 = arith.addf %288, %293 : vector<1x256xf32>
      %295 = vector.extract_strided_slice %270 {offsets = [0, 4], sizes = [1, 256], strides = [1, 1]} : vector<1x262xf32> to vector<1x256xf32>
      %cst_70 = arith.constant 0.000000e+00 : f32
      %296 = vector.broadcast %cst_70 : f32 to vector<1x256xf32>
      %297 = arith.select %134, %295, %296 : vector<1x256xi1>, vector<1x256xf32>
      %298 = vector.broadcast %18 : f32 to vector<1x256xf32>
      %299 = arith.mulf %298, %297 : vector<1x256xf32>
      %300 = arith.addf %294, %299 : vector<1x256xf32>
      %301 = vector.extract_strided_slice %270 {offsets = [0, 5], sizes = [1, 256], strides = [1, 1]} : vector<1x262xf32> to vector<1x256xf32>
      %cst_71 = arith.constant 0.000000e+00 : f32
      %302 = vector.broadcast %cst_71 : f32 to vector<1x256xf32>
      %303 = arith.select %139, %301, %302 : vector<1x256xi1>, vector<1x256xf32>
      %304 = vector.broadcast %19 : f32 to vector<1x256xf32>
      %305 = arith.mulf %304, %303 : vector<1x256xf32>
      %306 = arith.addf %300, %305 : vector<1x256xf32>
      %307 = vector.extract_strided_slice %270 {offsets = [0, 6], sizes = [1, 256], strides = [1, 1]} : vector<1x262xf32> to vector<1x256xf32>
      %cst_72 = arith.constant 0.000000e+00 : f32
      %308 = vector.broadcast %cst_72 : f32 to vector<1x256xf32>
      %309 = arith.select %144, %307, %308 : vector<1x256xi1>, vector<1x256xf32>
      %310 = vector.broadcast %20 : f32 to vector<1x256xf32>
      %311 = arith.mulf %310, %309 : vector<1x256xf32>
      %312 = arith.addf %306, %311 : vector<1x256xf32>
      %c0_73 = arith.constant 0 : index
      %c48_74 = arith.constant 48 : index
      %313 = vector.load %arg6[%c0_73, %c48_74] : memref<2x358xf32, #tpu.memory_space<vmem>>, vector<1x262xf32>
      %314 = vector.extract_strided_slice %313 {offsets = [0, 0], sizes = [1, 256], strides = [1, 1]} : vector<1x262xf32> to vector<1x256xf32>
      %cst_75 = arith.constant 0.000000e+00 : f32
      %315 = vector.broadcast %cst_75 : f32 to vector<1x256xf32>
      %316 = arith.select %114, %314, %315 : vector<1x256xi1>, vector<1x256xf32>
      %317 = vector.broadcast %21 : f32 to vector<1x256xf32>
      %318 = arith.mulf %317, %316 : vector<1x256xf32>
      %319 = arith.addf %312, %318 : vector<1x256xf32>
      %320 = vector.extract_strided_slice %313 {offsets = [0, 1], sizes = [1, 256], strides = [1, 1]} : vector<1x262xf32> to vector<1x256xf32>
      %cst_76 = arith.constant 0.000000e+00 : f32
      %321 = vector.broadcast %cst_76 : f32 to vector<1x256xf32>
      %322 = arith.select %119, %320, %321 : vector<1x256xi1>, vector<1x256xf32>
      %323 = vector.broadcast %22 : f32 to vector<1x256xf32>
      %324 = arith.mulf %323, %322 : vector<1x256xf32>
      %325 = arith.addf %319, %324 : vector<1x256xf32>
      %326 = vector.extract_strided_slice %313 {offsets = [0, 2], sizes = [1, 256], strides = [1, 1]} : vector<1x262xf32> to vector<1x256xf32>
      %cst_77 = arith.constant 0.000000e+00 : f32
      %327 = vector.broadcast %cst_77 : f32 to vector<1x256xf32>
      %328 = arith.select %124, %326, %327 : vector<1x256xi1>, vector<1x256xf32>
      %329 = vector.broadcast %23 : f32 to vector<1x256xf32>
      %330 = arith.mulf %329, %328 : vector<1x256xf32>
      %331 = arith.addf %325, %330 : vector<1x256xf32>
      %332 = vector.extract_strided_slice %313 {offsets = [0, 3], sizes = [1, 256], strides = [1, 1]} : vector<1x262xf32> to vector<1x256xf32>
      %cst_78 = arith.constant 0.000000e+00 : f32
      %333 = vector.broadcast %cst_78 : f32 to vector<1x256xf32>
      %334 = arith.select %129, %332, %333 : vector<1x256xi1>, vector<1x256xf32>
      %335 = vector.broadcast %24 : f32 to vector<1x256xf32>
      %336 = arith.mulf %335, %334 : vector<1x256xf32>
      %337 = arith.addf %331, %336 : vector<1x256xf32>
      %338 = vector.extract_strided_slice %313 {offsets = [0, 4], sizes = [1, 256], strides = [1, 1]} : vector<1x262xf32> to vector<1x256xf32>
      %cst_79 = arith.constant 0.000000e+00 : f32
      %339 = vector.broadcast %cst_79 : f32 to vector<1x256xf32>
      %340 = arith.select %134, %338, %339 : vector<1x256xi1>, vector<1x256xf32>
      %341 = vector.broadcast %25 : f32 to vector<1x256xf32>
      %342 = arith.mulf %341, %340 : vector<1x256xf32>
      %343 = arith.addf %337, %342 : vector<1x256xf32>
      %344 = vector.extract_strided_slice %313 {offsets = [0, 5], sizes = [1, 256], strides = [1, 1]} : vector<1x262xf32> to vector<1x256xf32>
      %cst_80 = arith.constant 0.000000e+00 : f32
      %345 = vector.broadcast %cst_80 : f32 to vector<1x256xf32>
      %346 = arith.select %139, %344, %345 : vector<1x256xi1>, vector<1x256xf32>
      %347 = vector.broadcast %26 : f32 to vector<1x256xf32>
      %348 = arith.mulf %347, %346 : vector<1x256xf32>
      %349 = arith.addf %343, %348 : vector<1x256xf32>
      %350 = vector.extract_strided_slice %313 {offsets = [0, 6], sizes = [1, 256], strides = [1, 1]} : vector<1x262xf32> to vector<1x256xf32>
      %cst_81 = arith.constant 0.000000e+00 : f32
      %351 = vector.broadcast %cst_81 : f32 to vector<1x256xf32>
      %352 = arith.select %144, %350, %351 : vector<1x256xi1>, vector<1x256xf32>
      %353 = vector.broadcast %27 : f32 to vector<1x256xf32>
      %354 = arith.mulf %353, %352 : vector<1x256xf32>
      %355 = arith.addf %349, %354 : vector<1x256xf32>
      %c0_82 = arith.constant 0 : index
      %c64_83 = arith.constant 64 : index
      %356 = vector.load %arg6[%c0_82, %c64_83] : memref<2x358xf32, #tpu.memory_space<vmem>>, vector<1x262xf32>
      %357 = vector.extract_strided_slice %356 {offsets = [0, 0], sizes = [1, 256], strides = [1, 1]} : vector<1x262xf32> to vector<1x256xf32>
      %cst_84 = arith.constant 0.000000e+00 : f32
      %358 = vector.broadcast %cst_84 : f32 to vector<1x256xf32>
      %359 = arith.select %114, %357, %358 : vector<1x256xi1>, vector<1x256xf32>
      %360 = vector.broadcast %28 : f32 to vector<1x256xf32>
      %361 = arith.mulf %360, %359 : vector<1x256xf32>
      %362 = arith.addf %355, %361 : vector<1x256xf32>
      %363 = vector.extract_strided_slice %356 {offsets = [0, 1], sizes = [1, 256], strides = [1, 1]} : vector<1x262xf32> to vector<1x256xf32>
      %cst_85 = arith.constant 0.000000e+00 : f32
      %364 = vector.broadcast %cst_85 : f32 to vector<1x256xf32>
      %365 = arith.select %119, %363, %364 : vector<1x256xi1>, vector<1x256xf32>
      %366 = vector.broadcast %29 : f32 to vector<1x256xf32>
      %367 = arith.mulf %366, %365 : vector<1x256xf32>
      %368 = arith.addf %362, %367 : vector<1x256xf32>
      %369 = vector.extract_strided_slice %356 {offsets = [0, 2], sizes = [1, 256], strides = [1, 1]} : vector<1x262xf32> to vector<1x256xf32>
      %cst_86 = arith.constant 0.000000e+00 : f32
      %370 = vector.broadcast %cst_86 : f32 to vector<1x256xf32>
      %371 = arith.select %124, %369, %370 : vector<1x256xi1>, vector<1x256xf32>
      %372 = vector.broadcast %30 : f32 to vector<1x256xf32>
      %373 = arith.mulf %372, %371 : vector<1x256xf32>
      %374 = arith.addf %368, %373 : vector<1x256xf32>
      %375 = vector.extract_strided_slice %356 {offsets = [0, 3], sizes = [1, 256], strides = [1, 1]} : vector<1x262xf32> to vector<1x256xf32>
      %cst_87 = arith.constant 0.000000e+00 : f32
      %376 = vector.broadcast %cst_87 : f32 to vector<1x256xf32>
      %377 = arith.select %129, %375, %376 : vector<1x256xi1>, vector<1x256xf32>
      %378 = vector.broadcast %31 : f32 to vector<1x256xf32>
      %379 = arith.mulf %378, %377 : vector<1x256xf32>
      %380 = arith.addf %374, %379 : vector<1x256xf32>
      %381 = vector.extract_strided_slice %356 {offsets = [0, 4], sizes = [1, 256], strides = [1, 1]} : vector<1x262xf32> to vector<1x256xf32>
      %cst_88 = arith.constant 0.000000e+00 : f32
      %382 = vector.broadcast %cst_88 : f32 to vector<1x256xf32>
      %383 = arith.select %134, %381, %382 : vector<1x256xi1>, vector<1x256xf32>
      %384 = vector.broadcast %32 : f32 to vector<1x256xf32>
      %385 = arith.mulf %384, %383 : vector<1x256xf32>
      %386 = arith.addf %380, %385 : vector<1x256xf32>
      %387 = vector.extract_strided_slice %356 {offsets = [0, 5], sizes = [1, 256], strides = [1, 1]} : vector<1x262xf32> to vector<1x256xf32>
      %cst_89 = arith.constant 0.000000e+00 : f32
      %388 = vector.broadcast %cst_89 : f32 to vector<1x256xf32>
      %389 = arith.select %139, %387, %388 : vector<1x256xi1>, vector<1x256xf32>
      %390 = vector.broadcast %33 : f32 to vector<1x256xf32>
      %391 = arith.mulf %390, %389 : vector<1x256xf32>
      %392 = arith.addf %386, %391 : vector<1x256xf32>
      %393 = vector.extract_strided_slice %356 {offsets = [0, 6], sizes = [1, 256], strides = [1, 1]} : vector<1x262xf32> to vector<1x256xf32>
      %cst_90 = arith.constant 0.000000e+00 : f32
      %394 = vector.broadcast %cst_90 : f32 to vector<1x256xf32>
      %395 = arith.select %144, %393, %394 : vector<1x256xi1>, vector<1x256xf32>
      %396 = vector.broadcast %34 : f32 to vector<1x256xf32>
      %397 = arith.mulf %396, %395 : vector<1x256xf32>
      %398 = arith.addf %392, %397 : vector<1x256xf32>
      %c0_91 = arith.constant 0 : index
      %c80_92 = arith.constant 80 : index
      %399 = vector.load %arg6[%c0_91, %c80_92] : memref<2x358xf32, #tpu.memory_space<vmem>>, vector<1x262xf32>
      %400 = vector.extract_strided_slice %399 {offsets = [0, 0], sizes = [1, 256], strides = [1, 1]} : vector<1x262xf32> to vector<1x256xf32>
      %cst_93 = arith.constant 0.000000e+00 : f32
      %401 = vector.broadcast %cst_93 : f32 to vector<1x256xf32>
      %402 = arith.select %114, %400, %401 : vector<1x256xi1>, vector<1x256xf32>
      %403 = vector.broadcast %35 : f32 to vector<1x256xf32>
      %404 = arith.mulf %403, %402 : vector<1x256xf32>
      %405 = arith.addf %398, %404 : vector<1x256xf32>
      %406 = vector.extract_strided_slice %399 {offsets = [0, 1], sizes = [1, 256], strides = [1, 1]} : vector<1x262xf32> to vector<1x256xf32>
      %cst_94 = arith.constant 0.000000e+00 : f32
      %407 = vector.broadcast %cst_94 : f32 to vector<1x256xf32>
      %408 = arith.select %119, %406, %407 : vector<1x256xi1>, vector<1x256xf32>
      %409 = vector.broadcast %36 : f32 to vector<1x256xf32>
      %410 = arith.mulf %409, %408 : vector<1x256xf32>
      %411 = arith.addf %405, %410 : vector<1x256xf32>
      %412 = vector.extract_strided_slice %399 {offsets = [0, 2], sizes = [1, 256], strides = [1, 1]} : vector<1x262xf32> to vector<1x256xf32>
      %cst_95 = arith.constant 0.000000e+00 : f32
      %413 = vector.broadcast %cst_95 : f32 to vector<1x256xf32>
      %414 = arith.select %124, %412, %413 : vector<1x256xi1>, vector<1x256xf32>
      %415 = vector.broadcast %37 : f32 to vector<1x256xf32>
      %416 = arith.mulf %415, %414 : vector<1x256xf32>
      %417 = arith.addf %411, %416 : vector<1x256xf32>
      %418 = vector.extract_strided_slice %399 {offsets = [0, 3], sizes = [1, 256], strides = [1, 1]} : vector<1x262xf32> to vector<1x256xf32>
      %cst_96 = arith.constant 0.000000e+00 : f32
      %419 = vector.broadcast %cst_96 : f32 to vector<1x256xf32>
      %420 = arith.select %129, %418, %419 : vector<1x256xi1>, vector<1x256xf32>
      %421 = vector.broadcast %38 : f32 to vector<1x256xf32>
      %422 = arith.mulf %421, %420 : vector<1x256xf32>
      %423 = arith.addf %417, %422 : vector<1x256xf32>
      %424 = vector.extract_strided_slice %399 {offsets = [0, 4], sizes = [1, 256], strides = [1, 1]} : vector<1x262xf32> to vector<1x256xf32>
      %cst_97 = arith.constant 0.000000e+00 : f32
      %425 = vector.broadcast %cst_97 : f32 to vector<1x256xf32>
      %426 = arith.select %134, %424, %425 : vector<1x256xi1>, vector<1x256xf32>
      %427 = vector.broadcast %39 : f32 to vector<1x256xf32>
      %428 = arith.mulf %427, %426 : vector<1x256xf32>
      %429 = arith.addf %423, %428 : vector<1x256xf32>
      %430 = vector.extract_strided_slice %399 {offsets = [0, 5], sizes = [1, 256], strides = [1, 1]} : vector<1x262xf32> to vector<1x256xf32>
      %cst_98 = arith.constant 0.000000e+00 : f32
      %431 = vector.broadcast %cst_98 : f32 to vector<1x256xf32>
      %432 = arith.select %139, %430, %431 : vector<1x256xi1>, vector<1x256xf32>
      %433 = vector.broadcast %40 : f32 to vector<1x256xf32>
      %434 = arith.mulf %433, %432 : vector<1x256xf32>
      %435 = arith.addf %429, %434 : vector<1x256xf32>
      %436 = vector.extract_strided_slice %399 {offsets = [0, 6], sizes = [1, 256], strides = [1, 1]} : vector<1x262xf32> to vector<1x256xf32>
      %cst_99 = arith.constant 0.000000e+00 : f32
      %437 = vector.broadcast %cst_99 : f32 to vector<1x256xf32>
      %438 = arith.select %144, %436, %437 : vector<1x256xi1>, vector<1x256xf32>
      %439 = vector.broadcast %41 : f32 to vector<1x256xf32>
      %440 = arith.mulf %439, %438 : vector<1x256xf32>
      %441 = arith.addf %435, %440 : vector<1x256xf32>
      %c0_100 = arith.constant 0 : index
      %c96_101 = arith.constant 96 : index
      %442 = vector.load %arg6[%c0_100, %c96_101] : memref<2x358xf32, #tpu.memory_space<vmem>>, vector<1x262xf32>
      %443 = vector.extract_strided_slice %442 {offsets = [0, 0], sizes = [1, 256], strides = [1, 1]} : vector<1x262xf32> to vector<1x256xf32>
      %cst_102 = arith.constant 0.000000e+00 : f32
      %444 = vector.broadcast %cst_102 : f32 to vector<1x256xf32>
      %445 = arith.select %114, %443, %444 : vector<1x256xi1>, vector<1x256xf32>
      %446 = vector.broadcast %42 : f32 to vector<1x256xf32>
      %447 = arith.mulf %446, %445 : vector<1x256xf32>
      %448 = arith.addf %441, %447 : vector<1x256xf32>
      %449 = vector.extract_strided_slice %442 {offsets = [0, 1], sizes = [1, 256], strides = [1, 1]} : vector<1x262xf32> to vector<1x256xf32>
      %cst_103 = arith.constant 0.000000e+00 : f32
      %450 = vector.broadcast %cst_103 : f32 to vector<1x256xf32>
      %451 = arith.select %119, %449, %450 : vector<1x256xi1>, vector<1x256xf32>
      %452 = vector.broadcast %43 : f32 to vector<1x256xf32>
      %453 = arith.mulf %452, %451 : vector<1x256xf32>
      %454 = arith.addf %448, %453 : vector<1x256xf32>
      %455 = vector.extract_strided_slice %442 {offsets = [0, 2], sizes = [1, 256], strides = [1, 1]} : vector<1x262xf32> to vector<1x256xf32>
      %cst_104 = arith.constant 0.000000e+00 : f32
      %456 = vector.broadcast %cst_104 : f32 to vector<1x256xf32>
      %457 = arith.select %124, %455, %456 : vector<1x256xi1>, vector<1x256xf32>
      %458 = vector.broadcast %44 : f32 to vector<1x256xf32>
      %459 = arith.mulf %458, %457 : vector<1x256xf32>
      %460 = arith.addf %454, %459 : vector<1x256xf32>
      %461 = vector.extract_strided_slice %442 {offsets = [0, 3], sizes = [1, 256], strides = [1, 1]} : vector<1x262xf32> to vector<1x256xf32>
      %cst_105 = arith.constant 0.000000e+00 : f32
      %462 = vector.broadcast %cst_105 : f32 to vector<1x256xf32>
      %463 = arith.select %129, %461, %462 : vector<1x256xi1>, vector<1x256xf32>
      %464 = vector.broadcast %45 : f32 to vector<1x256xf32>
      %465 = arith.mulf %464, %463 : vector<1x256xf32>
      %466 = arith.addf %460, %465 : vector<1x256xf32>
      %467 = vector.extract_strided_slice %442 {offsets = [0, 4], sizes = [1, 256], strides = [1, 1]} : vector<1x262xf32> to vector<1x256xf32>
      %cst_106 = arith.constant 0.000000e+00 : f32
      %468 = vector.broadcast %cst_106 : f32 to vector<1x256xf32>
      %469 = arith.select %134, %467, %468 : vector<1x256xi1>, vector<1x256xf32>
      %470 = vector.broadcast %46 : f32 to vector<1x256xf32>
      %471 = arith.mulf %470, %469 : vector<1x256xf32>
      %472 = arith.addf %466, %471 : vector<1x256xf32>
      %473 = vector.extract_strided_slice %442 {offsets = [0, 5], sizes = [1, 256], strides = [1, 1]} : vector<1x262xf32> to vector<1x256xf32>
      %cst_107 = arith.constant 0.000000e+00 : f32
      %474 = vector.broadcast %cst_107 : f32 to vector<1x256xf32>
      %475 = arith.select %139, %473, %474 : vector<1x256xi1>, vector<1x256xf32>
      %476 = vector.broadcast %47 : f32 to vector<1x256xf32>
      %477 = arith.mulf %476, %475 : vector<1x256xf32>
      %478 = arith.addf %472, %477 : vector<1x256xf32>
      %479 = vector.extract_strided_slice %442 {offsets = [0, 6], sizes = [1, 256], strides = [1, 1]} : vector<1x262xf32> to vector<1x256xf32>
      %cst_108 = arith.constant 0.000000e+00 : f32
      %480 = vector.broadcast %cst_108 : f32 to vector<1x256xf32>
      %481 = arith.select %144, %479, %480 : vector<1x256xi1>, vector<1x256xf32>
      %482 = vector.broadcast %48 : f32 to vector<1x256xf32>
      %483 = arith.mulf %482, %481 : vector<1x256xf32>
      %484 = arith.addf %478, %483 : vector<1x256xf32>
      %c1_109 = arith.constant 1 : index
      %c0_110 = arith.constant 0 : index
      %485 = vector.load %arg6[%c1_109, %c0_110] : memref<2x358xf32, #tpu.memory_space<vmem>>, vector<1x262xf32>
      %486 = vector.extract_strided_slice %485 {offsets = [0, 0], sizes = [1, 256], strides = [1, 1]} : vector<1x262xf32> to vector<1x256xf32>
      %cst_111 = arith.constant 0.000000e+00 : f32
      %487 = vector.broadcast %cst_111 : f32 to vector<1x256xf32>
      %488 = arith.select %114, %486, %487 : vector<1x256xi1>, vector<1x256xf32>
      %489 = vector.broadcast %49 : f32 to vector<1x256xf32>
      %490 = arith.mulf %489, %488 : vector<1x256xf32>
      %491 = arith.addf %484, %490 : vector<1x256xf32>
      %492 = vector.extract_strided_slice %485 {offsets = [0, 1], sizes = [1, 256], strides = [1, 1]} : vector<1x262xf32> to vector<1x256xf32>
      %cst_112 = arith.constant 0.000000e+00 : f32
      %493 = vector.broadcast %cst_112 : f32 to vector<1x256xf32>
      %494 = arith.select %119, %492, %493 : vector<1x256xi1>, vector<1x256xf32>
      %495 = vector.broadcast %50 : f32 to vector<1x256xf32>
      %496 = arith.mulf %495, %494 : vector<1x256xf32>
      %497 = arith.addf %491, %496 : vector<1x256xf32>
      %498 = vector.extract_strided_slice %485 {offsets = [0, 2], sizes = [1, 256], strides = [1, 1]} : vector<1x262xf32> to vector<1x256xf32>
      %cst_113 = arith.constant 0.000000e+00 : f32
      %499 = vector.broadcast %cst_113 : f32 to vector<1x256xf32>
      %500 = arith.select %124, %498, %499 : vector<1x256xi1>, vector<1x256xf32>
      %501 = vector.broadcast %51 : f32 to vector<1x256xf32>
      %502 = arith.mulf %501, %500 : vector<1x256xf32>
      %503 = arith.addf %497, %502 : vector<1x256xf32>
      %504 = vector.extract_strided_slice %485 {offsets = [0, 3], sizes = [1, 256], strides = [1, 1]} : vector<1x262xf32> to vector<1x256xf32>
      %cst_114 = arith.constant 0.000000e+00 : f32
      %505 = vector.broadcast %cst_114 : f32 to vector<1x256xf32>
      %506 = arith.select %129, %504, %505 : vector<1x256xi1>, vector<1x256xf32>
      %507 = vector.broadcast %52 : f32 to vector<1x256xf32>
      %508 = arith.mulf %507, %506 : vector<1x256xf32>
      %509 = arith.addf %503, %508 : vector<1x256xf32>
      %510 = vector.extract_strided_slice %485 {offsets = [0, 4], sizes = [1, 256], strides = [1, 1]} : vector<1x262xf32> to vector<1x256xf32>
      %cst_115 = arith.constant 0.000000e+00 : f32
      %511 = vector.broadcast %cst_115 : f32 to vector<1x256xf32>
      %512 = arith.select %134, %510, %511 : vector<1x256xi1>, vector<1x256xf32>
      %513 = vector.broadcast %53 : f32 to vector<1x256xf32>
      %514 = arith.mulf %513, %512 : vector<1x256xf32>
      %515 = arith.addf %509, %514 : vector<1x256xf32>
      %516 = vector.extract_strided_slice %485 {offsets = [0, 5], sizes = [1, 256], strides = [1, 1]} : vector<1x262xf32> to vector<1x256xf32>
      %cst_116 = arith.constant 0.000000e+00 : f32
      %517 = vector.broadcast %cst_116 : f32 to vector<1x256xf32>
      %518 = arith.select %139, %516, %517 : vector<1x256xi1>, vector<1x256xf32>
      %519 = vector.broadcast %54 : f32 to vector<1x256xf32>
      %520 = arith.mulf %519, %518 : vector<1x256xf32>
      %521 = arith.addf %515, %520 : vector<1x256xf32>
      %522 = vector.extract_strided_slice %485 {offsets = [0, 6], sizes = [1, 256], strides = [1, 1]} : vector<1x262xf32> to vector<1x256xf32>
      %cst_117 = arith.constant 0.000000e+00 : f32
      %523 = vector.broadcast %cst_117 : f32 to vector<1x256xf32>
      %524 = arith.select %144, %522, %523 : vector<1x256xi1>, vector<1x256xf32>
      %525 = vector.broadcast %55 : f32 to vector<1x256xf32>
      %526 = arith.mulf %525, %524 : vector<1x256xf32>
      %527 = arith.addf %521, %526 : vector<1x256xf32>
      %c1_118 = arith.constant 1 : index
      %c16_119 = arith.constant 16 : index
      %528 = vector.load %arg6[%c1_118, %c16_119] : memref<2x358xf32, #tpu.memory_space<vmem>>, vector<1x262xf32>
      %529 = vector.extract_strided_slice %528 {offsets = [0, 0], sizes = [1, 256], strides = [1, 1]} : vector<1x262xf32> to vector<1x256xf32>
      %cst_120 = arith.constant 0.000000e+00 : f32
      %530 = vector.broadcast %cst_120 : f32 to vector<1x256xf32>
      %531 = arith.select %114, %529, %530 : vector<1x256xi1>, vector<1x256xf32>
      %532 = vector.broadcast %56 : f32 to vector<1x256xf32>
      %533 = arith.mulf %532, %531 : vector<1x256xf32>
      %534 = arith.addf %527, %533 : vector<1x256xf32>
      %535 = vector.extract_strided_slice %528 {offsets = [0, 1], sizes = [1, 256], strides = [1, 1]} : vector<1x262xf32> to vector<1x256xf32>
      %cst_121 = arith.constant 0.000000e+00 : f32
      %536 = vector.broadcast %cst_121 : f32 to vector<1x256xf32>
      %537 = arith.select %119, %535, %536 : vector<1x256xi1>, vector<1x256xf32>
      %538 = vector.broadcast %57 : f32 to vector<1x256xf32>
      %539 = arith.mulf %538, %537 : vector<1x256xf32>
      %540 = arith.addf %534, %539 : vector<1x256xf32>
      %541 = vector.extract_strided_slice %528 {offsets = [0, 2], sizes = [1, 256], strides = [1, 1]} : vector<1x262xf32> to vector<1x256xf32>
      %cst_122 = arith.constant 0.000000e+00 : f32
      %542 = vector.broadcast %cst_122 : f32 to vector<1x256xf32>
      %543 = arith.select %124, %541, %542 : vector<1x256xi1>, vector<1x256xf32>
      %544 = vector.broadcast %58 : f32 to vector<1x256xf32>
      %545 = arith.mulf %544, %543 : vector<1x256xf32>
      %546 = arith.addf %540, %545 : vector<1x256xf32>
      %547 = vector.extract_strided_slice %528 {offsets = [0, 3], sizes = [1, 256], strides = [1, 1]} : vector<1x262xf32> to vector<1x256xf32>
      %cst_123 = arith.constant 0.000000e+00 : f32
      %548 = vector.broadcast %cst_123 : f32 to vector<1x256xf32>
      %549 = arith.select %129, %547, %548 : vector<1x256xi1>, vector<1x256xf32>
      %550 = vector.broadcast %59 : f32 to vector<1x256xf32>
      %551 = arith.mulf %550, %549 : vector<1x256xf32>
      %552 = arith.addf %546, %551 : vector<1x256xf32>
      %553 = vector.extract_strided_slice %528 {offsets = [0, 4], sizes = [1, 256], strides = [1, 1]} : vector<1x262xf32> to vector<1x256xf32>
      %cst_124 = arith.constant 0.000000e+00 : f32
      %554 = vector.broadcast %cst_124 : f32 to vector<1x256xf32>
      %555 = arith.select %134, %553, %554 : vector<1x256xi1>, vector<1x256xf32>
      %556 = vector.broadcast %60 : f32 to vector<1x256xf32>
      %557 = arith.mulf %556, %555 : vector<1x256xf32>
      %558 = arith.addf %552, %557 : vector<1x256xf32>
      %559 = vector.extract_strided_slice %528 {offsets = [0, 5], sizes = [1, 256], strides = [1, 1]} : vector<1x262xf32> to vector<1x256xf32>
      %cst_125 = arith.constant 0.000000e+00 : f32
      %560 = vector.broadcast %cst_125 : f32 to vector<1x256xf32>
      %561 = arith.select %139, %559, %560 : vector<1x256xi1>, vector<1x256xf32>
      %562 = vector.broadcast %61 : f32 to vector<1x256xf32>
      %563 = arith.mulf %562, %561 : vector<1x256xf32>
      %564 = arith.addf %558, %563 : vector<1x256xf32>
      %565 = vector.extract_strided_slice %528 {offsets = [0, 6], sizes = [1, 256], strides = [1, 1]} : vector<1x262xf32> to vector<1x256xf32>
      %cst_126 = arith.constant 0.000000e+00 : f32
      %566 = vector.broadcast %cst_126 : f32 to vector<1x256xf32>
      %567 = arith.select %144, %565, %566 : vector<1x256xi1>, vector<1x256xf32>
      %568 = vector.broadcast %62 : f32 to vector<1x256xf32>
      %569 = arith.mulf %568, %567 : vector<1x256xf32>
      %570 = arith.addf %564, %569 : vector<1x256xf32>
      %c1_127 = arith.constant 1 : index
      %c32_128 = arith.constant 32 : index
      %571 = vector.load %arg6[%c1_127, %c32_128] : memref<2x358xf32, #tpu.memory_space<vmem>>, vector<1x262xf32>
      %572 = vector.extract_strided_slice %571 {offsets = [0, 0], sizes = [1, 256], strides = [1, 1]} : vector<1x262xf32> to vector<1x256xf32>
      %cst_129 = arith.constant 0.000000e+00 : f32
      %573 = vector.broadcast %cst_129 : f32 to vector<1x256xf32>
      %574 = arith.select %114, %572, %573 : vector<1x256xi1>, vector<1x256xf32>
      %575 = vector.broadcast %63 : f32 to vector<1x256xf32>
      %576 = arith.mulf %575, %574 : vector<1x256xf32>
      %577 = arith.addf %570, %576 : vector<1x256xf32>
      %578 = vector.extract_strided_slice %571 {offsets = [0, 1], sizes = [1, 256], strides = [1, 1]} : vector<1x262xf32> to vector<1x256xf32>
      %cst_130 = arith.constant 0.000000e+00 : f32
      %579 = vector.broadcast %cst_130 : f32 to vector<1x256xf32>
      %580 = arith.select %119, %578, %579 : vector<1x256xi1>, vector<1x256xf32>
      %581 = vector.broadcast %64 : f32 to vector<1x256xf32>
      %582 = arith.mulf %581, %580 : vector<1x256xf32>
      %583 = arith.addf %577, %582 : vector<1x256xf32>
      %584 = vector.extract_strided_slice %571 {offsets = [0, 2], sizes = [1, 256], strides = [1, 1]} : vector<1x262xf32> to vector<1x256xf32>
      %cst_131 = arith.constant 0.000000e+00 : f32
      %585 = vector.broadcast %cst_131 : f32 to vector<1x256xf32>
      %586 = arith.select %124, %584, %585 : vector<1x256xi1>, vector<1x256xf32>
      %587 = vector.broadcast %65 : f32 to vector<1x256xf32>
      %588 = arith.mulf %587, %586 : vector<1x256xf32>
      %589 = arith.addf %583, %588 : vector<1x256xf32>
      %590 = vector.extract_strided_slice %571 {offsets = [0, 3], sizes = [1, 256], strides = [1, 1]} : vector<1x262xf32> to vector<1x256xf32>
      %cst_132 = arith.constant 0.000000e+00 : f32
      %591 = vector.broadcast %cst_132 : f32 to vector<1x256xf32>
      %592 = arith.select %129, %590, %591 : vector<1x256xi1>, vector<1x256xf32>
      %593 = vector.broadcast %66 : f32 to vector<1x256xf32>
      %594 = arith.mulf %593, %592 : vector<1x256xf32>
      %595 = arith.addf %589, %594 : vector<1x256xf32>
      %596 = vector.extract_strided_slice %571 {offsets = [0, 4], sizes = [1, 256], strides = [1, 1]} : vector<1x262xf32> to vector<1x256xf32>
      %cst_133 = arith.constant 0.000000e+00 : f32
      %597 = vector.broadcast %cst_133 : f32 to vector<1x256xf32>
      %598 = arith.select %134, %596, %597 : vector<1x256xi1>, vector<1x256xf32>
      %599 = vector.broadcast %67 : f32 to vector<1x256xf32>
      %600 = arith.mulf %599, %598 : vector<1x256xf32>
      %601 = arith.addf %595, %600 : vector<1x256xf32>
      %602 = vector.extract_strided_slice %571 {offsets = [0, 5], sizes = [1, 256], strides = [1, 1]} : vector<1x262xf32> to vector<1x256xf32>
      %cst_134 = arith.constant 0.000000e+00 : f32
      %603 = vector.broadcast %cst_134 : f32 to vector<1x256xf32>
      %604 = arith.select %139, %602, %603 : vector<1x256xi1>, vector<1x256xf32>
      %605 = vector.broadcast %68 : f32 to vector<1x256xf32>
      %606 = arith.mulf %605, %604 : vector<1x256xf32>
      %607 = arith.addf %601, %606 : vector<1x256xf32>
      %608 = vector.extract_strided_slice %571 {offsets = [0, 6], sizes = [1, 256], strides = [1, 1]} : vector<1x262xf32> to vector<1x256xf32>
      %cst_135 = arith.constant 0.000000e+00 : f32
      %609 = vector.broadcast %cst_135 : f32 to vector<1x256xf32>
      %610 = arith.select %144, %608, %609 : vector<1x256xi1>, vector<1x256xf32>
      %611 = vector.broadcast %69 : f32 to vector<1x256xf32>
      %612 = arith.mulf %611, %610 : vector<1x256xf32>
      %613 = arith.addf %607, %612 : vector<1x256xf32>
      %c1_136 = arith.constant 1 : index
      %c48_137 = arith.constant 48 : index
      %614 = vector.load %arg6[%c1_136, %c48_137] : memref<2x358xf32, #tpu.memory_space<vmem>>, vector<1x262xf32>
      %615 = vector.extract_strided_slice %614 {offsets = [0, 0], sizes = [1, 256], strides = [1, 1]} : vector<1x262xf32> to vector<1x256xf32>
      %cst_138 = arith.constant 0.000000e+00 : f32
      %616 = vector.broadcast %cst_138 : f32 to vector<1x256xf32>
      %617 = arith.select %114, %615, %616 : vector<1x256xi1>, vector<1x256xf32>
      %618 = vector.broadcast %70 : f32 to vector<1x256xf32>
      %619 = arith.mulf %618, %617 : vector<1x256xf32>
      %620 = arith.addf %613, %619 : vector<1x256xf32>
      %621 = vector.extract_strided_slice %614 {offsets = [0, 1], sizes = [1, 256], strides = [1, 1]} : vector<1x262xf32> to vector<1x256xf32>
      %cst_139 = arith.constant 0.000000e+00 : f32
      %622 = vector.broadcast %cst_139 : f32 to vector<1x256xf32>
      %623 = arith.select %119, %621, %622 : vector<1x256xi1>, vector<1x256xf32>
      %624 = vector.broadcast %71 : f32 to vector<1x256xf32>
      %625 = arith.mulf %624, %623 : vector<1x256xf32>
      %626 = arith.addf %620, %625 : vector<1x256xf32>
      %627 = vector.extract_strided_slice %614 {offsets = [0, 2], sizes = [1, 256], strides = [1, 1]} : vector<1x262xf32> to vector<1x256xf32>
      %cst_140 = arith.constant 0.000000e+00 : f32
      %628 = vector.broadcast %cst_140 : f32 to vector<1x256xf32>
      %629 = arith.select %124, %627, %628 : vector<1x256xi1>, vector<1x256xf32>
      %630 = vector.broadcast %72 : f32 to vector<1x256xf32>
      %631 = arith.mulf %630, %629 : vector<1x256xf32>
      %632 = arith.addf %626, %631 : vector<1x256xf32>
      %633 = vector.extract_strided_slice %614 {offsets = [0, 3], sizes = [1, 256], strides = [1, 1]} : vector<1x262xf32> to vector<1x256xf32>
      %cst_141 = arith.constant 0.000000e+00 : f32
      %634 = vector.broadcast %cst_141 : f32 to vector<1x256xf32>
      %635 = arith.select %129, %633, %634 : vector<1x256xi1>, vector<1x256xf32>
      %636 = vector.broadcast %73 : f32 to vector<1x256xf32>
      %637 = arith.mulf %636, %635 : vector<1x256xf32>
      %638 = arith.addf %632, %637 : vector<1x256xf32>
      %639 = vector.extract_strided_slice %614 {offsets = [0, 4], sizes = [1, 256], strides = [1, 1]} : vector<1x262xf32> to vector<1x256xf32>
      %cst_142 = arith.constant 0.000000e+00 : f32
      %640 = vector.broadcast %cst_142 : f32 to vector<1x256xf32>
      %641 = arith.select %134, %639, %640 : vector<1x256xi1>, vector<1x256xf32>
      %642 = vector.broadcast %74 : f32 to vector<1x256xf32>
      %643 = arith.mulf %642, %641 : vector<1x256xf32>
      %644 = arith.addf %638, %643 : vector<1x256xf32>
      %645 = vector.extract_strided_slice %614 {offsets = [0, 5], sizes = [1, 256], strides = [1, 1]} : vector<1x262xf32> to vector<1x256xf32>
      %cst_143 = arith.constant 0.000000e+00 : f32
      %646 = vector.broadcast %cst_143 : f32 to vector<1x256xf32>
      %647 = arith.select %139, %645, %646 : vector<1x256xi1>, vector<1x256xf32>
      %648 = vector.broadcast %75 : f32 to vector<1x256xf32>
      %649 = arith.mulf %648, %647 : vector<1x256xf32>
      %650 = arith.addf %644, %649 : vector<1x256xf32>
      %651 = vector.extract_strided_slice %614 {offsets = [0, 6], sizes = [1, 256], strides = [1, 1]} : vector<1x262xf32> to vector<1x256xf32>
      %cst_144 = arith.constant 0.000000e+00 : f32
      %652 = vector.broadcast %cst_144 : f32 to vector<1x256xf32>
      %653 = arith.select %144, %651, %652 : vector<1x256xi1>, vector<1x256xf32>
      %654 = vector.broadcast %76 : f32 to vector<1x256xf32>
      %655 = arith.mulf %654, %653 : vector<1x256xf32>
      %656 = arith.addf %650, %655 : vector<1x256xf32>
      %c1_145 = arith.constant 1 : index
      %c64_146 = arith.constant 64 : index
      %657 = vector.load %arg6[%c1_145, %c64_146] : memref<2x358xf32, #tpu.memory_space<vmem>>, vector<1x262xf32>
      %658 = vector.extract_strided_slice %657 {offsets = [0, 0], sizes = [1, 256], strides = [1, 1]} : vector<1x262xf32> to vector<1x256xf32>
      %cst_147 = arith.constant 0.000000e+00 : f32
      %659 = vector.broadcast %cst_147 : f32 to vector<1x256xf32>
      %660 = arith.select %114, %658, %659 : vector<1x256xi1>, vector<1x256xf32>
      %661 = vector.broadcast %77 : f32 to vector<1x256xf32>
      %662 = arith.mulf %661, %660 : vector<1x256xf32>
      %663 = arith.addf %656, %662 : vector<1x256xf32>
      %664 = vector.extract_strided_slice %657 {offsets = [0, 1], sizes = [1, 256], strides = [1, 1]} : vector<1x262xf32> to vector<1x256xf32>
      %cst_148 = arith.constant 0.000000e+00 : f32
      %665 = vector.broadcast %cst_148 : f32 to vector<1x256xf32>
      %666 = arith.select %119, %664, %665 : vector<1x256xi1>, vector<1x256xf32>
      %667 = vector.broadcast %78 : f32 to vector<1x256xf32>
      %668 = arith.mulf %667, %666 : vector<1x256xf32>
      %669 = arith.addf %663, %668 : vector<1x256xf32>
      %670 = vector.extract_strided_slice %657 {offsets = [0, 2], sizes = [1, 256], strides = [1, 1]} : vector<1x262xf32> to vector<1x256xf32>
      %cst_149 = arith.constant 0.000000e+00 : f32
      %671 = vector.broadcast %cst_149 : f32 to vector<1x256xf32>
      %672 = arith.select %124, %670, %671 : vector<1x256xi1>, vector<1x256xf32>
      %673 = vector.broadcast %79 : f32 to vector<1x256xf32>
      %674 = arith.mulf %673, %672 : vector<1x256xf32>
      %675 = arith.addf %669, %674 : vector<1x256xf32>
      %676 = vector.extract_strided_slice %657 {offsets = [0, 3], sizes = [1, 256], strides = [1, 1]} : vector<1x262xf32> to vector<1x256xf32>
      %cst_150 = arith.constant 0.000000e+00 : f32
      %677 = vector.broadcast %cst_150 : f32 to vector<1x256xf32>
      %678 = arith.select %129, %676, %677 : vector<1x256xi1>, vector<1x256xf32>
      %679 = vector.broadcast %80 : f32 to vector<1x256xf32>
      %680 = arith.mulf %679, %678 : vector<1x256xf32>
      %681 = arith.addf %675, %680 : vector<1x256xf32>
      %682 = vector.extract_strided_slice %657 {offsets = [0, 4], sizes = [1, 256], strides = [1, 1]} : vector<1x262xf32> to vector<1x256xf32>
      %cst_151 = arith.constant 0.000000e+00 : f32
      %683 = vector.broadcast %cst_151 : f32 to vector<1x256xf32>
      %684 = arith.select %134, %682, %683 : vector<1x256xi1>, vector<1x256xf32>
      %685 = vector.broadcast %81 : f32 to vector<1x256xf32>
      %686 = arith.mulf %685, %684 : vector<1x256xf32>
      %687 = arith.addf %681, %686 : vector<1x256xf32>
      %688 = vector.extract_strided_slice %657 {offsets = [0, 5], sizes = [1, 256], strides = [1, 1]} : vector<1x262xf32> to vector<1x256xf32>
      %cst_152 = arith.constant 0.000000e+00 : f32
      %689 = vector.broadcast %cst_152 : f32 to vector<1x256xf32>
      %690 = arith.select %139, %688, %689 : vector<1x256xi1>, vector<1x256xf32>
      %691 = vector.broadcast %82 : f32 to vector<1x256xf32>
      %692 = arith.mulf %691, %690 : vector<1x256xf32>
      %693 = arith.addf %687, %692 : vector<1x256xf32>
      %694 = vector.extract_strided_slice %657 {offsets = [0, 6], sizes = [1, 256], strides = [1, 1]} : vector<1x262xf32> to vector<1x256xf32>
      %cst_153 = arith.constant 0.000000e+00 : f32
      %695 = vector.broadcast %cst_153 : f32 to vector<1x256xf32>
      %696 = arith.select %144, %694, %695 : vector<1x256xi1>, vector<1x256xf32>
      %697 = vector.broadcast %83 : f32 to vector<1x256xf32>
      %698 = arith.mulf %697, %696 : vector<1x256xf32>
      %699 = arith.addf %693, %698 : vector<1x256xf32>
      %c1_154 = arith.constant 1 : index
      %c80_155 = arith.constant 80 : index
      %700 = vector.load %arg6[%c1_154, %c80_155] : memref<2x358xf32, #tpu.memory_space<vmem>>, vector<1x262xf32>
      %701 = vector.extract_strided_slice %700 {offsets = [0, 0], sizes = [1, 256], strides = [1, 1]} : vector<1x262xf32> to vector<1x256xf32>
      %cst_156 = arith.constant 0.000000e+00 : f32
      %702 = vector.broadcast %cst_156 : f32 to vector<1x256xf32>
      %703 = arith.select %114, %701, %702 : vector<1x256xi1>, vector<1x256xf32>
      %704 = vector.broadcast %84 : f32 to vector<1x256xf32>
      %705 = arith.mulf %704, %703 : vector<1x256xf32>
      %706 = arith.addf %699, %705 : vector<1x256xf32>
      %707 = vector.extract_strided_slice %700 {offsets = [0, 1], sizes = [1, 256], strides = [1, 1]} : vector<1x262xf32> to vector<1x256xf32>
      %cst_157 = arith.constant 0.000000e+00 : f32
      %708 = vector.broadcast %cst_157 : f32 to vector<1x256xf32>
      %709 = arith.select %119, %707, %708 : vector<1x256xi1>, vector<1x256xf32>
      %710 = vector.broadcast %85 : f32 to vector<1x256xf32>
      %711 = arith.mulf %710, %709 : vector<1x256xf32>
      %712 = arith.addf %706, %711 : vector<1x256xf32>
      %713 = vector.extract_strided_slice %700 {offsets = [0, 2], sizes = [1, 256], strides = [1, 1]} : vector<1x262xf32> to vector<1x256xf32>
      %cst_158 = arith.constant 0.000000e+00 : f32
      %714 = vector.broadcast %cst_158 : f32 to vector<1x256xf32>
      %715 = arith.select %124, %713, %714 : vector<1x256xi1>, vector<1x256xf32>
      %716 = vector.broadcast %86 : f32 to vector<1x256xf32>
      %717 = arith.mulf %716, %715 : vector<1x256xf32>
      %718 = arith.addf %712, %717 : vector<1x256xf32>
      %719 = vector.extract_strided_slice %700 {offsets = [0, 3], sizes = [1, 256], strides = [1, 1]} : vector<1x262xf32> to vector<1x256xf32>
      %cst_159 = arith.constant 0.000000e+00 : f32
      %720 = vector.broadcast %cst_159 : f32 to vector<1x256xf32>
      %721 = arith.select %129, %719, %720 : vector<1x256xi1>, vector<1x256xf32>
      %722 = vector.broadcast %87 : f32 to vector<1x256xf32>
      %723 = arith.mulf %722, %721 : vector<1x256xf32>
      %724 = arith.addf %718, %723 : vector<1x256xf32>
      %725 = vector.extract_strided_slice %700 {offsets = [0, 4], sizes = [1, 256], strides = [1, 1]} : vector<1x262xf32> to vector<1x256xf32>
      %cst_160 = arith.constant 0.000000e+00 : f32
      %726 = vector.broadcast %cst_160 : f32 to vector<1x256xf32>
      %727 = arith.select %134, %725, %726 : vector<1x256xi1>, vector<1x256xf32>
      %728 = vector.broadcast %88 : f32 to vector<1x256xf32>
      %729 = arith.mulf %728, %727 : vector<1x256xf32>
      %730 = arith.addf %724, %729 : vector<1x256xf32>
      %731 = vector.extract_strided_slice %700 {offsets = [0, 5], sizes = [1, 256], strides = [1, 1]} : vector<1x262xf32> to vector<1x256xf32>
      %cst_161 = arith.constant 0.000000e+00 : f32
      %732 = vector.broadcast %cst_161 : f32 to vector<1x256xf32>
      %733 = arith.select %139, %731, %732 : vector<1x256xi1>, vector<1x256xf32>
      %734 = vector.broadcast %89 : f32 to vector<1x256xf32>
      %735 = arith.mulf %734, %733 : vector<1x256xf32>
      %736 = arith.addf %730, %735 : vector<1x256xf32>
      %737 = vector.extract_strided_slice %700 {offsets = [0, 6], sizes = [1, 256], strides = [1, 1]} : vector<1x262xf32> to vector<1x256xf32>
      %cst_162 = arith.constant 0.000000e+00 : f32
      %738 = vector.broadcast %cst_162 : f32 to vector<1x256xf32>
      %739 = arith.select %144, %737, %738 : vector<1x256xi1>, vector<1x256xf32>
      %740 = vector.broadcast %90 : f32 to vector<1x256xf32>
      %741 = arith.mulf %740, %739 : vector<1x256xf32>
      %742 = arith.addf %736, %741 : vector<1x256xf32>
      %c1_163 = arith.constant 1 : index
      %c96_164 = arith.constant 96 : index
      %743 = vector.load %arg6[%c1_163, %c96_164] : memref<2x358xf32, #tpu.memory_space<vmem>>, vector<1x262xf32>
      %744 = vector.extract_strided_slice %743 {offsets = [0, 0], sizes = [1, 256], strides = [1, 1]} : vector<1x262xf32> to vector<1x256xf32>
      %cst_165 = arith.constant 0.000000e+00 : f32
      %745 = vector.broadcast %cst_165 : f32 to vector<1x256xf32>
      %746 = arith.select %114, %744, %745 : vector<1x256xi1>, vector<1x256xf32>
      %747 = vector.broadcast %91 : f32 to vector<1x256xf32>
      %748 = arith.mulf %747, %746 : vector<1x256xf32>
      %749 = arith.addf %742, %748 : vector<1x256xf32>
      %750 = vector.extract_strided_slice %743 {offsets = [0, 1], sizes = [1, 256], strides = [1, 1]} : vector<1x262xf32> to vector<1x256xf32>
      %cst_166 = arith.constant 0.000000e+00 : f32
      %751 = vector.broadcast %cst_166 : f32 to vector<1x256xf32>
      %752 = arith.select %119, %750, %751 : vector<1x256xi1>, vector<1x256xf32>
      %753 = vector.broadcast %92 : f32 to vector<1x256xf32>
      %754 = arith.mulf %753, %752 : vector<1x256xf32>
      %755 = arith.addf %749, %754 : vector<1x256xf32>
      %756 = vector.extract_strided_slice %743 {offsets = [0, 2], sizes = [1, 256], strides = [1, 1]} : vector<1x262xf32> to vector<1x256xf32>
      %cst_167 = arith.constant 0.000000e+00 : f32
      %757 = vector.broadcast %cst_167 : f32 to vector<1x256xf32>
      %758 = arith.select %124, %756, %757 : vector<1x256xi1>, vector<1x256xf32>
      %759 = vector.broadcast %93 : f32 to vector<1x256xf32>
      %760 = arith.mulf %759, %758 : vector<1x256xf32>
      %761 = arith.addf %755, %760 : vector<1x256xf32>
      %762 = vector.extract_strided_slice %743 {offsets = [0, 3], sizes = [1, 256], strides = [1, 1]} : vector<1x262xf32> to vector<1x256xf32>
      %cst_168 = arith.constant 0.000000e+00 : f32
      %763 = vector.broadcast %cst_168 : f32 to vector<1x256xf32>
      %764 = arith.select %129, %762, %763 : vector<1x256xi1>, vector<1x256xf32>
      %765 = vector.broadcast %94 : f32 to vector<1x256xf32>
      %766 = arith.mulf %765, %764 : vector<1x256xf32>
      %767 = arith.addf %761, %766 : vector<1x256xf32>
      %768 = vector.extract_strided_slice %743 {offsets = [0, 4], sizes = [1, 256], strides = [1, 1]} : vector<1x262xf32> to vector<1x256xf32>
      %cst_169 = arith.constant 0.000000e+00 : f32
      %769 = vector.broadcast %cst_169 : f32 to vector<1x256xf32>
      %770 = arith.select %134, %768, %769 : vector<1x256xi1>, vector<1x256xf32>
      %771 = vector.broadcast %95 : f32 to vector<1x256xf32>
      %772 = arith.mulf %771, %770 : vector<1x256xf32>
      %773 = arith.addf %767, %772 : vector<1x256xf32>
      %774 = vector.extract_strided_slice %743 {offsets = [0, 5], sizes = [1, 256], strides = [1, 1]} : vector<1x262xf32> to vector<1x256xf32>
      %cst_170 = arith.constant 0.000000e+00 : f32
      %775 = vector.broadcast %cst_170 : f32 to vector<1x256xf32>
      %776 = arith.select %139, %774, %775 : vector<1x256xi1>, vector<1x256xf32>
      %777 = vector.broadcast %96 : f32 to vector<1x256xf32>
      %778 = arith.mulf %777, %776 : vector<1x256xf32>
      %779 = arith.addf %773, %778 : vector<1x256xf32>
      %780 = vector.extract_strided_slice %743 {offsets = [0, 6], sizes = [1, 256], strides = [1, 1]} : vector<1x262xf32> to vector<1x256xf32>
      %cst_171 = arith.constant 0.000000e+00 : f32
      %781 = vector.broadcast %cst_171 : f32 to vector<1x256xf32>
      %782 = arith.select %144, %780, %781 : vector<1x256xi1>, vector<1x256xf32>
      %783 = vector.broadcast %97 : f32 to vector<1x256xf32>
      %784 = arith.mulf %783, %782 : vector<1x256xf32>
      %785 = arith.addf %779, %784 : vector<1x256xf32>
      %786 = arith.negf %785 : vector<1x256xf32>
      %787 = math.exp %786 : vector<1x256xf32>
      %cst_172 = arith.constant 1.000000e+00 : f32
      %788 = vector.broadcast %cst_172 : f32 to vector<1x256xf32>
      %789 = arith.addf %788, %787 : vector<1x256xf32>
      %790 = arith.divf %788, %789 : vector<1x256xf32>
      %791 = vector.broadcast %790 : vector<1x256xf32> to vector<16x256xf32>
      %792 = arith.mulf %172, %791 : vector<16x256xf32>
      %793 = arith.index_cast %149 : i32 to index
      %c0_173 = arith.constant 0 : index
      %c0_174 = arith.constant 0 : index
      %794 = vector.load %arg5[%793, %c0_173, %c0_174] : memref<2x16x256xf32, #tpu.memory_space<vmem>>, vector<1x16x256xf32>
      %795 = vector.shape_cast %794 : vector<1x16x256xf32> to vector<16x256xf32>
      %796 = vector.shape_cast %792 : vector<16x256xf32> to vector<1x16x256xf32>
      tpu.vector_store %arg5[%793, %c0_173, %c0_174], %796 {strides = array<i32>} : memref<2x16x256xf32, #tpu.memory_space<vmem>>, vector<1x16x256xf32>,
    }
    %c2_i32_22 = arith.constant 2 : i32
    return
  }
  func.func @transform_0(%arg0: i32) -> (i32, i32, i32) {
    %c0_i32 = arith.constant 0 : i32
    %c0_i32_0 = arith.constant 0 : i32
    %c0_i32_1 = arith.constant 0 : i32
    return %arg0, %c0_i32, %c0_i32_0 : i32, i32, i32
  }
  func.func @transform_1(%arg0: i32) -> (i32, i32) {
    %c0_i32 = arith.constant 0 : i32
    %c0_i32_0 = arith.constant 0 : i32
    %c0_i32_1 = arith.constant 0 : i32
    return %c0_i32, %c0_i32_0 : i32, i32
  }
  func.func @transform_2(%arg0: i32) -> (i32, i32) {
    %c0_i32 = arith.constant 0 : i32
    %c0_i32_0 = arith.constant 0 : i32
    %c0_i32_1 = arith.constant 0 : i32
    return %c0_i32, %c0_i32_0 : i32, i32
  }
  func.func @transform_3(%arg0: i32) -> i32 {
    %c0_i32 = arith.constant 0 : i32
    %c0_i32_0 = arith.constant 0 : i32
    return %c0_i32 : i32
  }
  func.func @transform_4(%arg0: i32) -> (i32, i32, i32) {
    %c0_i32 = arith.constant 0 : i32
    %c0_i32_0 = arith.constant 0 : i32
    %c0_i32_1 = arith.constant 0 : i32
    return %arg0, %c0_i32, %c0_i32_0 : i32, i32, i32
  }
}

</mosaic_0001>

<bundles_post_ra>
// kernel: tpu_custom_call.1
= control target key start
LH: loop header
LB: loop body
LE: loop exit
PB: predicated region body
PF: predicated region fallthrough
CT: control target
= control target key end

     0   :  { %s5253_s0 = inlined_call_operand.hbm [shape: f32[2,16,256], index: 0, kind: input, shape index: {}]   ;;  %s5254_s1 = inlined_call_operand.vmem [shape: f32[4,16], index: 1, kind: input, shape index: {}]   ;;  %s5255_s2 = inlined_call_operand.vmem [shape: f32[16,4], index: 2, kind: input, shape index: {}]   ;;  %s5256_s3 = inlined_call_operand.vmem [shape: f32[98], index: 3, kind: input, shape index: {}]   ;;  %s5257_s4 = inlined_call_operand.hbm [shape: f32[2,16,256], index: 4, kind: output, shape index: {}]  }
   0x1   :  { %5467 = sst [smem:[#allocation202_spill]] %s5257_s4 }
   0x2   :  { %9 = vsyncpa [#allocation4], 0 }
   0x3   :  { %10 = vsyncpa [#allocation6], 0 }
   0x4   :  { %11 = vsyncpa [#allocation5], 0  ;;  %s2775_s15 = smov [#allocation3]   ;;  %s34_s19 = sshll.u32 %s5256_s3, 4  ;;  %s35_s19 = int_to_ptr.vmem [resolvable:$true] %s34_s19 }
   0x5   :  { %s17_s16 = sshll.u32 %s2775_s15, 4  ;;  %s2705_s22 = scalar_lea.hbm %s5253_s0, 1024  ;;  %s18_s16 = int_to_ptr.vmem [resolvable:$true] %s17_s16 }
   0x6   :  { %p2706_p0 = scmp.ne.s32.totalorder %s5253_s0, %s2705_s22  ;;  %p2709_p1 = scmp.lt.u32.totalorder %s2705_s22, %s5253_s0 }
   0x8   :  { %p2711_p2 = pnand %p2709_p1, %p2706_p0 }
   0xa   :  { %2714 = shalt.err (!%p2711_p2)
}
   0xb   :  { %s2715_s27 = scalar_lea.vmem %s18_s16, 1024  ;;  %p2720_p4 = scmp.lt.s32.totalorder %s18_s16, %s18_s16 }
   0xc   :  { %p2716_p3 = scmp.ne.s32.totalorder %s18_s16, %s2715_s27  ;;  %p2721_p5 = scmp.lt.s32.totalorder %s2715_s27, %s2715_s27 }
   0xe   :  { %p2722_p6 = por %p2721_p5, %p2720_p4 }
  0x10   :  { %p2723_p7 = pnand %p2722_p6, %p2716_p3 }
  0x12   :  { %2726 = shalt.err (!%p2723_p7)
}
  0x13   :  { %s5258_s3 = smov 256   ;;  %s5259_s28 = smov 16  }
  0x14   :  { %23 = dma.hbm_to_vmem [thread:$0]  %s5253_s0, 1024, %s18_s16, [#allocation4], %s5258_s3, %s5258_s3, %s5259_s28  }
  0x15   :  { %s2727_s5 = scalar_lea.vmem %s35_s19, 16  ;;  %p2732_p9 = scmp.lt.s32.totalorder %s35_s19, %s35_s19 }
  0x16   :  { %p2728_p8 = scmp.ne.s32.totalorder %s35_s19, %s2727_s5  ;;  %p2733_p10 = scmp.lt.s32.totalorder %s2727_s5, %s2727_s5 }
  0x18   :  { %p2734_p11 = por %p2733_p10, %p2732_p9 }
  0x1a   :  { %p2735_p12 = pnand %p2734_p11, %p2728_p8 }
  0x1c   :  { %2738 = shalt.err (!%p2735_p12)
}
  0x1d   :  { %s2778_s6 = smov [#allocation7]  }
  0x1e   :  { %37 = dma.vmem_to_smem %s35_s19, 16, %s2778_s6, [#allocation6]  }
  0x1f   :  { %2765 = dma.done.wait [#allocation4], 1024  }
  0x20   :  { %2766 = vsyncadd [#allocation4], 4294966272 }
  0x21   :  { %2767 = dma.done.wait [#allocation6], 16  }
  0x22   :  { %2768 = vsyncadd [#allocation6], 4294967280 }
  0x23   :  { %44 = sfence }
  0x24   :  { %s2879_s7 = sld [smem:[#allocation7]]  ;;  %s2881_s8 = sld [smem:[#allocation7 + $0x1]]  ;;  %v2886_v0 = vld [vmem:[%s5254_s1] sm:$0xf]  ;;  %v5345_v1 = vlaneseq  ;;  %v2900_v3 = vld [vmem:[%s5255_s2 + $0x8] sm:$0xff]  ;;  %v5493_v18 = vmov 0 }
  0x25   :  { %5468 = vst [vmem:[#allocation12_spill] sm:$0xff] %v2886_v0  ;;  %s2888_s10 = sld [smem:[#allocation7 + $0x2]]  ;;  %s2890_s11 = sld [smem:[#allocation7 + $0x3]]  ;;  %v2895_v2 = vld [vmem:[%s5255_s2] sm:$0xff]  ;;  %5470 = vst [vmem:[#allocation14_spill] sm:$0xff] %v2900_v3  ;;  %v5497_v19 = vmov 0 }
  0x26   :  { %5469 = vst [vmem:[#allocation13_spill] sm:$0xff] %v2895_v2  ;;  %s2902_s16 = sld [smem:[#allocation7 + $0x4]]  ;;  %s2904_s17 = sld [smem:[#allocation7 + $0x5]]  ;;  %v147_v4 = vand.u32 127, %v5345_v1  ;;  %v5501_v20 = vmov 0  ;;  %v5511_v22 = vmov 0 }
  0x27   :  { %s2907_s1 = sld [smem:[#allocation7 + $0x6]]  ;;  %s2909_s18 = sld [smem:[#allocation7 + $0x7]]  ;;  %v5519_v24 = vmov 0  ;;  %v5523_v25 = vmov 0  ;;  %v5527_v26 = vmov 0  ;;  %v5531_v27 = vmov 0 }
  0x28   :  { %s2911_s19 = sld [smem:[#allocation7 + $0x8]]  ;;  %s2913_s20 = sld [smem:[#allocation7 + $0x9]]  ;;  %v148_v5 = vadd.s32 128, %v147_v4  ;;  %v149_v6 = vcvt.s32.f32 %v147_v4  ;;  %v5543_v30 = vmov 0 }
  0x29   :  { %s2915_s21 = sld [smem:[#allocation7 + $0xa]]  ;;  %s2917_s2 = sld [smem:[#allocation7 + $0xb]] }
  0x2a   :  { %s2919_s22 = sld [smem:[#allocation7 + $0xc]]  ;;  %s2921_s23 = sld [smem:[#allocation7 + $0xd]]  ;;  %v150_v7 = vcvt.s32.f32 %v148_v5  ;;  %v151_v8 = vadd.f32 0.5, %v149_v6 }
  0x2b   :  { %s2923_s24 = sld [smem:[#allocation7 + $0xe]]  ;;  %s2925_s25 = sld [smem:[#allocation7 + $0xf]] }
  0x2c   :  { %s2927_s26 = sld [smem:[#allocation7 + $0x10]]  ;;  %s2929_s27 = sld [smem:[#allocation7 + $0x11]]  ;;  %v152_v9 = vadd.f32 0.5, %v150_v7  ;;  %v153_v10 = vmul.f32 0.0625, %v151_v8 }
  0x2d   :  { %s2931_s29 = sld [smem:[#allocation7 + $0x12]]  ;;  %s2933_s30 = sld [smem:[#allocation7 + $0x13]] }
  0x2e   :  { %s2935_s5 = sld [smem:[#allocation7 + $0x14]]  ;;  %s2937_s6 = sld [smem:[#allocation7 + $0x15]]  ;;  %v154_v11 = vmul.f32 0.0625, %v152_v9  ;;  %v155_v12 = vfloor.f32 %v153_v10 }
  0x2f   :  { %s2939_s0 = sld [smem:[#allocation7 + $0x16]]  ;;  %s2941_s9 = sld [smem:[#allocation7 + $0x17]] }
  0x30   :  { %s2943_s12 = sld [smem:[#allocation7 + $0x18]]  ;;  %s2945_s13 = sld [smem:[#allocation7 + $0x19]]  ;;  %v156_v13 = vfloor.f32 %v154_v11  ;;  %v157_v14 = vmul.f32 16.0, %v155_v12 }
  0x31   :  { %5471 = sst [smem:[#allocation15_spill]] %s2923_s24  ;;  %s2947_s14 = sld [smem:[#allocation7 + $0x1a]] }
  0x32   :  { %5472 = sst [smem:[#allocation16_spill]] %s2925_s25  ;;  %s2949_s15 = sld [smem:[#allocation7 + $0x1b]]  ;;  %v158_v15 = vmul.f32 16.0, %v156_v13  ;;  %v2955_v16 = vsub.f32 %v149_v6, %v157_v14 }
  0x33   :  { %5473 = sst [smem:[#allocation17_spill]] %s2927_s26  ;;  %s2951_s3 = sld [smem:[#allocation7 + $0x1c]] }
  0x34   :  { %5474 = sst [smem:[#allocation18_spill]] %s2929_s27  ;;  %s2953_s28 = sld [smem:[#allocation7 + $0x1d]]  ;;  %v2965_v17 = vsub.f32 %v150_v7, %v158_v15  ;;  %vm161_vm0 = vcmp.ge.f32.partialorder %v2955_v16, 3.0  ;;  %vm163_vm1 = vcmp.le.f32.partialorder %v2955_v16, 18.0  ;;  %vm167_vm3 = vcmp.ge.f32.partialorder %v2955_v16, 2.0 }
  0x35   :  { %5475 = sst [smem:[#allocation19_spill]] %s2931_s29  ;;  %s2957_s4 = sld [smem:[#allocation7 + $0x1e]]  ;;  %vm2973_vm2 = vmand %vm161_vm0, %vm163_vm1  ;;  %vm169_vm4 = vcmp.le.f32.partialorder %v2955_v16, 17.0  ;;  %vm173_vm12 = vcmp.ge.f32.partialorder %v2955_v16, 1.0  ;;  %vm175_vm14 = vcmp.le.f32.partialorder %v2955_v16, 16.0  ;;  %vm179_vm1 = vcmp.ge.f32.partialorder %v2955_v16, 0.0 }
  0x36   :  { %5476 = sst [smem:[#allocation20_spill]] %s2933_s30  ;;  %v5494_v18 = vsel %vm2973_vm2, 4294967295, %v5493_v18  ;;  %vm162_vm5 = vcmp.ge.f32.partialorder %v2965_v17, 3.0  ;;  %vm164_vm6 = vcmp.le.f32.partialorder %v2965_v17, 18.0  ;;  %vm2985_vm7 = vmand %vm167_vm3, %vm169_vm4  ;;  %vm168_vm9 = vcmp.ge.f32.partialorder %v2965_v17, 2.0 }
  0x37   :  { %5477 = sst [smem:[#allocation21_spill]] %s2935_s5  ;;  %v5498_v19 = vsel %vm2985_vm7, 4294967295, %v5497_v19  ;;  %vm2993_vm8 = vmand %vm162_vm5, %vm164_vm6  ;;  %vm170_vm10 = vcmp.le.f32.partialorder %v2965_v17, 17.0  ;;  %vm174_vm13 = vcmp.ge.f32.partialorder %v2965_v17, 1.0  ;;  %vm176_vm15 = vcmp.le.f32.partialorder %v2965_v17, 16.0  ;;  %s3131_s5 = sld [smem:[#allocation7 + $0x4a]] }
  0x38   :  { %5478 = sst [smem:[#allocation22_spill]] %s2937_s6  ;;  %v5502_v20 = vsel %vm2993_vm8, 4294967295, %v5501_v20  ;;  %vm3003_vm11 = vmand %vm168_vm9, %vm170_vm10  ;;  %vm180_vm3 = vcmp.ge.f32.partialorder %v2965_v17, 0.0  ;;  %vm181_vm5 = vcmp.le.f32.partialorder %v2955_v16, 15.0  ;;  %vm182_vm6 = vcmp.le.f32.partialorder %v2965_v17, 15.0  ;;  %s3129_s6 = sld [smem:[#allocation7 + $0x49]] }
  0x39   :  { %5479 = sst [smem:[#allocation23_spill]] %s2939_s0  ;;  %vm3019_vm0 = vmand %vm173_vm12, %vm175_vm14  ;;  %vm185_vm10 = vcmp.ge.f32.partialorder %v2955_v16, -1.0  ;;  %vm186_vm12 = vcmp.ge.f32.partialorder %v2965_v17, -1.0  ;;  %vm187_vm14 = vcmp.le.f32.partialorder %v2955_v16, 14.0  ;;  %s3123_s0 = sld [smem:[#allocation7 + $0x46]] }
  0x3a   :  { %5480 = sst [smem:[#allocation24_spill]] %s2941_s9  ;;  %s2959_s9 = sld [smem:[#allocation7 + $0x1f]]  ;;  %v5512_v22 = vsel %vm3019_vm0, 4294967295, %v5511_v22  ;;  %vm3029_vm4 = vmand %vm174_vm13, %vm176_vm15  ;;  %vm188_vm15 = vcmp.le.f32.partialorder %v2965_v17, 14.0 }
  0x3b   :  { %5481 = sst [smem:[#allocation25_spill]] %s2943_s12  ;;  %s2961_s12 = sld [smem:[#allocation7 + $0x20]]  ;;  %vm3039_vm9 = vmand %vm179_vm1, %vm181_vm5  ;;  %vm191_vm5 = vcmp.ge.f32.partialorder %v2955_v16, -2.0 }
  0x3c   :  { %5482 = sst [smem:[#allocation26_spill]] %s2945_s13  ;;  %s2963_s13 = sld [smem:[#allocation7 + $0x21]]  ;;  %v5520_v24 = vsel %vm3039_vm9, 4294967295, %v5519_v24  ;;  %vm3049_vm13 = vmand %vm180_vm3, %vm182_vm6  ;;  %vm192_vm9 = vcmp.ge.f32.partialorder %v2965_v17, -2.0  ;;  %vm193_vm6 = vcmp.le.f32.partialorder %v2955_v16, 13.0 }
  0x3d   :  { %5483 = sst [smem:[#allocation27_spill]] %s2947_s14  ;;  %v5524_v25 = vsel %vm3049_vm13, 4294967295, %v5523_v25  ;;  %vm3059_vm1 = vmand %vm185_vm10, %vm187_vm14  ;;  %vm194_vm13 = vcmp.le.f32.partialorder %v2965_v17, 13.0  ;;  %vm197_vm14 = vcmp.ge.f32.partialorder %v2955_v16, -3.0  ;;  %s3121_s14 = sld [smem:[#allocation7 + $0x45]] }
  0x3e   :  { %5484 = sst [smem:[#allocation28_spill]] %s2949_s15  ;;  %v5528_v26 = vsel %vm3059_vm1, 4294967295, %v5527_v26  ;;  %vm3069_vm3 = vmand %vm186_vm12, %vm188_vm15  ;;  %vm198_vm1 = vcmp.ge.f32.partialorder %v2965_v17, -3.0  ;;  %vm199_vm15 = vcmp.le.f32.partialorder %v2955_v16, 12.0  ;;  %s3115_s15 = sld [smem:[#allocation7 + $0x42]] }
  0x3f   :  { %5485 = sst [smem:[#allocation29_spill]] %s2951_s3  ;;  %s2969_s3 = sld [smem:[#allocation7 + $0x22]]  ;;  %v5532_v27 = vsel %vm3069_vm3, 4294967295, %v5531_v27  ;;  %vm3079_vm10 = vmand %vm191_vm5, %vm193_vm6  ;;  %vm200_vm3 = vcmp.le.f32.partialorder %v2965_v17, 12.0 }
  0x40   :  { %5486 = sst [smem:[#allocation30_spill]] %s2953_s28  ;;  %s2971_s28 = sld [smem:[#allocation7 + $0x23]]  ;;  %vm3089_vm12 = vmand %vm192_vm9, %vm194_vm13 }
  0x41   :  { %5487 = sst [smem:[#allocation31_spill]] %s2957_s4  ;;  %vm3099_vm5 = vmand %vm197_vm14, %vm199_vm15  ;;  %s3113_s4 = sld [smem:[#allocation7 + $0x41]] }
  0x42   :  { %5488 = sst [smem:[#allocation32_spill]] %s2959_s9  ;;  %s3015_s9 = sld [smem:[#allocation7 + $0x2c]]  ;;  %v5544_v30 = vsel %vm3099_vm5, 4294967295, %v5543_v30  ;;  %vm3107_vm9 = vmand %vm198_vm1, %vm200_vm3 }
  0x43   :  { %5489 = sst [smem:[#allocation33_spill]] %s2961_s12  ;;  %s2979_s12 = sld [smem:[#allocation7 + $0x24]] }
  0x44   :  { %5490 = sst [smem:[#allocation34_spill]] %s2963_s13  ;;  %s2981_s13 = sld [smem:[#allocation7 + $0x25]] }
  0x45   :  { %5491 = sst [smem:[#allocation35_spill]] %s2969_s3  ;;  %s2991_s3 = sld [smem:[#allocation7 + $0x27]] }
  0x46   :  { %5492 = sst [smem:[#allocation36_spill]] %s2971_s28  ;;  %s2989_s28 = sld [smem:[#allocation7 + $0x26]] }
  0x47   :  { %5550 = sst [smem:[#allocation66_spill]] %s3113_s4  ;;  %s3135_s4 = sld [smem:[#allocation7 + $0x4c]] }
  0x48   :  { %5509 = sst [smem:[#allocation45_spill]] %s3015_s9  ;;  %s3037_s9 = sld [smem:[#allocation7 + $0x31]] }
  0x49   :  { %5495 = sst [smem:[#allocation37_spill]] %s2979_s12  ;;  %s3001_s12 = sld [smem:[#allocation7 + $0x29]] }
  0x4a   :  { %5496 = sst [smem:[#allocation38_spill]] %s2981_s13  ;;  %s2999_s13 = sld [smem:[#allocation7 + $0x28]] }
  0x4b   :  { %5500 = sst [smem:[#allocation40_spill]] %s2991_s3  ;;  %s3009_s3 = sld [smem:[#allocation7 + $0x2a]] }
  0x4c   :  { %5499 = sst [smem:[#allocation39_spill]] %s2989_s28  ;;  %s3011_s28 = sld [smem:[#allocation7 + $0x2b]] }
  0x4d   :  { %5551 = sst [smem:[#allocation67_spill]] %s3115_s15  ;;  %s3137_s15 = sld [smem:[#allocation7 + $0x4d]] }
  0x4e   :  { %5518 = sst [smem:[#allocation50_spill]] %s3037_s9  ;;  %s3055_s9 = sld [smem:[#allocation7 + $0x34]] }
  0x4f   :  { %5504 = sst [smem:[#allocation42_spill]] %s3001_s12  ;;  %s3025_s12 = sld [smem:[#allocation7 + $0x2e]] }
  0x50   :  { %5503 = sst [smem:[#allocation41_spill]] %s2999_s13  ;;  %s3017_s13 = sld [smem:[#allocation7 + $0x2d]] }
  0x51   :  { %5507 = sst [smem:[#allocation43_spill]] %s3009_s3  ;;  %s3027_s3 = sld [smem:[#allocation7 + $0x2f]] }
  0x52   :  { %5508 = sst [smem:[#allocation44_spill]] %s3011_s28  ;;  %s3103_s28 = sld [smem:[#allocation7 + $0x3e]] }
  0x53   :  { %5554 = sst [smem:[#allocation70_spill]] %s3121_s14  ;;  %s3143_s14 = sld [smem:[#allocation7 + $0x50]] }
  0x54   :  { %5525 = sst [smem:[#allocation53_spill]] %s3055_s9  ;;  %s3077_s9 = sld [smem:[#allocation7 + $0x39]] }
  0x55   :  { %5513 = sst [smem:[#allocation47_spill]] %s3025_s12  ;;  %s3047_s12 = sld [smem:[#allocation7 + $0x33]] }
  0x56   :  { %5510 = sst [smem:[#allocation46_spill]] %s3017_s13  ;;  %s3035_s13 = sld [smem:[#allocation7 + $0x30]] }
  0x57   :  { %5514 = sst [smem:[#allocation48_spill]] %s3027_s3  ;;  %s3045_s3 = sld [smem:[#allocation7 + $0x32]] }
  0x58   :  { %5545 = sst [smem:[#allocation63_spill]] %s3103_s28  ;;  %s3125_s28 = sld [smem:[#allocation7 + $0x47]] }
  0x59   :  { %5555 = sst [smem:[#allocation71_spill]] %s3123_s0  ;;  %s3145_s0 = sld [smem:[#allocation7 + $0x51]] }
  0x5a   :  { %5534 = sst [smem:[#allocation58_spill]] %s3077_s9  ;;  %s3095_s9 = sld [smem:[#allocation7 + $0x3c]] }
  0x5b   :  { %5522 = sst [smem:[#allocation52_spill]] %s3047_s12  ;;  %s3065_s12 = sld [smem:[#allocation7 + $0x36]] }
  0x5c   :  { %5517 = sst [smem:[#allocation49_spill]] %s3035_s13  ;;  %s3057_s13 = sld [smem:[#allocation7 + $0x35]] }
  0x5d   :  { %5521 = sst [smem:[#allocation51_spill]] %s3045_s3  ;;  %s3067_s3 = sld [smem:[#allocation7 + $0x37]] }
  0x5e   :  { %5556 = sst [smem:[#allocation72_spill]] %s3125_s28  ;;  %s3147_s28 = sld [smem:[#allocation7 + $0x52]] }
  0x5f   :  { %5558 = sst [smem:[#allocation74_spill]] %s3129_s6  ;;  %s3151_s6 = sld [smem:[#allocation7 + $0x54]] }
  0x60   :  { %5541 = sst [smem:[#allocation61_spill]] %s3095_s9  ;;  %s3117_s9 = sld [smem:[#allocation7 + $0x43]] }
  0x61   :  { %5529 = sst [smem:[#allocation55_spill]] %s3065_s12  ;;  %s3087_s12 = sld [smem:[#allocation7 + $0x3b]] }
  0x62   :  { %5526 = sst [smem:[#allocation54_spill]] %s3057_s13  ;;  %s3075_s13 = sld [smem:[#allocation7 + $0x38]] }
  0x63   :  { %5530 = sst [smem:[#allocation56_spill]] %s3067_s3  ;;  %s3085_s3 = sld [smem:[#allocation7 + $0x3a]] }
  0x64   :  { %5559 = sst [smem:[#allocation75_spill]] %s3131_s5  ;;  %s3153_s5 = sld [smem:[#allocation7 + $0x55]] }
  0x65   :  { %5561 = sst [smem:[#allocation77_spill]] %s3135_s4  ;;  %s3157_s4 = sld [smem:[#allocation7 + $0x57]] }
  0x66   :  { %5552 = sst [smem:[#allocation68_spill]] %s3117_s9  ;;  %s3139_s9 = sld [smem:[#allocation7 + $0x4e]] }
  0x67   :  { %5538 = sst [smem:[#allocation60_spill]] %s3087_s12  ;;  %s3111_s12 = sld [smem:[#allocation7 + $0x40]] }
  0x68   :  { %5533 = sst [smem:[#allocation57_spill]] %s3075_s13  ;;  %s3097_s13 = sld [smem:[#allocation7 + $0x3d]] }
  0x69   :  { %5537 = sst [smem:[#allocation59_spill]] %s3085_s3  ;;  %s3105_s3 = sld [smem:[#allocation7 + $0x3f]] }
  0x6a   :  { %5562 = sst [smem:[#allocation78_spill]] %s3137_s15  ;;  %s3159_s15 = sld [smem:[#allocation7 + $0x58]] }
  0x6b   :  { %5565 = sst [smem:[#allocation81_spill]] %s3143_s14  ;;  %s3165_s14 = sld [smem:[#allocation7 + $0x5b]] }
  0x6c   :  { %5563 = sst [smem:[#allocation79_spill]] %s3139_s9  ;;  %s3161_s9 = sld [smem:[#allocation7 + $0x59]] }
  0x6d   :  { %5549 = sst [smem:[#allocation65_spill]] %s3111_s12  ;;  %s3133_s12 = sld [smem:[#allocation7 + $0x4b]] }
  0x6e   :  { %5542 = sst [smem:[#allocation62_spill]] %s3097_s13  ;;  %s3119_s13 = sld [smem:[#allocation7 + $0x44]] }
  0x6f   :  { %5546 = sst [smem:[#allocation64_spill]] %s3105_s3  ;;  %s3127_s3 = sld [smem:[#allocation7 + $0x48]] }
  0x70   :  { %5566 = sst [smem:[#allocation82_spill]] %s3145_s0  ;;  %s3167_s0 = sld [smem:[#allocation7 + $0x5c]] }
  0x71   :  { %5567 = sst [smem:[#allocation83_spill]] %s3147_s28  ;;  %s3169_s28 = sld [smem:[#allocation7 + $0x5d]] }
  0x72   :  { %5569 = sst [smem:[#allocation85_spill]] %s3151_s6  ;;  %s3173_s6 = sld [smem:[#allocation7 + $0x5f]] }
  0x73   :  { %5560 = sst [smem:[#allocation76_spill]] %s3133_s12  ;;  %s3155_s12 = sld [smem:[#allocation7 + $0x56]] }
  0x74   :  { %5553 = sst [smem:[#allocation69_spill]] %s3119_s13  ;;  %s3141_s13 = sld [smem:[#allocation7 + $0x4f]] }
  0x75   :  { %5557 = sst [smem:[#allocation73_spill]] %s3127_s3  ;;  %s3149_s3 = sld [smem:[#allocation7 + $0x53]] }
  0x76   :  { %5570 = sst [smem:[#allocation86_spill]] %s3153_s5  ;;  %s3175_s5 = sld [smem:[#allocation7 + $0x60]] }
  0x77   :  { %5572 = sst [smem:[#allocation88_spill]] %s3157_s4  ;;  %s3179_s4 = smov 0  }
  0x78   :  { %5573 = sst [smem:[#allocation89_spill]] %s3159_s15 }
  0x79   :  { %5571 = sst [smem:[#allocation87_spill]] %s3155_s12  ;;  %s3177_s12 = sld [smem:[#allocation7 + $0x61]] }
  0x7a   :  { %5564 = sst [smem:[#allocation80_spill]] %s3141_s13  ;;  %s3163_s13 = sld [smem:[#allocation7 + $0x5a]] }
  0x7b   :  { %5568 = sst [smem:[#allocation84_spill]] %s3149_s3  ;;  %s3171_s3 = sld [smem:[#allocation7 + $0x5e]] }
  0x7c   :  { %5574 = sst [smem:[#allocation90_spill]] %s3161_s9 }
  0x7d   :  { %5576 = sst [smem:[#allocation92_spill]] %s3165_s14 }
  0x7e   :  { %5577 = sst [smem:[#allocation93_spill]] %s3167_s0 }
  0x7f   :  { %5578 = sst [smem:[#allocation94_spill]] %s3169_s28 }
  0x80   :  { %5575 = sst [smem:[#allocation91_spill]] %s3163_s13 }
  0x81   :  { %5579 = sst [smem:[#allocation95_spill]] %s3171_s3 }
  0x82   :  { %5580 = sst [smem:[#allocation96_spill]] %s3173_s6 }
  0x83   :  { %5581 = sst [smem:[#allocation97_spill]] %s3175_s5 }
  0x84   :  { %5582 = sst [smem:[#allocation98_spill]] %s3177_s12 }
  0x85 LB: > { %5583 = sst [smem:[#allocation99_spill]] %s2773_s4  ;;  %v2779_v32 = vmov 1.0|1.0   ;;  %s5269_s28 = sshll.u32 %s2773_s4, 5  ;;  %v2780_v39 = vmov 0.0|0.0   ;;  %vm589_vm13 = vcmask 410624   ;;  %v5591_v1 = vlaneseq  ;;  %s2773_s4 = sphi %s3179_s4, %s208_s4  }
  0x86   : > { %2595 = vmatprep.subr.bf16.mxu0 %v2779_v32  ;;  %s211_s6 = scalar_lea.vmem [#allocation3], %s5269_s28  ;;  %2611 = vmatprep.subr.bf16.mxu1 %v2780_v39  ;;  %vm591_vm1 = vcmask 828824   ;;  %vm2781_vm3 = vmmov 0   ;;  %v2782_v40 = vmov 0.0   ;;  %vm299_vm6 = vcmask 7168   ;;  %v5584_v0 = vld [vmem:[#allocation12_spill] sm:$0xff] }
  0x87   : > { %2596 = vmatpush3.bf16.msra.mxu0 %v2779_v32  ;;  %v3187_v33 = vld [vmem:[%s211_s6 + $0x8] sm:$0xff]  ;;  %v3189_v34 = vld [vmem:[%s211_s6] sm:$0xff]  ;;  %v3194_v36 = vld [vmem:[%s211_s6 + $0x18] sm:$0xff]  ;;  %2587 = vmatprep.mubr.msk.f32.mxu1 %vm2781_vm3, %v2782_v40  ;;  %590 = vst.msk [vmem:[#allocation2] sm:$0x3] %vm589_vm13, %v2782_v40  ;;  %vm302_vm14 = vcmask 130048   ;;  %vm5746_vm7 = vnez %v5498_v19  ;;  %vm5747_vm2 = vnez %v5494_v18  ;;  %vm5748_vm0 = vnez %v5512_v22 }
  0x88   : > { %2597 = vmatprep.subr.bf16.mxu0 %v2779_v32  ;;  %280 = vmatprep.mubr.f32.mxu0 %v3187_v33  ;;  %v293_v35 = vmax.f32 %v3189_v34, %v3187_v33  ;;  %v3196_v37 = vld [vmem:[%s211_s6 + $0x10] sm:$0xff]  ;;  %592 = vst.msk [vmem:[#allocation2 + $0x4] sm:$0x3] %vm591_vm1, %v2782_v40  ;;  %vm377_vm15 = vcmask 31744   ;;  %vm384_vm13 = vcmask 1043456   ;;  %s5277_s6 = smov 127   ;;  %vm5749_vm8 = vnez %v5502_v20 }
  0x89   : > { %v296_v38 = vmax.f32 %v3196_v37, %v3194_v36  ;;  %v5585_v2 = vld [vmem:[#allocation13_spill] sm:$0xff]  ;;  %v5586_v3 = vld [vmem:[#allocation14_spill] sm:$0xff]  ;;  %v2784_v59 = vmov 0   ;;  %s5270_s28 = smov 51   ;;  %vm3240_vm1 = vcmp.ge.s32.totalorder %v5591_v1, 51  ;;  %vm3245_vm3 = vcmp.lt.s32.totalorder %v5591_v1, 307 }
  0x8a   : > { %294 = vmax.xlane.f32.xlu0 %v293_v35  ;;  %2687 = vset.pattern.permute.xlu1 %v2784_v59  ;;  %s5275_s4 = smov 124   ;;  %s5279_s12 = smov 123   ;;  %vm5758_vm5 = vnez %v5544_v30 }
  0x8b   : > { %2598 = vmatpush3.bf16.msra.mxu0 %v2779_v32  ;;  %2688 = vset.pattern.permute.xlu0 %v2784_v59  ;;  %s5281_s5 = smov 122   ;;  %s5598_s3 = smov 124  }
  0x8c   : > { %2599 = vmatprep.subr.bf16.mxu0 %v2779_v32  ;;  %s5600_s0 = smov 122   ;;  %s5297_s14 = smov 106  }
  0x8d   : > { %s5602_s13 = smov 111   ;;  %s5301_s9 = smov 95  }
  0x8e   : > { %297 = vmax.xlane.f32.xlu0 %v296_v38  ;;  %s5604_s15 = smov 109   ;;  %s5305_s30 = smov 93  }
  0x8f   : > { %2600 = vmatpush3.bf16.msra.mxu0 %v2779_v32  ;;  %s5606_s29 = smov 107   ;;  %s5309_s27 = smov 91  }
  0x90   : > { %2601 = vmatprep.subr.bf16.mxu0 %v2779_v32  ;;  %s5608_s26 = smov 96   ;;  %s5316_s25 = smov 80  }
  0x91   : > { %s5610_s24 = smov 94  }
  0x93   : > { %2602 = vmatpush3.bf16.msra.mxu0 %v2779_v32 }
  0x94   : > { %2603 = vmatprep.subr.bf16.mxu0 %v2779_v32 }
  0x97   : > { %2604 = vmatpush3.bf16.msra.mxu0 %v2779_v32 }
  0x98   : > { %2605 = vmatprep.subr.bf16.mxu0 %v2779_v32 }
  0x9b   : > { %2606 = vmatpush3.bf16.msra.mxu0 %v2779_v32 }
  0x9c   : > { %2607 = vmatprep.subr.bf16.mxu0 %v2779_v32 }
  0x9f   : > { %2608 = vmatpush3.bf16.msra.mxu0 %v2779_v32 }
  0xa0   : > { %2609 = vmatprep.subr.bf16.mxu0 %v2779_v32 }
  0xa3   : > { %2610 = vmatpush3.bf16.msra.mxu0 %v2779_v32 }
  0xa6   : > { %281 = vmatmul.mubr.f32.vlgmr.msra.gmra.mrb[0].mxu0 %v3189_v34 }
  0xa7   : > { %285 = vmatprep.mubr.f32.mxu0 %v3194_v36 }
  0xaa   : > { %286 = vmatmul.mubr.f32.gmra.mrb[2].mxu0 %v3196_v37 }
 0x117   : > { %v295_v43 = vpop.xlane.xlu0 %294 }
 0x11b   : > { %v298_v49 = vpop.xlane.xlu0 %297 }
 0x179   : > { %v2571_v41 = vpop.f32.mrb[0].mxu0 }
 0x17a   : > { %v2572_v42 = vpop.f32.mrb[1].mxu0 }
 0x17b   : > { %v2573_v44 = vadd.f32 %v2572_v42, %v2571_v41 }
 0x17d   : > { %v2574_v45 = vpop.f32.mrb[2].mxu0  ;;  %v291_v47 = vmul.f32 0.00390625, %v2573_v44 }
 0x17e   : > { %v2575_v46 = vpop.f32.mrb[3].mxu0 }
 0x17f   : > { %v2576_v48 = vadd.f32 %v2575_v46, %v2574_v45  ;;  %v300_v51 = vsel %vm299_vm6, %v291_v47, %v295_v43  ;;  %v3230_v47 = vshrl.u32 %v5591_v1, 7 }
 0x181   : > { %v292_v50 = vmul.f32 0.00390625, %v2576_v48 }
 0x183   : > { %v301_v52 = vsel %vm299_vm6, %v292_v50, %v298_v49  ;;  %vm613_vm6 = vcmask 416768  }
 0x184   : > { %v2612_v53 = vpack.c.bf16 %v301_v52, %v300_v51 }
 0x186   : > { %2613 = vmatpush3.bf16.msra.mxu1 %v2612_v53 }
 0x189   : > { %2588 = vmatmul.mubr.msk.f32.vlgmr.msra.gmra.mrb[0].mxu1 %vm302_vm14, %v5584_v0 }
 0x18a   : > { %2592 = vmatprep.mubr.msk.f32.mxu1 %vm377_vm15, %v5585_v2 }
 0x25c   : > { %v372_v54 = vpop.f32.mrb[0].mxu1 }
 0x25d   : > { %v376_v55 = vmax.f32 %v372_v54, 0.0  ;;  %v2589_v56 = vpop.f32.mrb[1].mxu1 }
 0x25e   : > { %v2787_v56 = vmov 1.0  }
 0x25f   : > { %2590 = vmatprep.subr.msk.mxu1 %vm384_vm13, %v376_v55 }
 0x260   : > { %2591 = vmatpush3.msk.msra.mxu1 %vm384_vm13, %v376_v55  ;;  %vm5426_vm13 = vcmask 1031168  }
 0x261   : > { %2593 = vmatmul.mubr.msk.f32.vlgmr.msra.gmra.mrb[2].mxu1 %vm377_vm15, %v5586_v3  ;;  %vm619_vm15 = vmand %vm3240_vm1, %vm3245_vm3  ;;  %vm5425_vm1 = vcmask 1022976   ;;  %vm5428_vm3 = vcmask 1014784  }
 0x262   : > { %580 = vmatprep.mubr.f32.mxu1 %v2782_v40 }
 0x334   : > { %v2594_v57 = vpop.f32.mrb[2].mxu1 }
 0x335   : > { %467 = vrot.lane.b32.xlu1 %v2594_v57, %s5277_s6  ;;  %v454_v58 = vpop.f32.mrb[3].mxu1 }
 0x339   : > { %465 = vrot.lane.b32.xlu1 %v454_v58, %s5277_s6 }
 0x3a7   : > { %v468_v60 = vpop.permute.xlu1 %467 }
 0x3a8   : > { %v472_v61 = vadd.f32 %v2594_v57, %v468_v60  ;;  %v5737_v57 = vsub.s32 2, %v3230_v47 }
 0x3aa   : > { %v2532_v62 = vmul.f32 -1.442695, %v472_v61 }
 0x3ab   : > { %v466_v63 = vpop.permute.xlu1 %465 }
 0x3ac   : > { %2689 = vpow2.f32 %v2532_v62  ;;  %v471_v4 = vadd.f32 %v466_v63, %v454_v58  ;;  %v3260_v62 = vsub.s32 0, %v3230_v47  ;;  %v5346_v63 = vsub.s32 2, %v3230_v47 }
 0x3ae   : > { %v2531_v5 = vmul.f32 -1.442695, %v471_v4  ;;  %5596 = vst [vmem:[#allocation104_spill] sm:$0xff] %v3260_v62 }
 0x3b0   : > { %2691 = vpow2.f32 %v2531_v5  ;;  %v5349_v5 = vsub.s32 1, %v3230_v47 }
 0x3b6   : > { %v2690_v6 = vpop.eup %2689 }
 0x3b7   : > { %v480_v7 = vadd.f32 1.0, %v2690_v6 }
 0x3b9   : > { %2693 = vrcp.f32 %v480_v7 }
 0x3ba   : > { %v2692_v8 = vpop.eup %2691 }
 0x3bb   : > { %v479_v9 = vadd.f32 1.0, %v2692_v8 }
 0x3bd   : > { %2695 = vrcp.f32 %v479_v9 }
 0x3c3   : > { %v2694_v10 = vpop.eup %2693 }
 0x3c4   : > { %492 = vperm.xlu1 %2687, %v2694_v10  }
 0x3c7   : > { %v2696_v11 = vpop.eup %2695 }
 0x3c8   : > { %487 = vperm.xlu0 %2688, %v2696_v11  }
 0x443   : > { %v493_v12 = vpop.permute.xlu1 %492 }
 0x444   : > { %v3210_v14 = vmul.f32 %v493_v12, %v3196_v37  ;;  %v3213_v15 = vmul.f32 %v493_v12, %v3194_v36 }
 0x446   : > { %5587 = vst [vmem:[#allocation100_spill] sm:$0xff] %v3210_v14  ;;  %5588 = vst [vmem:[#allocation101_spill] sm:$0xff] %v3213_v15 }
 0x447   : > { %v488_v13 = vpop.permute.xlu0 %487 }
 0x448   : > { %v3216_v16 = vmul.f32 %v488_v13, %v3189_v34  ;;  %v3219_v17 = vmul.f32 %v488_v13, %v3187_v33  ;;  %v2785_v33 = vmov 1966171168  }
 0x449   : > { %v597_v41 = vunpack.c.l.s4 %v2785_v33 }
 0x44a   : > { %5589 = vst [vmem:[#allocation102_spill] sm:$0xff] %v3216_v16  ;;  %5590 = vst [vmem:[#allocation103_spill] sm:$0xff] %v3219_v17  ;;  %v499_v32 = vmax.f32 %v3216_v16, %v3210_v14  ;;  %v506_v35 = vmax.f32 %v3219_v17, %v3213_v15  ;;  %v2614_v38 = vpack.c.bf16 %v3213_v15, %v3219_v17 }
 0x44b   : > { %v2616_v37 = vpack.c.bf16 %v3210_v14, %v3216_v16  ;;  %v598_v46 = vunpack.c.0.s8 %v597_v41 }
 0x44c   : > { %v500_v36 = vrot.slane %v499_v32, 4  ;;  %v507_v39 = vrot.slane %v506_v35, 4  ;;  %2615 = vmatprep.subr.bf16.mxu1 %v2614_v38 }
 0x44d   : > { %2617 = vmatpush1.bf16.msra.mxu1 %v2616_v37  ;;  %v3233_v52 = vsub.s32 %v598_v46, %v3230_v47 }
 0x44e   : > { %v501_v34 = vmax.f32 %v499_v32, %v500_v36  ;;  %v508_v40 = vmax.f32 %v506_v35, %v507_v39 }
 0x450   : > { %v502_v42 = vrot.slane %v501_v34, 2  ;;  %v509_v43 = vrot.slane %v508_v40, 2  ;;  %2533 = vmatmul.mubr.msk.f32.vlgmr.msra.gmra.mrb[4].mxu1 %vm302_vm14, %v2787_v56  ;;  %vm5427_vm14 = vcmask 1039360  }
 0x452   : > { %v503_v44 = vmax.f32 %v501_v34, %v502_v42  ;;  %v510_v45 = vmax.f32 %v508_v40, %v509_v43 }
 0x454   : > { %v504_v48 = vrot.slane %v503_v44, 1  ;;  %v511_v49 = vrot.slane %v510_v45, 1 }
 0x456   : > { %v505_v50 = vmax.f32 %v503_v44, %v504_v48  ;;  %v512_v51 = vmax.f32 %v510_v45, %v511_v49 }
 0x458   : > { %v595_v53 = vcombine.low %v505_v50, %v512_v51 }
 0x45a   : > { %v602_v54 = vrot.slane %v595_v53, %v3233_v52 }
 0x45c   : > { %v609_v55 = vrot.slane %v602_v54, %v3233_v52 }
 0x45e   : > { %610 = vrot.lane.b32.xlu1 %v609_v55, %s5270_s28  ;;  %s5273_s28 = smov 125  }
 0x4d0   : > { %v611_v59 = vpop.permute.xlu1 %610 }
 0x4d1   : > { %v612_v60 = vrot.slane %v611_v59, 7 }
 0x4d3   : > { %v614_v61 = vsel %vm613_vm6, %v612_v60, %v611_v59 }
 0x4d4   : > { %620 = vst.msk [vmem:[#allocation2] ss:$2 sm:$0x7] %vm619_vm15, %v614_v61 }
 0x4db   : > { %v645_v4 = vld [vmem:[#allocation2] ss:$2 sm:$0x7] }
 0x4dc   : > { %v3265_v6 = vrot.slane %v645_v4, %v3260_v62  ;;  %v3269_v7 = vrot.slane %v645_v4, %v5346_v63  ;;  %v3277_v8 = vrot.slane %v645_v4, %v5349_v5 }
 0x4de   : > { %708 = vrot.lane.b32.xlu0 %v3269_v7, %s5273_s28  ;;  %668 = vrot.lane.b32.xlu1 %v3265_v6, %s5277_s6  ;;  %s5283_s28 = smov 126  }
 0x4e2   : > { %724 = vrot.lane.b32.xlu0 %v3277_v8, %s5275_s4  ;;  %670 = vrot.lane.b32.xlu1 %v3277_v8, %s5277_s6  ;;  %s5287_s4 = smov 112  }
 0x4e6   : > { %740 = vrot.lane.b32.xlu0 %v3265_v6, %s5279_s12  ;;  %672 = vrot.lane.b32.xlu1 %v3269_v7, %s5277_s6  ;;  %s5597_s6 = smov 125  }
 0x4ea   : > { %744 = vrot.lane.b32.xlu0 %v3269_v7, %s5279_s12  ;;  %686 = vrot.lane.b32.xlu1 %v3265_v6, %s5283_s28  ;;  %s5285_s12 = smov 111  }
 0x4ee   : > { %760 = vrot.lane.b32.xlu0 %v3277_v8, %s5281_s5  ;;  %688 = vrot.lane.b32.xlu1 %v3277_v8, %s5283_s28  ;;  %s5289_s5 = smov 110  }
 0x4f2   : > { %776 = vrot.lane.b32.xlu0 %v3265_v6, %s5287_s4  ;;  %690 = vrot.lane.b32.xlu1 %v3269_v7, %s5283_s28  ;;  %s5291_s28 = smov 109  }
 0x4f6   : > { %780 = vrot.lane.b32.xlu0 %v3269_v7, %s5287_s4  ;;  %704 = vrot.lane.b32.xlu1 %v3265_v6, %s5597_s6  ;;  %s5293_s4 = smov 108  }
 0x4fa   : > { %796 = vrot.lane.b32.xlu0 %v3277_v8, %s5285_s12  ;;  %706 = vrot.lane.b32.xlu1 %v3277_v8, %s5597_s6  ;;  %s5599_s12 = smov 123  }
 0x4fe   : > { %812 = vrot.lane.b32.xlu0 %v3265_v6, %s5289_s5  ;;  %722 = vrot.lane.b32.xlu1 %v3265_v6, %s5598_s3 }
 0x502   : > { %816 = vrot.lane.b32.xlu0 %v3269_v7, %s5289_s5  ;;  %726 = vrot.lane.b32.xlu1 %v3269_v7, %s5598_s3  ;;  %s5295_s5 = smov 107  }
 0x506   : > { %832 = vrot.lane.b32.xlu0 %v3277_v8, %s5291_s28  ;;  %742 = vrot.lane.b32.xlu1 %v3277_v8, %s5599_s12  ;;  %s5601_s28 = smov 112  }
 0x50a   : > { %848 = vrot.lane.b32.xlu0 %v3265_v6, %s5293_s4  ;;  %758 = vrot.lane.b32.xlu1 %v3265_v6, %s5600_s0 }
 0x50e   : > { %852 = vrot.lane.b32.xlu0 %v3269_v7, %s5293_s4  ;;  %762 = vrot.lane.b32.xlu1 %v3269_v7, %s5600_s0  ;;  %s5299_s4 = smov 96  }
 0x512   : > { %868 = vrot.lane.b32.xlu0 %v3277_v8, %s5295_s5  ;;  %778 = vrot.lane.b32.xlu1 %v3277_v8, %s5601_s28  ;;  %s5603_s5 = smov 110  }
 0x516   : > { %884 = vrot.lane.b32.xlu0 %v3265_v6, %s5297_s14  ;;  %794 = vrot.lane.b32.xlu1 %v3265_v6, %s5602_s13 }
 0x51a   : > { %888 = vrot.lane.b32.xlu0 %v3269_v7, %s5297_s14  ;;  %798 = vrot.lane.b32.xlu1 %v3269_v7, %s5602_s13  ;;  %s5303_s14 = smov 94  }
 0x51e   : > { %904 = vrot.lane.b32.xlu0 %v3277_v8, %s5299_s4  ;;  %814 = vrot.lane.b32.xlu1 %v3277_v8, %s5603_s5  ;;  %s5605_s4 = smov 108  }
 0x522   : > { %920 = vrot.lane.b32.xlu0 %v3265_v6, %s5301_s9  ;;  %830 = vrot.lane.b32.xlu1 %v3265_v6, %s5604_s15 }
 0x523   : > { %v582_v45 = vpop.f32.mrb[4].mxu1 }
 0x524   : > { %v3481_v48 = vmul.f32 0.0625, %v582_v45  ;;  %v584_v49 = vpop.f32.mrb[5].mxu1 }
 0x525   : > { %v3487_v50 = vmul.f32 0.0625, %v584_v49 }
 0x526   : > { %924 = vrot.lane.b32.xlu0 %v3269_v7, %s5301_s9  ;;  %834 = vrot.lane.b32.xlu1 %v3269_v7, %s5604_s15  ;;  %s5307_s9 = smov 92  }
 0x52a   : > { %940 = vrot.lane.b32.xlu0 %v3277_v8, %s5303_s14  ;;  %850 = vrot.lane.b32.xlu1 %v3277_v8, %s5605_s4  ;;  %s5607_s14 = smov 106  }
 0x52e   : > { %956 = vrot.lane.b32.xlu0 %v3265_v6, %s5305_s30  ;;  %866 = vrot.lane.b32.xlu1 %v3265_v6, %s5606_s29 }
 0x532   : > { %960 = vrot.lane.b32.xlu0 %v3269_v7, %s5305_s30  ;;  %870 = vrot.lane.b32.xlu1 %v3269_v7, %s5606_s29  ;;  %s5311_s30 = smov 90  }
 0x536   : > { %976 = vrot.lane.b32.xlu0 %v3277_v8, %s5307_s9  ;;  %886 = vrot.lane.b32.xlu1 %v3277_v8, %s5607_s14  ;;  %s5609_s9 = smov 95  }
 0x53a   : > { %992 = vrot.lane.b32.xlu0 %v3265_v6, %s5309_s27  ;;  %902 = vrot.lane.b32.xlu1 %v3265_v6, %s5608_s26 }
 0x53e   : > { %996 = vrot.lane.b32.xlu0 %v3269_v7, %s5309_s27  ;;  %906 = vrot.lane.b32.xlu1 %v3269_v7, %s5608_s26  ;;  %s5314_s27 = smov 79   ;;  %s5612_s26 = smov 92  }
 0x542   : > { %1012 = vrot.lane.b32.xlu0 %v3277_v8, %s5311_s30  ;;  %922 = vrot.lane.b32.xlu1 %v3277_v8, %s5609_s9  ;;  %s5611_s30 = smov 93   ;;  %s5321_s9 = smov 78  }
 0x546   : > { %1028 = vrot.lane.b32.xlu0 %v3265_v6, %s5316_s25  ;;  %938 = vrot.lane.b32.xlu1 %v3265_v6, %s5610_s24 }
 0x54a   : > { %1032 = vrot.lane.b32.xlu0 %v3269_v7, %s5316_s25  ;;  %942 = vrot.lane.b32.xlu1 %v3269_v7, %s5610_s24  ;;  %s5613_s25 = smov 91   ;;  %s5614_s24 = smov 90  }
 0x54e   : > { %1048 = vrot.lane.b32.xlu0 %v3277_v8, %s5314_s27  ;;  %958 = vrot.lane.b32.xlu1 %v3277_v8, %s5611_s30  ;;  %s5319_s27 = smov 77   ;;  %s5323_s30 = smov 76  }
 0x550   : > { %v3391_v9 = vpop.permute.xlu1 %668  ;;  %v3429_v38 = vpop.permute.xlu0 %708 }
 0x552   : > { %1064 = vrot.lane.b32.xlu0 %v3265_v6, %s5321_s9  ;;  %974 = vrot.lane.b32.xlu1 %v3265_v6, %s5612_s26 }
 0x554   : > { %v3397_v10 = vpop.permute.xlu1 %670  ;;  %v3441_v36 = vpop.permute.xlu0 %724 }
 0x556   : > { %1068 = vrot.lane.b32.xlu0 %v3269_v7, %s5321_s9  ;;  %978 = vrot.lane.b32.xlu1 %v3269_v7, %s5612_s26  ;;  %s5615_s9 = smov 80  }
 0x558   : > { %v3403_v11 = vpop.permute.xlu1 %672  ;;  %v3451_v40 = vpop.permute.xlu0 %740 }
 0x55a   : > { %1084 = vrot.lane.b32.xlu0 %v3277_v8, %s5319_s27  ;;  %994 = vrot.lane.b32.xlu1 %v3277_v8, %s5613_s25  ;;  %s5325_s27 = smov 75   ;;  %s5328_s25 = smov 74  }
 0x55c   : > { %v3409_v12 = vpop.permute.xlu1 %686  ;;  %v3463_v41 = vpop.permute.xlu0 %744 }
 0x55e   : > { %1100 = vrot.lane.b32.xlu0 %v3265_v6, %s5323_s30  ;;  %1010 = vrot.lane.b32.xlu1 %v3265_v6, %s5614_s24 }
 0x560   : > { %v3415_v13 = vpop.permute.xlu1 %688  ;;  %v3473_v44 = vpop.permute.xlu0 %760 }
 0x562   : > { %1104 = vrot.lane.b32.xlu0 %v3269_v7, %s5323_s30  ;;  %1014 = vrot.lane.b32.xlu1 %v3269_v7, %s5614_s24  ;;  %s5616_s30 = smov 79   ;;  %s5333_s24 = smov 63  }
 0x564   : > { %v3421_v32 = vpop.permute.xlu1 %690  ;;  %v3489_v51 = vpop.permute.xlu0 %776 }
 0x566   : > { %1120 = vrot.lane.b32.xlu0 %v3277_v8, %s5325_s27  ;;  %1030 = vrot.lane.b32.xlu1 %v3277_v8, %s5615_s9  ;;  %s5330_s27 = smov 64   ;;  %s5617_s9 = smov 78  }
 0x568   : > { %v3427_v35 = vpop.permute.xlu1 %704  ;;  %v3501_v56 = vpop.permute.xlu0 %780 }
 0x56a   : > { %1136 = vrot.lane.b32.xlu0 %v3265_v6, %s5328_s25  ;;  %1046 = vrot.lane.b32.xlu1 %v3265_v6, %s5616_s30 }
 0x56c   : > { %v3435_v37 = vpop.permute.xlu1 %706  ;;  %v3513_v60 = vpop.permute.xlu0 %796 }
 0x56e   : > { %1140 = vrot.lane.b32.xlu0 %v3269_v7, %s5328_s25  ;;  %1050 = vrot.lane.b32.xlu1 %v3269_v7, %s5616_s30  ;;  %s5618_s25 = smov 77   ;;  %s5337_s30 = smov 61  }
 0x570   : > { %v3443_v39 = vpop.permute.xlu1 %722  ;;  %v3523_v45 = vpop.permute.xlu0 %812 }
 0x572   : > { %1156 = vrot.lane.b32.xlu0 %v3277_v8, %s5330_s27  ;;  %1066 = vrot.lane.b32.xlu1 %v3277_v8, %s5617_s9  ;;  %s5335_s27 = smov 62   ;;  %s5619_s9 = smov 76  }
 0x574   : > { %v3449_v34 = vpop.permute.xlu1 %726  ;;  %v3535_v1 = vpop.permute.xlu0 %816 }
 0x576   : > { %1172 = vrot.lane.b32.xlu0 %v3265_v6, %s5333_s24  ;;  %1082 = vrot.lane.b32.xlu1 %v3265_v6, %s5618_s25 }
 0x578   : > { %v3457_v33 = vpop.permute.xlu1 %742  ;;  %v3545_v54 = vpop.permute.xlu0 %832 }
 0x57a   : > { %1176 = vrot.lane.b32.xlu0 %v3269_v7, %s5333_s24  ;;  %1086 = vrot.lane.b32.xlu1 %v3269_v7, %s5618_s25  ;;  %s5620_s24 = smov 75   ;;  %s5351_s25 = smov 48  }
 0x57c   : > { %v3465_v42 = vpop.permute.xlu1 %758  ;;  %v3557_v2 = vpop.permute.xlu0 %848 }
 0x57e   : > { %1192 = vrot.lane.b32.xlu0 %v3277_v8, %s5335_s27  ;;  %1102 = vrot.lane.b32.xlu1 %v3277_v8, %s5619_s9  ;;  %s5340_s27 = smov 60   ;;  %s5621_s9 = smov 74  }
 0x580   : > { %v3471_v43 = vpop.permute.xlu1 %762  ;;  %v3567_v17 = vpop.permute.xlu0 %852 }
 0x581   : > { %5633 = vst [vmem:[#allocation110_spill] sm:$0xff] %v3567_v17 }
 0x582   : > { %1208 = vrot.lane.b32.xlu0 %v3265_v6, %s5337_s30  ;;  %1118 = vrot.lane.b32.xlu1 %v3265_v6, %s5620_s24 }
 0x584   : > { %v3479_v46 = vpop.permute.xlu1 %778  ;;  %v3579_v16 = vpop.permute.xlu0 %868 }
 0x585   : > { %5636 = vst [vmem:[#allocation112_spill] sm:$0xff] %v3579_v16 }
 0x586   : > { %1212 = vrot.lane.b32.xlu0 %v3269_v7, %s5337_s30  ;;  %1122 = vrot.lane.b32.xlu1 %v3269_v7, %s5620_s24  ;;  %s5343_s30 = smov 59   ;;  %s5622_s24 = smov 64  }
 0x588   : > { %v3491_v53 = vpop.permute.xlu1 %794 }
 0x58a   : > { %1228 = vrot.lane.b32.xlu0 %v3277_v8, %s5340_s27  ;;  %1138 = vrot.lane.b32.xlu1 %v3277_v8, %s5621_s9  ;;  %s5347_s27 = smov 58   ;;  %s5623_s9 = smov 63  }
 0x58c   : > { %v3499_v55 = vpop.permute.xlu1 %798 }
 0x58e   : > { %1244 = vrot.lane.b32.xlu0 %v3265_v6, %s5343_s30  ;;  %1154 = vrot.lane.b32.xlu1 %v3265_v6, %s5622_s24 }
 0x590   : > { %v3507_v59 = vpop.permute.xlu1 %814 }
 0x592   : > { %1248 = vrot.lane.b32.xlu0 %v3269_v7, %s5343_s30  ;;  %1158 = vrot.lane.b32.xlu1 %v3269_v7, %s5622_s24  ;;  %s5624_s30 = smov 62   ;;  %s5358_s24 = smov 46  }
 0x594   : > { %v3515_v61 = vpop.permute.xlu1 %830 }
 0x596   : > { %1264 = vrot.lane.b32.xlu0 %v3277_v8, %s5347_s27  ;;  %1174 = vrot.lane.b32.xlu1 %v3277_v8, %s5623_s9  ;;  %s5353_s27 = smov 47   ;;  %s5626_s9 = smov 61  }
 0x598   : > { %v3521_v4 = vpop.permute.xlu1 %834 }
 0x59a   : > { %1280 = vrot.lane.b32.xlu0 %v3265_v6, %s5351_s25  ;;  %1190 = vrot.lane.b32.xlu1 %v3265_v6, %s5624_s30 }
 0x59c   : > { %v3529_v49 = vpop.permute.xlu1 %850 }
 0x59e   : > { %1284 = vrot.lane.b32.xlu0 %v3269_v7, %s5351_s25  ;;  %1194 = vrot.lane.b32.xlu1 %v3269_v7, %s5624_s30  ;;  %s5628_s25 = smov 60   ;;  %s5366_s30 = smov 44  }
 0x5a0   : > { %v3537_v63 = vpop.permute.xlu1 %866 }
 0x5a1   : > { %5625 = vst [vmem:[#allocation105_spill] sm:$0xff] %v3537_v63 }
 0x5a2   : > { %1300 = vrot.lane.b32.xlu0 %v3277_v8, %s5353_s27  ;;  %1210 = vrot.lane.b32.xlu1 %v3277_v8, %s5626_s9  ;;  %s5362_s27 = smov 45   ;;  %s5631_s9 = smov 59  }
 0x5a4   : > { %v3543_v5 = vpop.permute.xlu1 %870 }
 0x5a5   : > { %5627 = vst [vmem:[#allocation106_spill] sm:$0xff] %v3543_v5 }
 0x5a6   : > { %1316 = vrot.lane.b32.xlu0 %v3265_v6, %s5358_s24  ;;  %1226 = vrot.lane.b32.xlu1 %v3265_v6, %s5628_s25 }
 0x5a8   : > { %v3551_v0 = vpop.permute.xlu1 %886 }
 0x5a9   : > { %5629 = vst [vmem:[#allocation107_spill] sm:$0xff] %v3551_v0 }
 0x5aa   : > { %1320 = vrot.lane.b32.xlu0 %v3269_v7, %s5358_s24  ;;  %1230 = vrot.lane.b32.xlu1 %v3269_v7, %s5628_s25  ;;  %s5634_s24 = smov 58   ;;  %s5373_s25 = smov 42  }
 0x5ac   : > { %v3559_v3 = vpop.permute.xlu1 %902 }
 0x5ad   : > { %5630 = vst [vmem:[#allocation108_spill] sm:$0xff] %v3559_v3 }
 0x5ae   : > { %1336 = vrot.lane.b32.xlu0 %v3277_v8, %s5362_s27  ;;  %1246 = vrot.lane.b32.xlu1 %v3277_v8, %s5631_s9  ;;  %s5369_s27 = smov 43   ;;  %s5638_s9 = smov 48  }
 0x5b0   : > { %v3565_v15 = vpop.permute.xlu1 %906 }
 0x5b1   : > { %5632 = vst [vmem:[#allocation109_spill] sm:$0xff] %v3565_v15 }
 0x5b2   : > { %1352 = vrot.lane.b32.xlu0 %v3265_v6, %s5366_s30  ;;  %1262 = vrot.lane.b32.xlu1 %v3265_v6, %s5634_s24 }
 0x5b4   : > { %v3573_v14 = vpop.permute.xlu1 %922 }
 0x5b5   : > { %5635 = vst [vmem:[#allocation111_spill] sm:$0xff] %v3573_v14  ;;  %v3589_v14 = vpop.permute.xlu0 %884 }
 0x5b6   : > { %1356 = vrot.lane.b32.xlu0 %v3269_v7, %s5366_s30  ;;  %1266 = vrot.lane.b32.xlu1 %v3269_v7, %s5634_s24  ;;  %5640 = vst [vmem:[#allocation115_spill] sm:$0xff] %v3589_v14  ;;  %s5641_s30 = smov 47   ;;  %s5380_s24 = smov 31  }
 0x5b8   : > { %v3581_v15 = vpop.permute.xlu1 %938 }
 0x5b9   : > { %5637 = vst [vmem:[#allocation113_spill] sm:$0xff] %v3581_v15  ;;  %v3601_v15 = vpop.permute.xlu0 %888 }
 0x5ba   : > { %1372 = vrot.lane.b32.xlu0 %v3277_v8, %s5369_s27  ;;  %1282 = vrot.lane.b32.xlu1 %v3277_v8, %s5638_s9  ;;  %5643 = vst [vmem:[#allocation117_spill] sm:$0xff] %v3601_v15  ;;  %s5375_s27 = smov 32   ;;  %s5645_s9 = smov 46  }
 0x5bc   : > { %v3587_v3 = vpop.permute.xlu1 %942 }
 0x5bd   : > { %5639 = vst [vmem:[#allocation114_spill] sm:$0xff] %v3587_v3 }
 0x5be   : > { %1388 = vrot.lane.b32.xlu0 %v3265_v6, %s5373_s25  ;;  %1298 = vrot.lane.b32.xlu1 %v3265_v6, %s5641_s30 }
 0x5c0   : > { %v3595_v0 = vpop.permute.xlu1 %958 }
 0x5c1   : > { %5642 = vst [vmem:[#allocation116_spill] sm:$0xff] %v3595_v0  ;;  %v3611_v0 = vpop.permute.xlu0 %904 }
 0x5c2   : > { %1392 = vrot.lane.b32.xlu0 %v3269_v7, %s5373_s25  ;;  %1302 = vrot.lane.b32.xlu1 %v3269_v7, %s5641_s30  ;;  %5647 = vst [vmem:[#allocation120_spill] sm:$0xff] %v3611_v0  ;;  %s5648_s25 = smov 45   ;;  %s5386_s30 = smov 29  }
 0x5c4   : > { %v3603_v3 = vpop.permute.xlu1 %974 }
 0x5c5   : > { %5644 = vst [vmem:[#allocation118_spill] sm:$0xff] %v3603_v3  ;;  %v3623_v3 = vpop.permute.xlu0 %920 }
 0x5c6   : > { %1408 = vrot.lane.b32.xlu0 %v3277_v8, %s5375_s27  ;;  %1318 = vrot.lane.b32.xlu1 %v3277_v8, %s5645_s9  ;;  %5650 = vst [vmem:[#allocation122_spill] sm:$0xff] %v3623_v3  ;;  %s5382_s27 = smov 30   ;;  %s5652_s9 = smov 44  }
 0x5c8   : > { %v3609_v14 = vpop.permute.xlu1 %978 }
 0x5c9   : > { %5646 = vst [vmem:[#allocation119_spill] sm:$0xff] %v3609_v14 }
 0x5ca   : > { %1424 = vrot.lane.b32.xlu0 %v3265_v6, %s5380_s24  ;;  %1334 = vrot.lane.b32.xlu1 %v3265_v6, %s5648_s25 }
 0x5cc   : > { %v3617_v15 = vpop.permute.xlu1 %994 }
 0x5cd   : > { %5649 = vst [vmem:[#allocation121_spill] sm:$0xff] %v3617_v15  ;;  %v3633_v15 = vpop.permute.xlu0 %924 }
 0x5ce   : > { %1428 = vrot.lane.b32.xlu0 %v3269_v7, %s5380_s24  ;;  %1338 = vrot.lane.b32.xlu1 %v3269_v7, %s5648_s25  ;;  %5654 = vst [vmem:[#allocation125_spill] sm:$0xff] %v3633_v15  ;;  %s5655_s24 = smov 43   ;;  %s5395_s25 = smov 27  }
 0x5d0   : > { %v3625_v14 = vpop.permute.xlu1 %1010 }
 0x5d1   : > { %5651 = vst [vmem:[#allocation123_spill] sm:$0xff] %v3625_v14  ;;  %v3645_v14 = vpop.permute.xlu0 %940 }
 0x5d2   : > { %1444 = vrot.lane.b32.xlu0 %v3277_v8, %s5382_s27  ;;  %1354 = vrot.lane.b32.xlu1 %v3277_v8, %s5652_s9  ;;  %5657 = vst [vmem:[#allocation127_spill] sm:$0xff] %v3645_v14  ;;  %s5389_s27 = smov 28   ;;  %s5659_s9 = smov 42  }
 0x5d4   : > { %v3631_v0 = vpop.permute.xlu1 %1014 }
 0x5d5   : > { %5653 = vst [vmem:[#allocation124_spill] sm:$0xff] %v3631_v0 }
 0x5d6   : > { %1460 = vrot.lane.b32.xlu0 %v3265_v6, %s5386_s30  ;;  %1370 = vrot.lane.b32.xlu1 %v3265_v6, %s5655_s24 }
 0x5d8   : > { %v3639_v3 = vpop.permute.xlu1 %1030 }
 0x5d9   : > { %5656 = vst [vmem:[#allocation126_spill] sm:$0xff] %v3639_v3  ;;  %v3655_v3 = vpop.permute.xlu0 %956 }
 0x5da   : > { %1464 = vrot.lane.b32.xlu0 %v3269_v7, %s5386_s30  ;;  %1374 = vrot.lane.b32.xlu1 %v3269_v7, %s5655_s24  ;;  %5661 = vst [vmem:[#allocation130_spill] sm:$0xff] %v3655_v3  ;;  %s5662_s30 = smov 32   ;;  %s5669_s24 = smov 30  }
 0x5dc   : > { %v3647_v0 = vpop.permute.xlu1 %1046 }
 0x5dd   : > { %5658 = vst [vmem:[#allocation128_spill] sm:$0xff] %v3647_v0  ;;  %v3667_v0 = vpop.permute.xlu0 %960 }
 0x5de   : > { %1480 = vrot.lane.b32.xlu0 %v3277_v8, %s5389_s27  ;;  %1390 = vrot.lane.b32.xlu1 %v3277_v8, %s5659_s9  ;;  %5664 = vst [vmem:[#allocation132_spill] sm:$0xff] %v3667_v0  ;;  %s5393_s27 = smov 26   ;;  %s5666_s9 = smov 31  }
 0x5e0   : > { %v3653_v15 = vpop.permute.xlu1 %1050 }
 0x5e1   : > { %5660 = vst [vmem:[#allocation129_spill] sm:$0xff] %v3653_v15 }
 0x5e2   : > { %1496 = vrot.lane.b32.xlu0 %v3265_v6, %s5395_s25  ;;  %1406 = vrot.lane.b32.xlu1 %v3265_v6, %s5662_s30 }
 0x5e4   : > { %v3661_v14 = vpop.permute.xlu1 %1066 }
 0x5e5   : > { %5663 = vst [vmem:[#allocation131_spill] sm:$0xff] %v3661_v14  ;;  %v3677_v14 = vpop.permute.xlu0 %976 }
 0x5e6   : > { %1500 = vrot.lane.b32.xlu0 %v3269_v7, %s5395_s25  ;;  %1410 = vrot.lane.b32.xlu1 %v3269_v7, %s5662_s30  ;;  %5668 = vst [vmem:[#allocation135_spill] sm:$0xff] %v3677_v14  ;;  %s5676_s25 = smov 28  }
 0x5e8   : > { %v3669_v15 = vpop.permute.xlu1 %1082 }
 0x5e9   : > { %5665 = vst [vmem:[#allocation133_spill] sm:$0xff] %v3669_v15  ;;  %v3685_v15 = vpop.permute.xlu0 %992 }
 0x5ea   : > { %1516 = vrot.lane.b32.xlu0 %v3277_v8, %s5393_s27  ;;  %1426 = vrot.lane.b32.xlu1 %v3277_v8, %s5666_s9  ;;  %5671 = vst [vmem:[#allocation137_spill] sm:$0xff] %v3685_v15  ;;  %s5673_s27 = smov 29  }
 0x5ec   : > { %v3675_v3 = vpop.permute.xlu1 %1086 }
 0x5ed   : > { %5667 = vst [vmem:[#allocation134_spill] sm:$0xff] %v3675_v3  ;;  %v3693_v3 = vpop.permute.xlu0 %996 }
 0x5ee   : > { %1442 = vrot.lane.b32.xlu1 %v3265_v6, %s5669_s24  ;;  %5675 = vst [vmem:[#allocation140_spill] sm:$0xff] %v3693_v3  ;;  %v5683_v3 = vcombine.low %v3481_v48, %v3487_v50 }
 0x5f0   : > { %v3681_v5 = vpop.permute.xlu1 %1102  ;;  %v630_v16 = vrot.slane %v5683_v3, %v3233_v52 }
 0x5f1   : > { %5670 = vst [vmem:[#allocation136_spill] sm:$0xff] %v3681_v5  ;;  %v3701_v5 = vpop.permute.xlu0 %1012 }
 0x5f2   : > { %1446 = vrot.lane.b32.xlu1 %v3269_v7, %s5669_s24  ;;  %5678 = vst [vmem:[#allocation142_spill] sm:$0xff] %v3701_v5  ;;  %s5680_s24 = smov 27   ;;  %v637_v5 = vrot.slane %v630_v16, %v3233_v52 }
 0x5f4   : > { %v3687_v0 = vpop.permute.xlu1 %1118 }
 0x5f5   : > { %5672 = vst [vmem:[#allocation138_spill] sm:$0xff] %v3687_v0 }
 0x5f6   : > { %1462 = vrot.lane.b32.xlu1 %v3277_v8, %s5673_s27  ;;  %s5684_s27 = smov 26  }
 0x5f8   : > { %v3691_v63 = vpop.permute.xlu1 %1122 }
 0x5f9   : > { %5674 = vst [vmem:[#allocation139_spill] sm:$0xff] %v3691_v63  ;;  %v3709_v63 = vpop.permute.xlu0 %1028 }
 0x5fa   : > { %1478 = vrot.lane.b32.xlu1 %v3265_v6, %s5676_s25  ;;  %5682 = vst [vmem:[#allocation145_spill] sm:$0xff] %v3709_v63 }
 0x5fc   : > { %v3697_v14 = vpop.permute.xlu1 %1138 }
 0x5fd   : > { %5677 = vst [vmem:[#allocation141_spill] sm:$0xff] %v3697_v14 }
 0x5fe   : > { %1482 = vrot.lane.b32.xlu1 %v3269_v7, %s5676_s25 }
 0x600   : > { %v3703_v15 = vpop.permute.xlu1 %1154 }
 0x601   : > { %5679 = vst [vmem:[#allocation143_spill] sm:$0xff] %v3703_v15  ;;  %v3722_v15 = vpop.permute.xlu0 %1032 }
 0x602   : > { %1498 = vrot.lane.b32.xlu1 %v3277_v8, %s5680_s24  ;;  %5686 = vst [vmem:[#allocation147_spill] sm:$0xff] %v3722_v15  ;;  %s5688_s24 = smov 51  }
 0x604   : > { %v3707_v0 = vpop.permute.xlu1 %1158 }
 0x605   : > { %5681 = vst [vmem:[#allocation144_spill] sm:$0xff] %v3707_v0  ;;  %v3729_v48 = vpop.permute.xlu0 %1048 }
 0x606   : > { %1514 = vrot.lane.b32.xlu1 %v3265_v6, %s5684_s27  ;;  %5690 = vst [vmem:[#allocation150_spill] sm:$0xff] %v3729_v48 }
 0x608   : > { %v3717_v14 = vpop.permute.xlu1 %1174 }
 0x609   : > { %5685 = vst [vmem:[#allocation146_spill] sm:$0xff] %v3717_v14  ;;  %v3733_v50 = vpop.permute.xlu0 %1064 }
 0x60a   : > { %1518 = vrot.lane.b32.xlu1 %v3269_v7, %s5684_s27  ;;  %5692 = vst [vmem:[#allocation152_spill] sm:$0xff] %v3733_v50  ;;  %s5738_s27 = smov 126  }
 0x60c   : > { %v3724_v0 = vpop.permute.xlu1 %1190 }
 0x60d   : > { %5687 = vst [vmem:[#allocation148_spill] sm:$0xff] %v3724_v0  ;;  %v3739_v52 = vpop.permute.xlu0 %1068 }
 0x60e   : > { %638 = vrot.lane.b32.xlu1 %v637_v5, %s5688_s24  ;;  %5695 = vst [vmem:[#allocation155_spill] sm:$0xff] %v3739_v52  ;;  %s5735_s24 = smov 127  }
 0x610   : > { %v3727_v63 = vpop.permute.xlu1 %1194 }
 0x611   : > { %5689 = vst [vmem:[#allocation149_spill] sm:$0xff] %v3727_v63  ;;  %v3743_v15 = vpop.permute.xlu0 %1084 }
 0x612   : > { %5697 = vst [vmem:[#allocation157_spill] sm:$0xff] %v3743_v15 }
 0x614   : > { %v3731_v3 = vpop.permute.xlu1 %1210 }
 0x615   : > { %5691 = vst [vmem:[#allocation151_spill] sm:$0xff] %v3731_v3  ;;  %v3749_v63 = vpop.permute.xlu0 %1100 }
 0x616   : > { %5700 = vst [vmem:[#allocation160_spill] sm:$0xff] %v3749_v63 }
 0x618   : > { %v3735_v14 = vpop.permute.xlu1 %1226 }
 0x619   : > { %5693 = vst [vmem:[#allocation153_spill] sm:$0xff] %v3735_v14  ;;  %v3753_v3 = vpop.permute.xlu0 %1104 }
 0x61a   : > { %5702 = vst [vmem:[#allocation162_spill] sm:$0xff] %v3753_v3 }
 0x61c   : > { %v3737_v16 = vpop.permute.xlu1 %1230 }
 0x61d   : > { %5694 = vst [vmem:[#allocation154_spill] sm:$0xff] %v3737_v16  ;;  %v3759_v16 = vpop.permute.xlu0 %1120 }
 0x61e   : > { %5705 = vst [vmem:[#allocation165_spill] sm:$0xff] %v3759_v16 }
 0x620   : > { %v3741_v7 = vpop.permute.xlu1 %1246 }
 0x621   : > { %5696 = vst [vmem:[#allocation156_spill] sm:$0xff] %v3741_v7  ;;  %v3763_v7 = vpop.permute.xlu0 %1136 }
 0x622   : > { %5707 = vst [vmem:[#allocation167_spill] sm:$0xff] %v3763_v7 }
 0x624   : > { %v3745_v0 = vpop.permute.xlu1 %1262 }
 0x625   : > { %5698 = vst [vmem:[#allocation158_spill] sm:$0xff] %v3745_v0 }
 0x628   : > { %v3747_v5 = vpop.permute.xlu1 %1266 }
 0x629   : > { %5699 = vst [vmem:[#allocation159_spill] sm:$0xff] %v3747_v5  ;;  %v3769_v5 = vpop.permute.xlu0 %1140 }
 0x62a   : > { %5710 = vst [vmem:[#allocation170_spill] sm:$0xff] %v3769_v5 }
 0x62c   : > { %v3751_v48 = vpop.permute.xlu1 %1282 }
 0x62d   : > { %5701 = vst [vmem:[#allocation161_spill] sm:$0xff] %v3751_v48  ;;  %v3773_v48 = vpop.permute.xlu0 %1156 }
 0x62e   : > { %5712 = vst [vmem:[#allocation172_spill] sm:$0xff] %v3773_v48 }
 0x630   : > { %v3755_v50 = vpop.permute.xlu1 %1298 }
 0x631   : > { %5703 = vst [vmem:[#allocation163_spill] sm:$0xff] %v3755_v50 }
 0x634   : > { %v3757_v14 = vpop.permute.xlu1 %1302 }
 0x635   : > { %5704 = vst [vmem:[#allocation164_spill] sm:$0xff] %v3757_v14  ;;  %v3779_v14 = vpop.permute.xlu0 %1172 }
 0x636   : > { %5715 = vst [vmem:[#allocation175_spill] sm:$0xff] %v3779_v14 }
 0x638   : > { %v3761_v52 = vpop.permute.xlu1 %1318 }
 0x639   : > { %5706 = vst [vmem:[#allocation166_spill] sm:$0xff] %v3761_v52  ;;  %v3783_v52 = vpop.permute.xlu0 %1176 }
 0x63a   : > { %5717 = vst [vmem:[#allocation177_spill] sm:$0xff] %v3783_v52 }
 0x63c   : > { %v3765_v15 = vpop.permute.xlu1 %1334 }
 0x63d   : > { %5708 = vst [vmem:[#allocation168_spill] sm:$0xff] %v3765_v15 }
 0x640   : > { %v3767_v0 = vpop.permute.xlu1 %1338 }
 0x641   : > { %5709 = vst [vmem:[#allocation169_spill] sm:$0xff] %v3767_v0  ;;  %v3789_v0 = vpop.permute.xlu0 %1192 }
 0x642   : > { %5720 = vst [vmem:[#allocation180_spill] sm:$0xff] %v3789_v0 }
 0x644   : > { %v3771_v63 = vpop.permute.xlu1 %1354 }
 0x645   : > { %5711 = vst [vmem:[#allocation171_spill] sm:$0xff] %v3771_v63  ;;  %v3793_v63 = vpop.permute.xlu0 %1208 }
 0x646   : > { %5722 = vst [vmem:[#allocation182_spill] sm:$0xff] %v3793_v63 }
 0x648   : > { %v3775_v3 = vpop.permute.xlu1 %1370 }
 0x649   : > { %5713 = vst [vmem:[#allocation173_spill] sm:$0xff] %v3775_v3 }
 0x64c   : > { %v3777_v50 = vpop.permute.xlu1 %1374 }
 0x64d   : > { %5714 = vst [vmem:[#allocation174_spill] sm:$0xff] %v3777_v50  ;;  %v3799_v50 = vpop.permute.xlu0 %1212 }
 0x64e   : > { %5725 = vst [vmem:[#allocation185_spill] sm:$0xff] %v3799_v50 }
 0x650   : > { %v3781_v16 = vpop.permute.xlu1 %1390 }
 0x651   : > { %5716 = vst [vmem:[#allocation176_spill] sm:$0xff] %v3781_v16  ;;  %v3803_v16 = vpop.permute.xlu0 %1228 }
 0x652   : > { %5727 = vst [vmem:[#allocation187_spill] sm:$0xff] %v3803_v16 }
 0x654   : > { %v3785_v7 = vpop.permute.xlu1 %1406 }
 0x655   : > { %5718 = vst [vmem:[#allocation178_spill] sm:$0xff] %v3785_v7 }
 0x658   : > { %v3787_v15 = vpop.permute.xlu1 %1410 }
 0x659   : > { %5719 = vst [vmem:[#allocation179_spill] sm:$0xff] %v3787_v15  ;;  %v3809_v15 = vpop.permute.xlu0 %1244 }
 0x65c   : > { %v3791_v5 = vpop.permute.xlu1 %1426 }
 0x65d   : > { %5721 = vst [vmem:[#allocation181_spill] sm:$0xff] %v3791_v5  ;;  %v3813_v5 = vpop.permute.xlu0 %1248 }
 0x660   : > { %v3795_v48 = vpop.permute.xlu1 %1442 }
 0x661   : > { %5723 = vst [vmem:[#allocation183_spill] sm:$0xff] %v3795_v48 }
 0x664   : > { %v3797_v3 = vpop.permute.xlu1 %1446 }
 0x665   : > { %5724 = vst [vmem:[#allocation184_spill] sm:$0xff] %v3797_v3  ;;  %v3819_v3 = vpop.permute.xlu0 %1264 }
 0x668   : > { %v3801_v14 = vpop.permute.xlu1 %1462 }
 0x669   : > { %5726 = vst [vmem:[#allocation186_spill] sm:$0xff] %v3801_v14  ;;  %v3822_v17 = vpop.permute.xlu0 %1280 }
 0x66c   : > { %v3805_v52 = vpop.permute.xlu1 %1478 }
 0x66d   : > { %5728 = vst [vmem:[#allocation188_spill] sm:$0xff] %v3805_v52 }
 0x670   : > { %v3807_v7 = vpop.permute.xlu1 %1482 }
 0x671   : > { %5729 = vst [vmem:[#allocation189_spill] sm:$0xff] %v3807_v7 }
 0x674   : > { %v3811_v0 = vpop.permute.xlu1 %1498 }
 0x675   : > { %5730 = vst [vmem:[#allocation190_spill] sm:$0xff] %v3811_v0  ;;  %v3829_v0 = vpop.permute.xlu0 %1284 }
 0x676   : > { %5733 = vst [vmem:[#allocation193_spill] sm:$0xff] %v3829_v0 }
 0x678   : > { %v3815_v63 = vpop.permute.xlu1 %1514 }
 0x679   : > { %5731 = vst [vmem:[#allocation191_spill] sm:$0xff] %v3815_v63 }
 0x67c   : > { %v3817_v48 = vpop.permute.xlu1 %1518 }
 0x67d   : > { %5732 = vst [vmem:[#allocation192_spill] sm:$0xff] %v3817_v48  ;;  %v5734_v48 = vsub.s32 1, %v3230_v47 }
 0x680   : > { %v639_v50 = vpop.permute.xlu1 %638 }
 0x681   : > { %v640_v14 = vrot.slane %v639_v50, 7 }
 0x683   : > { %v641_v16 = vsel %vm613_vm6, %v640_v14, %v639_v50  ;;  %v3842_v14 = vpop.permute.xlu0 %1300  ;;  %vm5429_vm6 = vcmask 1006592  }
 0x684   : > { %644 = vst.msk [vmem:[#allocation2 + $0x1] ss:$2 sm:$0x7] %vm619_vm15, %v641_v16  ;;  %5736 = vst [vmem:[#allocation194_spill] sm:$0xff] %v3842_v14  ;;  %vm5750_vm15 = vnez %v5520_v24 }
 0x68b   : > { %v1532_v7 = vld [vmem:[#allocation2 + $0x1] ss:$2 sm:$0x7] }
 0x68c   : > { %v3832_v63 = vrot.slane %v1532_v7, %v3260_v62  ;;  %v3836_v52 = vrot.slane %v1532_v7, %v5734_v48  ;;  %v3846_v58 = vrot.slane %v1532_v7, %v5737_v57  ;;  %v3852_v48 = vpop.permute.xlu0 %1316  ;;  %v675_v62 = vsel %vm5427_vm14, %v3391_v9, %v3397_v10 }
 0x68d   : > { %5739 = vst [vmem:[#allocation195_spill] sm:$0xff] %v3852_v48  ;;  %v679_v9 = vsel %vm5746_vm7, %v675_v62, 0.0  ;;  %v694_v48 = vsel %vm5426_vm13, %v3415_v13, %v3421_v32  ;;  %v711_v62 = vsel %vm5425_vm1, %v3427_v35, %v3435_v37  ;;  %v717_v35 = vstv %s2890_s11 }
 0x68e   : > { %1557 = vrot.lane.b32.xlu1 %v3836_v52, %s5735_s24  ;;  %1555 = vrot.lane.b32.xlu0 %v3832_v63, %s5735_s24 }
 0x690   : > { %v3862_v47 = vpop.permute.xlu0 %1320 }
 0x691   : > { %5740 = vst [vmem:[#allocation196_spill] sm:$0xff] %v3862_v47  ;;  %v659_v47 = vstv %s2879_s7 }
 0x692   : > { %1572 = vrot.lane.b32.xlu1 %v3832_v63, %s5738_s27  ;;  %1559 = vrot.lane.b32.xlu0 %v3846_v58, %s5735_s24  ;;  %s5817_s24 = smov 93  }
 0x694   : > { %v3868_v50 = vpop.permute.xlu0 %1336 }
 0x695   : > { %5741 = vst [vmem:[#allocation197_spill] sm:$0xff] %v3868_v50  ;;  %v681_v50 = vstv %s2881_s8 }
 0x696   : > { %1576 = vrot.lane.b32.xlu1 %v3846_v58, %s5738_s27  ;;  %1574 = vrot.lane.b32.xlu0 %v3836_v52, %s5738_s27  ;;  %v682_v14 = vmul.f32 %v681_v50, %v679_v9  ;;  %v715_v9 = vsel %vm5750_vm15, %v711_v62, 0.0  ;;  %v753_v62 = vstv %s2904_s17  ;;  %s5781_s27 = sld [smem:[#allocation17_spill]] }
 0x698   : > { %v3878_v16 = vpop.permute.xlu0 %1352 }
 0x699   : > { %5742 = vst [vmem:[#allocation198_spill] sm:$0xff] %v3878_v16 }
 0x69a   : > { %1591 = vrot.lane.b32.xlu1 %v3836_v52, %s5597_s6  ;;  %1589 = vrot.lane.b32.xlu0 %v3832_v63, %s5597_s6 }
 0x69c   : > { %v3884_v7 = vpop.permute.xlu0 %1356 }
 0x69d   : > { %5743 = vst [vmem:[#allocation199_spill] sm:$0xff] %v3884_v7  ;;  %v676_v7 = vsel %vm5427_vm14, %v3397_v10, %v3403_v11  ;;  %v657_v10 = vsel %vm5747_vm2, %v3265_v6, 0.0  ;;  %v658_v6 = vsel %vm5749_vm8, %v3277_v8, 0.0  ;;  %v698_v8 = vsel %vm3029_vm4, %v694_v48, 0.0 }
 0x69e   : > { %1606 = vrot.lane.b32.xlu1 %v3832_v63, %s5598_s3  ;;  %1593 = vrot.lane.b32.xlu0 %v3846_v58, %s5597_s6  ;;  %v680_v11 = vsel %vm3003_vm11, %v676_v7, 0.0  ;;  %v712_v7 = vsel %vm5425_vm1, %v3435_v37, %v3429_v38  ;;  %v729_v38 = vsel %vm5428_vm3, %v3443_v39, %v3441_v36  ;;  %v661_v0 = vmul.f32 %v659_v47, %v658_v6  ;;  %s5813_s6 = sld [smem:[#allocation23_spill]] }
 0x69f   : > { %v683_v32 = vmul.f32 %v681_v50, %v680_v11  ;;  %vm5751_vm1 = vnez %v5524_v25  ;;  %v730_v48 = vsel %vm5428_vm3, %v3441_v36, %v3449_v34  ;;  %vm5752_vm14 = vnez %v5528_v26 }
 0x6a0   : > { %v3894_v57 = vpop.permute.xlu0 %1372  ;;  %v716_v50 = vsel %vm5751_vm1, %v712_v7, 0.0  ;;  %vm5755_vm1 = vcmask 998400  }
 0x6a1   : > { %5744 = vst [vmem:[#allocation200_spill] sm:$0xff] %v3894_v57  ;;  %v693_v57 = vsel %vm5426_vm13, %v3409_v12, %v3415_v13  ;;  %v699_v12 = vstv %s2888_s10  ;;  %v660_v13 = vmul.f32 %v659_v47, %v657_v10  ;;  %v735_v10 = vstv %s2902_s16  ;;  %vm5756_vm3 = vmmov %vm5755_vm1 }
 0x6a2   : > { %1610 = vrot.lane.b32.xlu1 %v3846_v58, %s5598_s3  ;;  %1608 = vrot.lane.b32.xlu0 %v3836_v52, %s5598_s3  ;;  %v701_v39 = vmul.f32 %v699_v12, %v698_v8  ;;  %v718_v47 = vmul.f32 %v717_v35, %v715_v9  ;;  %v685_v6 = vadd.f32 %v683_v32, %v661_v0  ;;  %vm5754_vm13 = vcmask 1006592   ;;  %s5771_s3 = sld [smem:[#allocation16_spill]] }
 0x6a3   : > { %v684_v11 = vadd.f32 %v682_v14, %v660_v13  ;;  %v733_v14 = vsel %vm5752_vm14, %v729_v38, 0.0  ;;  %v719_v34 = vmul.f32 %v717_v35, %v716_v50  ;;  %v748_v7 = vsel %vm5754_vm13, %v3457_v33, %v3463_v41 }
 0x6a4   : > { %v3909_v16 = vpop.permute.xlu0 %1388  ;;  %v736_v8 = vmul.f32 %v735_v10, %v733_v14  ;;  %v771_v0 = vstv %s2907_s1  ;;  %v766_v32 = vsel %vm5756_vm3, %v3473_v44, %v3471_v43  ;;  %vm5757_vm13 = vcmask 916480  }
 0x6a5   : > { %5745 = vst [vmem:[#allocation201_spill] sm:$0xff] %v3909_v16  ;;  %v697_v16 = vsel %vm5748_vm0, %v693_v57, 0.0  ;;  %v752_v43 = vsel %vm3089_vm12, %v748_v7, 0.0  ;;  %v770_v50 = vsel %vm3107_vm9, %v766_v32, 0.0  ;;  %vm5431_vm3 = vcmask 900096  }
 0x6a6   : > { %1625 = vrot.lane.b32.xlu1 %v3836_v52, %s5599_s12  ;;  %1623 = vrot.lane.b32.xlu0 %v3832_v63, %s5599_s12  ;;  %v700_v57 = vmul.f32 %v699_v12, %v697_v16  ;;  %v747_v16 = vsel %vm5429_vm6, %v3451_v40, %v3457_v33  ;;  %vm5753_vm6 = vnez %v5532_v27  ;;  %v765_v12 = vsel %vm5755_vm1, %v3465_v42, %v3473_v44 }
 0x6a7   : > { %v734_v40 = vsel %vm5753_vm6, %v730_v48, 0.0  ;;  %v751_v13 = vsel %vm3079_vm10, %v747_v16, 0.0  ;;  %v703_v33 = vadd.f32 %v701_v39, %v685_v6  ;;  %v783_v42 = vsel %vm5757_vm13, %v3489_v51, %v3479_v46 }
 0x6a8   : > { %v3951_v37 = vpop.permute.xlu0 %1392  ;;  %v702_v36 = vadd.f32 %v700_v57, %v684_v11  ;;  %vm5430_vm1 = vcmask 908288   ;;  %v737_v57 = vmul.f32 %v735_v10, %v734_v40  ;;  %v754_v44 = vmul.f32 %v753_v62, %v751_v13 }
 0x6a9   : > { %v769_v9 = vsel %vm5758_vm5, %v765_v12, 0.0  ;;  %v721_v38 = vadd.f32 %v719_v34, %v703_v33  ;;  %v789_v11 = vstv %s2909_s18  ;;  %v784_v51 = vsel %vm5757_vm13, %v3479_v46, %v3501_v56 }
 0x6aa   : > { %1640 = vrot.lane.b32.xlu1 %v3832_v63, %s5600_s0  ;;  %1627 = vrot.lane.b32.xlu0 %v3846_v58, %s5599_s12  ;;  %v720_v41 = vadd.f32 %v718_v47, %v702_v36  ;;  %v787_v10 = vsel %vm5747_vm2, %v783_v42, 0.0  ;;  %v801_v16 = vsel %vm5430_vm1, %v3491_v53, %v3513_v60  ;;  %v755_v39 = vmul.f32 %v753_v62, %v752_v43  ;;  %s5800_s12 = sld [smem:[#allocation20_spill]] }
 0x6ab   : > { %v772_v47 = vmul.f32 %v771_v0, %v769_v9  ;;  %v807_v14 = vstv %s2911_s19  ;;  %v802_v46 = vsel %vm5430_vm1, %v3513_v60, %v3499_v55  ;;  %v739_v56 = vadd.f32 %v737_v57, %v721_v38 }
 0x6ac   : > { %v3983_v35 = vpop.permute.xlu0 %1408  ;;  %v738_v48 = vadd.f32 %v736_v8, %v720_v41  ;;  %v773_v36 = vmul.f32 %v771_v0, %v770_v50  ;;  %vm5432_vm13 = vcmask 891904   ;;  %v788_v53 = vsel %vm5749_vm8, %v784_v51, 0.0  ;;  %v5762_v51 = vld [vmem:[#allocation112_spill] sm:$0xff] }
 0x6ad   : > { %v790_v40 = vmul.f32 %v789_v11, %v787_v10  ;;  %v805_v62 = vsel %vm5746_vm7, %v801_v16, 0.0  ;;  %v819_v7 = vsel %vm5431_vm3, %v3523_v45, %v3507_v59  ;;  %v806_v55 = vsel %vm3003_vm11, %v802_v46, 0.0  ;;  %v5763_v10 = vld [vmem:[#allocation105_spill] sm:$0xff] }
 0x6ae   : > { %1644 = vrot.lane.b32.xlu1 %v3846_v58, %s5600_s0  ;;  %1642 = vrot.lane.b32.xlu0 %v3836_v52, %s5600_s0  ;;  %v756_v6 = vadd.f32 %v754_v44, %v738_v48  ;;  %v825_v60 = vstv %s2913_s20  ;;  %v757_v13 = vadd.f32 %v755_v39, %v739_v56  ;;  %v820_v8 = vsel %vm5431_vm3, %v3507_v59, %v3535_v1  ;;  %s5794_s0 = smov 95  }
 0x6af   : > { %v837_v45 = vsel %vm5432_vm13, %v3515_v61, %v3545_v54  ;;  %v791_v0 = vmul.f32 %v789_v11, %v788_v53  ;;  %v808_v32 = vmul.f32 %v807_v14, %v805_v62  ;;  %v823_v33 = vsel %vm5748_vm0, %v819_v7, 0.0  ;;  %v5760_v11 = vld [vmem:[#allocation110_spill] sm:$0xff]  ;;  %v5767_v62 = vld [vmem:[#allocation107_spill] sm:$0xff] }
 0x6b0   : > { %v4015_v34 = vpop.permute.xlu0 %1424  ;;  %v774_v12 = vadd.f32 %v772_v47, %v756_v6  ;;  %v843_v41 = vstv %s2915_s21  ;;  %v775_v42 = vadd.f32 %v773_v36, %v757_v13  ;;  %v809_v43 = vmul.f32 %v807_v14, %v806_v55  ;;  %v5766_v53 = vld [vmem:[#allocation106_spill] sm:$0xff]  ;;  %v5768_v7 = vld [vmem:[#allocation115_spill] sm:$0xff] }
 0x6b1   : > { %v824_v44 = vsel %vm3029_vm4, %v820_v8, 0.0  ;;  %v841_v1 = vsel %vm5750_vm15, %v837_v45, 0.0  ;;  %v838_v59 = vsel %vm5432_vm13, %v3545_v54, %v3521_v4  ;;  %vm5759_vm3 = vcmask 883712   ;;  %v5770_v8 = vld [vmem:[#allocation117_spill] sm:$0xff] }
 0x6b2   : > { %1659 = vrot.lane.b32.xlu1 %v3836_v52, %s5601_s28  ;;  %1657 = vrot.lane.b32.xlu0 %v3832_v63, %s5601_s28  ;;  %v792_v57 = vadd.f32 %v790_v40, %v774_v12  ;;  %v855_v61 = vsel %vm5759_vm3, %v3557_v2, %v3529_v49  ;;  %v826_v38 = vmul.f32 %v825_v60, %v823_v33  ;;  %v861_v50 = vstv %s2917_s2  ;;  %vm5761_vm1 = vmmov %vm5759_vm3 }
 0x6b3   : > { %v856_v48 = vsel %vm5761_vm1, %v3529_v49, %v5760_v11  ;;  %v793_v54 = vadd.f32 %v791_v0, %v775_v42  ;;  %vm5764_vm3 = vcmask 875520   ;;  %vm5434_vm13 = vcmask 867328  }
 0x6b4   : > { %v4050_v9 = vpop.permute.xlu0 %1428  ;;  %v810_v4 = vadd.f32 %v808_v32, %v792_v57  ;;  %v873_v2 = vsel %vm5764_vm3, %v5763_v10, %v5762_v51  ;;  %v827_v16 = vmul.f32 %v825_v60, %v824_v44  ;;  %v844_v39 = vmul.f32 %v843_v41, %v841_v1  ;;  %v5772_v44 = vld [vmem:[#allocation120_spill] sm:$0xff] }
 0x6b5   : > { %vm5765_vm15 = vnez %v5524_v25  ;;  %v859_v14 = vsel %vm5752_vm14, %v855_v61, 0.0  ;;  %v811_v46 = vadd.f32 %v809_v43, %v793_v54  ;;  %v860_v49 = vsel %vm5753_vm6, %v856_v48, 0.0  ;;  %v5773_v1 = vld [vmem:[#allocation108_spill] sm:$0xff]  ;;  %v5776_v48 = vld [vmem:[#allocation109_spill] sm:$0xff] }
 0x6b6   : > { %1674 = vrot.lane.b32.xlu1 %v3832_v63, %s5602_s13  ;;  %1661 = vrot.lane.b32.xlu0 %v3846_v58, %s5601_s28  ;;  %v842_v47 = vsel %vm5765_vm15, %v838_v59, 0.0  ;;  %v879_v56 = vstv %s2919_s22  ;;  %v828_v6 = vadd.f32 %v826_v38, %v810_v4  ;;  %v877_v36 = vsel %vm3079_vm10, %v873_v2, 0.0  ;;  %s5775_s28 = smov 96   ;;  %v5778_v4 = vld [vmem:[#allocation111_spill] sm:$0xff] }
 0x6b7   : > { %v874_v40 = vsel %vm5764_vm3, %v5762_v51, %v5766_v53  ;;  %v891_v55 = vsel %vm5434_vm13, %v5768_v7, %v5767_v62  ;;  %v845_v60 = vmul.f32 %v843_v41, %v842_v47  ;;  %v862_v13 = vmul.f32 %v861_v50, %v859_v14  ;;  %v5779_v51 = vld [vmem:[#allocation122_spill] sm:$0xff]  ;;  %v5785_v7 = vld [vmem:[#allocation113_spill] sm:$0xff] }
 0x6b8   : > { %v897_v12 = vstv %s2921_s23  ;;  %v892_v45 = vsel %vm5434_vm13, %v5767_v62, %v5770_v8  ;;  %v4086_v0 = vpop.permute.xlu0 %1444  ;;  %v829_v32 = vadd.f32 %v827_v16, %v811_v46  ;;  %v846_v33 = vadd.f32 %v844_v39, %v828_v6  ;;  %v5784_v62 = vld [vmem:[#allocation127_spill] sm:$0xff] }
 0x6b9   : > { %v863_v42 = vmul.f32 %v861_v50, %v860_v49  ;;  %v880_v57 = vmul.f32 %v879_v56, %v877_v36  ;;  %v878_v43 = vsel %vm3089_vm12, %v874_v40, 0.0  ;;  %v895_v41 = vsel %vm5758_vm5, %v891_v55, 0.0  ;;  %v5782_v36 = vld [vmem:[#allocation125_spill] sm:$0xff] }
 0x6ba   : > { %1678 = vrot.lane.b32.xlu1 %v3846_v58, %s5602_s13  ;;  %1676 = vrot.lane.b32.xlu0 %v3836_v52, %s5602_s13  ;;  %vm5774_vm3 = vcmask 785408   ;;  %v896_v61 = vsel %vm3107_vm9, %v892_v45, 0.0  ;;  %v847_v50 = vadd.f32 %v845_v60, %v829_v32  ;;  %v864_v11 = vadd.f32 %v862_v13, %v846_v33  ;;  %v5790_v33 = vld [vmem:[#allocation116_spill] sm:$0xff]  ;;  %s5802_s13 = smov 94  }
 0x6bb   : > { %v909_v59 = vsel %vm5774_vm3, %v5773_v1, %v5772_v44  ;;  %vm5777_vm1 = vmmov %vm5774_vm3  ;;  %vm5780_vm3 = vcmask 777216   ;;  %v881_v2 = vmul.f32 %v879_v56, %v878_v43  ;;  %v898_v16 = vmul.f32 %v897_v12, %v895_v41 }
 0x6bc   : > { %v910_v54 = vsel %vm5777_vm1, %v5772_v44, %v5776_v48  ;;  %v927_v10 = vsel %vm5780_vm3, %v5779_v51, %v5778_v4  ;;  %v913_v39 = vsel %vm5747_vm2, %v909_v59, 0.0  ;;  %v933_v47 = vstv %s5771_s3  ;;  %v4111_v6 = vpop.permute.xlu0 %1460  ;;  %vm5783_vm1 = vmmov %vm5780_vm3  ;;  %v5799_v51 = vld [vmem:[#allocation118_spill] sm:$0xff]  ;;  %s5823_s3 = sld [smem:[#allocation25_spill]] }
 0x6bd   : > { %v865_v14 = vadd.f32 %v863_v42, %v847_v50  ;;  %v882_v46 = vadd.f32 %v880_v57, %v864_v11  ;;  %v899_v49 = vmul.f32 %v897_v12, %v896_v61  ;;  %v914_v56 = vsel %vm5749_vm8, %v910_v54, 0.0  ;;  %v5788_v12 = vld [vmem:[#allocation114_spill] sm:$0xff]  ;;  %v5795_v11 = vld [vmem:[#allocation132_spill] sm:$0xff] }
 0x6be   : > { %1693 = vrot.lane.b32.xlu1 %v3836_v52, %s5603_s5  ;;  %1691 = vrot.lane.b32.xlu0 %v3832_v63, %s5603_s5  ;;  %v928_v53 = vsel %vm5783_vm1, %v5778_v4, %v5782_v36  ;;  %v931_v40 = vsel %vm5746_vm7, %v927_v10, 0.0  ;;  %vm5786_vm3 = vcmask 769024   ;;  %v951_v13 = vstv %s5781_s27  ;;  %v5791_v42 = vld [vmem:[#allocation130_spill] sm:$0xff]  ;;  %v5798_v4 = vld [vmem:[#allocation135_spill] sm:$0xff]  ;;  %s5831_s27 = sld [smem:[#allocation27_spill]] }
 0x6bf   : > { %v945_v55 = vsel %vm5786_vm3, %v5785_v7, %v5784_v62  ;;  %vm5789_vm13 = vmmov %vm5786_vm3  ;;  %v883_v45 = vadd.f32 %v881_v2, %v865_v14  ;;  %v900_v32 = vadd.f32 %v898_v16, %v882_v46  ;;  %vm5792_vm8 = vcmask 760832   ;;  %v5801_v46 = vld [vmem:[#allocation119_spill] sm:$0xff]  ;;  %v5804_v7 = vld [vmem:[#allocation121_spill] sm:$0xff] }
 0x6c0   : > { %v946_v8 = vsel %vm5789_vm13, %v5784_v62, %v5788_v12  ;;  %v963_v57 = vsel %vm5792_vm8, %v5791_v42, %v5790_v33  ;;  %vm5436_vm1 = vcmask 752640   ;;  %v932_v41 = vsel %vm3003_vm11, %v928_v53, 0.0  ;;  %v4153_v2 = vpop.permute.xlu0 %1464  ;;  %v5807_v42 = vld [vmem:[#allocation142_spill] sm:$0xff] }
 0x6c1   : > { %v934_v44 = vmul.f32 %v933_v47, %v931_v40  ;;  %v949_v1 = vsel %vm5748_vm0, %v945_v55, 0.0  ;;  %v901_v59 = vadd.f32 %v899_v49, %v883_v45  ;;  %v950_v61 = vsel %vm3029_vm4, %v946_v8, 0.0  ;;  %v5805_v55 = vld [vmem:[#allocation137_spill] sm:$0xff] }
 0x6c2   : > { %1708 = vrot.lane.b32.xlu1 %v3832_v63, %s5604_s15  ;;  %1695 = vrot.lane.b32.xlu0 %v3846_v58, %s5603_s5  ;;  %s5793_s5 = sld [smem:[#allocation19_spill]]  ;;  %vm5437_vm8 = vcmask 744448   ;;  %vm5796_vm13 = vcmask 760832   ;;  %vm5797_vm3 = vnez %v5520_v24  ;;  %v981_v10 = vsel %vm5436_vm1, %v5799_v51, %v5798_v4 }
 0x6c3   : > { %v964_v48 = vsel %vm5796_vm13, %v5790_v33, %v5795_v11  ;;  %v967_v54 = vsel %vm5797_vm3, %v963_v57, 0.0  ;;  %v935_v16 = vmul.f32 %v933_v47, %v932_v41  ;;  %v982_v49 = vsel %vm5436_vm1, %v5798_v4, %v5801_v46  ;;  %v5808_v57 = vld [vmem:[#allocation123_spill] sm:$0xff]  ;;  %v5810_v4 = vld [vmem:[#allocation124_spill] sm:$0xff] }
 0x6c4   : > { %v953_v53 = vmul.f32 %v951_v13, %v950_v61  ;;  %vm5440_vm13 = vcmask 736256   ;;  %v968_v47 = vsel %vm5765_vm15, %v964_v48, 0.0  ;;  %v985_v62 = vsel %vm5752_vm14, %v981_v10, 0.0  ;;  %v4182_v61 = vpop.permute.xlu0 %1480  ;;  %v5811_v10 = vld [vmem:[#allocation126_spill] sm:$0xff] }
 0x6c5   : > { %v1005_v12 = vstv %s5800_s12  ;;  %vm5439_vm1 = vcmask 654336   ;;  %v1018_v51 = vsel %vm5440_vm13, %v5807_v42, %v5810_v4  ;;  %s5845_s12 = sld [smem:[#allocation30_spill]] }
 0x6c6   : > { %1712 = vrot.lane.b32.xlu1 %v3846_v58, %s5604_s15  ;;  %1710 = vrot.lane.b32.xlu0 %v3836_v52, %s5604_s15  ;;  %s5809_s15 = sld [smem:[#allocation22_spill]] }
 0x6c8   : > { %v987_v14 = vstv %s5793_s5  ;;  %s5838_s5 = sld [smem:[#allocation29_spill]] }
 0x6ca   : > { %1727 = vrot.lane.b32.xlu1 %v3836_v52, %s5605_s4  ;;  %1725 = vrot.lane.b32.xlu0 %v3832_v63, %s5605_s4 }
 0x6ce   : > { %1742 = vrot.lane.b32.xlu1 %v3832_v63, %s5606_s29  ;;  %1729 = vrot.lane.b32.xlu0 %v3846_v58, %s5605_s4  ;;  %s5769_s4 = sld [smem:[#allocation15_spill]] }
 0x6d2   : > { %1746 = vrot.lane.b32.xlu1 %v3846_v58, %s5606_s29  ;;  %1744 = vrot.lane.b32.xlu0 %v3836_v52, %s5606_s29  ;;  %s5787_s29 = sld [smem:[#allocation18_spill]] }
 0x6d4   : > { %v915_v38 = vstv %s5769_s4  ;;  %s5818_s4 = sld [smem:[#allocation24_spill]] }
 0x6d5   : > { %v916_v60 = vmul.f32 %v915_v38, %v913_v39  ;;  %v917_v43 = vmul.f32 %v915_v38, %v914_v56  ;;  %v952_v39 = vmul.f32 %v951_v13, %v949_v1  ;;  %v986_v13 = vsel %vm5753_vm6, %v982_v49, 0.0 }
 0x6d6   : > { %1761 = vrot.lane.b32.xlu1 %v3836_v52, %s5607_s14  ;;  %1759 = vrot.lane.b32.xlu0 %v3832_v63, %s5607_s14  ;;  %v989_v48 = vmul.f32 %v987_v14, %v986_v13  ;;  %v1041_v49 = vstv %s5809_s15  ;;  %s5859_s15 = smov 80  }
 0x6d7   : > { %v918_v38 = vadd.f32 %v916_v60, %v900_v32  ;;  %v919_v56 = vadd.f32 %v917_v43, %v901_v59  ;;  %v999_v60 = vsel %vm5437_vm8, %v5805_v55, %v5804_v7  ;;  %v5806_v32 = vld [vmem:[#allocation140_spill] sm:$0xff]  ;;  %v1017_v43 = vsel %vm5440_vm13, %v5808_v57, %v5807_v42 }
 0x6d8   : > { %v969_v50 = vstv %s5787_s29  ;;  %v1000_v33 = vsel %vm5437_vm8, %v5804_v7, %v5806_v32  ;;  %v1003_v1 = vsel %vm3079_vm10, %v999_v60, 0.0  ;;  %vm5441_vm8 = vcmask 646144   ;;  %s5837_s29 = smov 91  }
 0x6d9   : > { %v936_v36 = vadd.f32 %v934_v44, %v918_v38  ;;  %v970_v40 = vmul.f32 %v969_v50, %v967_v54  ;;  %v937_v8 = vadd.f32 %v935_v16, %v919_v56  ;;  %v971_v41 = vmul.f32 %v969_v50, %v968_v47  ;;  %v5812_v16 = vld [vmem:[#allocation145_spill] sm:$0xff]  ;;  %v5814_v56 = vld [vmem:[#allocation147_spill] sm:$0xff]  ;;  %v5815_v47 = vld [vmem:[#allocation150_spill] sm:$0xff] }
 0x6da   : > { %1776 = vrot.lane.b32.xlu1 %v3832_v63, %s5775_s28  ;;  %1763 = vrot.lane.b32.xlu0 %v3846_v58, %s5607_s14  ;;  %s5803_s14 = sld [smem:[#allocation21_spill]]  ;;  %v988_v44 = vmul.f32 %v987_v14, %v985_v62  ;;  %v1004_v50 = vsel %vm3089_vm12, %v1000_v33, 0.0  ;;  %v1021_v54 = vsel %vm5758_vm5, %v1017_v43, 0.0  ;;  %v1006_v46 = vmul.f32 %v1005_v12, %v1003_v1  ;;  %v4216_v33 = vpop.permute.xlu0 %1496 }
 0x6db   : > { %v954_v45 = vadd.f32 %v952_v39, %v936_v36  ;;  %v955_v38 = vadd.f32 %v953_v53, %v937_v8  ;;  %v1035_v39 = vsel %vm5439_vm1, %v5812_v16, %v5811_v10  ;;  %v1036_v14 = vsel %vm5439_vm1, %v5811_v10, %v5814_v56  ;;  %v5827_v56 = vld [vmem:[#allocation133_spill] sm:$0xff] }
 0x6dc   : > { %vm5445_vm5 = vcmask 637952   ;;  %v1007_v7 = vmul.f32 %v1005_v12, %v1004_v50  ;;  %v1022_v60 = vsel %vm3107_vm9, %v1018_v51, 0.0  ;;  %v1039_v13 = vsel %vm5747_vm2, %v1035_v39, 0.0  ;;  %v5820_v12 = vld [vmem:[#allocation129_spill] sm:$0xff]  ;;  %v5824_v51 = vld [vmem:[#allocation155_spill] sm:$0xff] }
 0x6dd   : > { %v972_v11 = vadd.f32 %v970_v40, %v954_v45  ;;  %v973_v36 = vadd.f32 %v971_v41, %v955_v38  ;;  %v5816_v40 = vld [vmem:[#allocation128_spill] sm:$0xff]  ;;  %vm5819_vm1 = vnez %v5502_v20  ;;  %v1059_v32 = vstv %s5813_s6  ;;  %v5821_v41 = vld [vmem:[#allocation131_spill] sm:$0xff]  ;;  %s5860_s6 = sld [smem:[#allocation33_spill]] }
 0x6de   : > { %1780 = vrot.lane.b32.xlu1 %v3846_v58, %s5775_s28  ;;  %1778 = vrot.lane.b32.xlu0 %v3836_v52, %s5775_s28  ;;  %v1053_v62 = vsel %vm5441_vm8, %v5816_v40, %v5815_v47  ;;  %v1040_v45 = vsel %vm5819_vm1, %v1036_v14, 0.0  ;;  %vm5442_vm13 = vcmask 629760   ;;  %v1054_v43 = vsel %vm5441_vm8, %v5815_v47, %v5820_v12  ;;  %s5825_s28 = sld [smem:[#allocation26_spill]] }
 0x6df   : > { %v990_v53 = vadd.f32 %v988_v44, %v972_v11  ;;  %v991_v8 = vadd.f32 %v989_v48, %v973_v36  ;;  %v1057_v57 = vsel %vm5746_vm7, %v1053_v62, 0.0  ;;  %v5822_v44 = vld [vmem:[#allocation152_spill] sm:$0xff]  ;;  %v1042_v11 = vmul.f32 %v1041_v49, %v1039_v13  ;;  %v4250_v13 = vpop.permute.xlu0 %1500 }
 0x6e0   : > { %v1023_v59 = vstv %s5803_s14  ;;  %v1071_v1 = vsel %vm5445_vm5, %v5822_v44, %v5821_v41  ;;  %v1077_v48 = vstv %s5818_s4  ;;  %vm5443_vm1 = vcmask 621568   ;;  %s5855_s14 = sld [smem:[#allocation32_spill]]  ;;  %s5864_s4 = sld [smem:[#allocation35_spill]] }
 0x6e1   : > { %v1024_v55 = vmul.f32 %v1023_v59, %v1021_v54  ;;  %v1008_v42 = vadd.f32 %v1006_v46, %v990_v53  ;;  %v1025_v38 = vmul.f32 %v1023_v59, %v1022_v60  ;;  %v1009_v50 = vadd.f32 %v1007_v7, %v991_v8  ;;  %v5826_v46 = vld [vmem:[#allocation157_spill] sm:$0xff]  ;;  %v5828_v53 = vld [vmem:[#allocation134_spill] sm:$0xff]  ;;  %v5829_v7 = vld [vmem:[#allocation136_spill] sm:$0xff] }
 0x6e2   : > { %1795 = vrot.lane.b32.xlu1 %v3836_v52, %s5794_s0  ;;  %1793 = vrot.lane.b32.xlu0 %v3832_v63, %s5794_s0  ;;  %v1043_v4 = vmul.f32 %v1041_v49, %v1040_v45  ;;  %v1072_v10 = vsel %vm5445_vm5, %v5821_v41, %v5824_v51  ;;  %v1060_v16 = vmul.f32 %v1059_v32, %v1057_v57  ;;  %v1058_v59 = vsel %vm3003_vm11, %v1054_v43, 0.0 }
 0x6e3   : > { %v1026_v54 = vadd.f32 %v1024_v55, %v1008_v42  ;;  %v1075_v39 = vsel %vm5748_vm0, %v1071_v1, 0.0  ;;  %v1089_v14 = vsel %vm5442_vm13, %v5827_v56, %v5826_v46  ;;  %v1095_v36 = vstv %s5823_s3  ;;  %v5830_v55 = vld [vmem:[#allocation160_spill] sm:$0xff]  ;;  %v5832_v1 = vld [vmem:[#allocation162_spill] sm:$0xff]  ;;  %s5867_s3 = smov 79  }
 0x6e4   : > { %v1090_v49 = vsel %vm5442_vm13, %v5826_v46, %v5828_v53  ;;  %vm5444_vm8 = vcmask 613376   ;;  %v1027_v47 = vadd.f32 %v1025_v38, %v1009_v50  ;;  %v1076_v62 = vsel %vm3029_vm4, %v1072_v10, 0.0  ;;  %v5834_v50 = vld [vmem:[#allocation138_spill] sm:$0xff]  ;;  %v5836_v10 = vld [vmem:[#allocation139_spill] sm:$0xff]  ;;  %v5839_v53 = vld [vmem:[#allocation141_spill] sm:$0xff] }
 0x6e5   : > { %v1044_v40 = vadd.f32 %v1042_v11, %v1026_v54  ;;  %v1107_v60 = vsel %vm5443_vm1, %v5830_v55, %v5829_v7  ;;  %v1061_v8 = vmul.f32 %v1059_v32, %v1058_v59  ;;  %v1078_v45 = vmul.f32 %v1077_v48, %v1075_v39  ;;  %v5833_v32 = vld [vmem:[#allocation165_spill] sm:$0xff] }
 0x6e6   : > { %1810 = vrot.lane.b32.xlu1 %v3832_v63, %s5802_s13  ;;  %1797 = vrot.lane.b32.xlu0 %v3846_v58, %s5794_s0  ;;  %v1093_v42 = vsel %vm5797_vm3, %v1089_v14, 0.0  ;;  %v1113_v57 = vstv %s5825_s28  ;;  %v1045_v12 = vadd.f32 %v1043_v4, %v1027_v47  ;;  %v1094_v41 = vsel %vm5765_vm15, %v1090_v49, 0.0  ;;  %v5840_v49 = vld [vmem:[#allocation167_spill] sm:$0xff]  ;;  %s5844_s0 = smov 90   ;;  %s5870_s28 = sld [smem:[#allocation36_spill]] }
 0x6e7   : > { %v1062_v43 = vadd.f32 %v1060_v16, %v1044_v40  ;;  %vm5446_vm13 = vcmask 605184   ;;  %v1079_v44 = vmul.f32 %v1077_v48, %v1076_v62  ;;  %v1108_v38 = vsel %vm5443_vm1, %v5829_v7, %v5832_v1  ;;  %v4284_v40 = vpop.permute.xlu0 %1516 }
 0x6e8   : > { %v1111_v11 = vsel %vm5752_vm14, %v1107_v60, 0.0  ;;  %v1125_v54 = vsel %vm5444_vm8, %v5834_v50, %v5833_v32  ;;  %v1096_v51 = vmul.f32 %v1095_v36, %v1093_v42  ;;  %v1131_v4 = vstv %s5831_s27  ;;  %v5841_v60 = vld [vmem:[#allocation170_spill] sm:$0xff]  ;;  %v5843_v42 = vld [vmem:[#allocation143_spill] sm:$0xff]  ;;  %s5871_s27 = sld [smem:[#allocation37_spill]] }
 0x6e9   : > { %v1126_v16 = vsel %vm5444_vm8, %v5833_v32, %v5836_v10  ;;  %v1063_v48 = vadd.f32 %v1061_v8, %v1045_v12  ;;  %v1080_v59 = vadd.f32 %v1078_v45, %v1062_v43  ;;  %v1097_v39 = vmul.f32 %v1095_v36, %v1094_v41  ;;  %v5842_v45 = vld [vmem:[#allocation172_spill] sm:$0xff] }
 0x6ea   : > { %1814 = vrot.lane.b32.xlu1 %v3846_v58, %s5802_s13  ;;  %1812 = vrot.lane.b32.xlu0 %v3836_v52, %s5802_s13  ;;  %vm5447_vm1 = vcmask 523264   ;;  %v1112_v46 = vsel %vm5753_vm6, %v1108_v38, 0.0  ;;  %v1114_v56 = vmul.f32 %v1113_v57, %v1111_v11  ;;  %v1129_v14 = vsel %vm3079_vm10, %v1125_v54, 0.0  ;;  %s5851_s13 = sld [smem:[#allocation31_spill]] }
 0x6eb   : > { %v1143_v47 = vsel %vm5446_vm13, %v5840_v49, %v5839_v53  ;;  %v1081_v62 = vadd.f32 %v1079_v44, %v1063_v48  ;;  %v1130_v7 = vsel %vm3089_vm12, %v1126_v16, 0.0  ;;  %v1098_v55 = vadd.f32 %v1096_v51, %v1080_v59  ;;  %v5848_v48 = vld [vmem:[#allocation146_spill] sm:$0xff]  ;;  %v5849_v59 = vld [vmem:[#allocation175_spill] sm:$0xff] }
 0x6ec   : > { %v1144_v8 = vsel %vm5446_vm13, %v5839_v53, %v5841_v60  ;;  %v1161_v12 = vsel %vm5447_vm1, %v5843_v42, %v5842_v45  ;;  %vm5449_vm8 = vcmask 515072   ;;  %v1115_v43 = vmul.f32 %v1113_v57, %v1112_v46  ;;  %v5847_v57 = vld [vmem:[#allocation144_spill] sm:$0xff] }
 0x6ed   : > { %v1132_v41 = vmul.f32 %v1131_v4, %v1129_v14  ;;  %vm5846_vm5 = vnez %v5544_v30  ;;  %v1167_v1 = vstv %s5838_s5  ;;  %v1099_v38 = vadd.f32 %v1097_v39, %v1081_v62  ;;  %v5853_v62 = vld [vmem:[#allocation148_spill] sm:$0xff]  ;;  %s5878_s5 = smov 78  }
 0x6ee   : > { %1829 = vrot.lane.b32.xlu1 %v3836_v52, %s5817_s24  ;;  %1827 = vrot.lane.b32.xlu0 %v3832_v63, %s5817_s24  ;;  %v1147_v44 = vsel %vm5846_vm5, %v1143_v47, 0.0  ;;  %v1116_v11 = vadd.f32 %v1114_v56, %v1098_v55  ;;  %v1133_v32 = vmul.f32 %v1131_v4, %v1130_v7  ;;  %vm5450_vm13 = vcmask 506880   ;;  %v5850_v56 = vld [vmem:[#allocation177_spill] sm:$0xff]  ;;  %v5852_v47 = vld [vmem:[#allocation180_spill] sm:$0xff] }
 0x6ef   : > { %v1148_v51 = vsel %vm3107_vm9, %v1144_v8, 0.0  ;;  %v1165_v10 = vsel %vm5747_vm2, %v1161_v12, 0.0  ;;  %v1162_v16 = vsel %vm5447_vm1, %v5842_v45, %v5847_v57  ;;  %v1179_v39 = vsel %vm5449_vm8, %v5849_v59, %v5848_v48  ;;  %v5858_v57 = vld [vmem:[#allocation182_spill] sm:$0xff] }
 0x6f0   : > { %v1185_v46 = vstv %s5845_s12  ;;  %v1180_v14 = vsel %vm5449_vm8, %v5848_v48, %v5850_v56  ;;  %v1117_v53 = vadd.f32 %v1115_v43, %v1099_v38  ;;  %v1134_v49 = vadd.f32 %v1132_v41, %v1116_v11  ;;  %v5856_v11 = vld [vmem:[#allocation149_spill] sm:$0xff]  ;;  %s5891_s12 = smov 77  }
 0x6f1   : > { %v1197_v7 = vsel %vm5450_vm13, %v5853_v62, %v5852_v47  ;;  %vm5451_vm1 = vcmask 498688   ;;  %v1168_v60 = vmul.f32 %v1167_v1, %v1165_v10  ;;  %vm5854_vm2 = vnez %v5502_v20  ;;  %v5857_v10 = vld [vmem:[#allocation151_spill] sm:$0xff] }
 0x6f2   : > { %1844 = vrot.lane.b32.xlu1 %v3832_v63, %s5612_s26  ;;  %1831 = vrot.lane.b32.xlu0 %v3846_v58, %s5817_s24  ;;  %v1166_v8 = vsel %vm5854_vm2, %v1162_v16, 0.0  ;;  %v1183_v45 = vsel %vm5746_vm7, %v1179_v39, 0.0  ;;  %v1135_v43 = vadd.f32 %v1133_v32, %v1117_v53  ;;  %v1184_v41 = vsel %vm3003_vm11, %v1180_v14, 0.0  ;;  %s5861_s24 = sld [smem:[#allocation34_spill]]  ;;  %v5862_v39 = vld [vmem:[#allocation185_spill] sm:$0xff] }
 0x6f3   : > { %vm5452_vm8 = vcmask 490496   ;;  %v1215_v16 = vsel %vm5451_vm1, %v5858_v57, %v5857_v10  ;;  %v1169_v32 = vmul.f32 %v1167_v1, %v1166_v8  ;;  %v1186_v48 = vmul.f32 %v1185_v46, %v1183_v45  ;;  %v5865_v8 = vld [vmem:[#allocation187_spill] sm:$0xff]  ;;  %v5866_v45 = vld [vmem:[#allocation153_spill] sm:$0xff] }
 0x6f4   : > { %v1221_v59 = vstv %s5855_s14  ;;  %v1187_v53 = vmul.f32 %v1185_v46, %v1184_v41  ;;  %v1219_v1 = vsel %vm5797_vm3, %v1215_v16, 0.0  ;;  %s5900_s14 = sld [smem:[#allocation42_spill]] }
 0x6f5   : > { %v1222_v16 = vmul.f32 %v1221_v59, %v1219_v1 }
 0x6f6   : > { %1848 = vrot.lane.b32.xlu1 %v3846_v58, %s5612_s26  ;;  %1846 = vrot.lane.b32.xlu0 %v3836_v52, %s5612_s26  ;;  %s5835_s26 = sld [smem:[#allocation28_spill]] }
 0x6fa   : > { %1863 = vrot.lane.b32.xlu1 %v3836_v52, %s5837_s29  ;;  %1861 = vrot.lane.b32.xlu0 %v3832_v63, %s5837_s29 }
 0x6fc   : > { %v1149_v36 = vstv %s5835_s26  ;;  %s5874_s26 = sld [smem:[#allocation38_spill]] }
 0x6fd   : > { %v1150_v4 = vmul.f32 %v1149_v36, %v1147_v44  ;;  %v1151_v55 = vmul.f32 %v1149_v36, %v1148_v51  ;;  %v1203_v44 = vstv %s5851_s13  ;;  %v1201_v36 = vsel %vm5748_vm0, %v1197_v7, 0.0  ;;  %s5892_s13 = sld [smem:[#allocation41_spill]] }
 0x6fe   : > { %1878 = vrot.lane.b32.xlu1 %v3832_v63, %s5844_s0  ;;  %1865 = vrot.lane.b32.xlu0 %v3846_v58, %s5837_s29  ;;  %v1198_v51 = vsel %vm5450_vm13, %v5852_v47, %v5856_v11  ;;  %vm5453_vm13 = vcmask 482304   ;;  %v1204_v62 = vmul.f32 %v1203_v44, %v1201_v36  ;;  %v1233_v11 = vsel %vm5452_vm8, %v5866_v45, %v5865_v8  ;;  %s5877_s29 = sld [smem:[#allocation39_spill]] }
 0x6ff   : > { %v1152_v38 = vadd.f32 %v1150_v4, %v1134_v49  ;;  %v1216_v4 = vsel %vm5451_vm1, %v5857_v10, %v5862_v39  ;;  %v1153_v56 = vadd.f32 %v1151_v55, %v1135_v43  ;;  %v1202_v7 = vsel %vm3029_vm4, %v1198_v51, 0.0  ;;  %v5869_v51 = vld [vmem:[#allocation156_spill] sm:$0xff] }
 0x700   : > { %v4302_v50 = vpop.permute.xlu1 %1557  ;;  %v4304_v54 = vpop.permute.xlu0 %1555  ;;  %v1220_v46 = vsel %vm5765_vm15, %v1216_v4, 0.0  ;;  %v1239_v55 = vstv %s5860_s6  ;;  %vm5454_vm1 = vcmask 474112   ;;  %v1251_v10 = vsel %vm5453_vm13, %v3809_v15, %v5869_v51  ;;  %s5905_s6 = sld [smem:[#allocation44_spill]] }
 0x701   : > { %v1170_v14 = vadd.f32 %v1168_v60, %v1152_v38  ;;  %v1257_v60 = vstv %s5861_s24  ;;  %v1171_v43 = vadd.f32 %v1169_v32, %v1153_v56  ;;  %v5868_v38 = vld [vmem:[#allocation154_spill] sm:$0xff]  ;;  %v1205_v57 = vmul.f32 %v1203_v44, %v1202_v7  ;;  %s5912_s24 = smov 76  }
 0x702   : > { %1882 = vrot.lane.b32.xlu1 %v3846_v58, %s5844_s0  ;;  %1880 = vrot.lane.b32.xlu0 %v3836_v52, %s5844_s0  ;;  %v1234_v36 = vsel %vm5452_vm8, %v5865_v8, %v5868_v38  ;;  %v1237_v39 = vsel %vm5752_vm14, %v1233_v11, 0.0  ;;  %v1275_v4 = vstv %s5864_s4  ;;  %v1223_v56 = vmul.f32 %v1221_v59, %v1220_v46  ;;  %v5872_v7 = vld [vmem:[#allocation158_spill] sm:$0xff]  ;;  %v5875_v46 = vld [vmem:[#allocation161_spill] sm:$0xff]  ;;  %s5884_s0 = sld [smem:[#allocation40_spill]]  ;;  %s5913_s4 = sld [smem:[#allocation45_spill]] }
 0x703   : > { %v1188_v41 = vadd.f32 %v1186_v48, %v1170_v14  ;;  %v1189_v32 = vadd.f32 %v1187_v53, %v1171_v43  ;;  %vm5456_vm8 = vcmask 392192   ;;  %v1238_v14 = vsel %vm5753_vm6, %v1234_v36, 0.0  ;;  %v5873_v53 = vld [vmem:[#allocation159_spill] sm:$0xff] }
 0x704   : > { %v4331_v42 = vpop.permute.xlu1 %1572  ;;  %v4333_v12 = vpop.permute.xlu0 %1559  ;;  %v1252_v15 = vsel %vm5453_vm13, %v5869_v51, %v3813_v5  ;;  %v1255_v44 = vsel %vm3079_vm10, %v1251_v10, 0.0  ;;  %v1269_v1 = vsel %vm5454_vm1, %v5872_v7, %v3819_v3  ;;  %v1240_v59 = vmul.f32 %v1239_v55, %v1237_v39 }
 0x705   : > { %v1206_v48 = vadd.f32 %v1204_v62, %v1188_v41  ;;  %v1270_v62 = vsel %vm5454_vm1, %v3819_v3, %v5873_v53  ;;  %v1293_v5 = vstv %s5870_s28  ;;  %v1207_v8 = vadd.f32 %v1205_v57, %v1189_v32  ;;  %v5879_v32 = vld [vmem:[#allocation193_spill] sm:$0xff]  ;;  %s5921_s28 = smov 75  }
 0x706   : > { %1897 = vrot.lane.b32.xlu1 %v3836_v52, %s5859_s15  ;;  %1895 = vrot.lane.b32.xlu0 %v3832_v63, %s5859_s15  ;;  %v1287_v43 = vsel %vm5456_vm8, %v3822_v17, %v5875_v46  ;;  %v1311_v41 = vstv %s5871_s27  ;;  %v1241_v51 = vmul.f32 %v1239_v55, %v1238_v14  ;;  %v1256_v10 = vsel %vm3089_vm12, %v1252_v15, 0.0  ;;  %v5882_v15 = vld [vmem:[#allocation163_spill] sm:$0xff]  ;;  %s5927_s27 = sld [smem:[#allocation47_spill]] }
 0x707   : > { %v1224_v11 = vadd.f32 %v1222_v16, %v1206_v48  ;;  %v1258_v3 = vmul.f32 %v1257_v60, %v1255_v44  ;;  %v1273_v39 = vsel %vm5846_vm5, %v1269_v1, 0.0  ;;  %v1225_v57 = vadd.f32 %v1223_v56, %v1207_v8  ;;  %v5881_v56 = vld [vmem:[#allocation194_spill] sm:$0xff] }
 0x708   : > { %v4354_v49 = vpop.permute.xlu1 %1576  ;;  %v4356_v47 = vpop.permute.xlu0 %1574  ;;  %v1274_v16 = vsel %vm3107_vm9, %v1270_v62, 0.0  ;;  %v1329_v17 = vstv %s5874_s26  ;;  %v1288_v48 = vsel %vm5456_vm8, %v5875_v46, %v5879_v32  ;;  %vm5880_vm13 = vnez %v5494_v18  ;;  %v5886_v46 = vld [vmem:[#allocation164_spill] sm:$0xff]  ;;  %s5940_s26 = smov 74  }
 0x709   : > { %5863 = vst [vmem:[#allocation110_spill] sm:$0xff] %v4354_v49  ;;  %v1242_v55 = vadd.f32 %v1240_v59, %v1224_v11  ;;  %v1291_v14 = vsel %vm5880_vm13, %v1287_v43, 0.0  ;;  %vm5883_vm5 = vcmask 384000   ;;  %v1259_v7 = vmul.f32 %v1257_v60, %v1256_v10  ;;  %v5888_v10 = vld [vmem:[#allocation166_spill] sm:$0xff] }
 0x70a   : > { %1912 = vrot.lane.b32.xlu1 %v3832_v63, %s5867_s3  ;;  %1899 = vrot.lane.b32.xlu0 %v3846_v58, %s5859_s15  ;;  %v1305_v44 = vsel %vm5883_vm5, %v5882_v15, %v5881_v56  ;;  %v1276_v1 = vmul.f32 %v1275_v4, %v1273_v39  ;;  %v1243_v59 = vadd.f32 %v1241_v51, %v1225_v57  ;;  %vm5887_vm8 = vmmov %vm5883_vm5  ;;  %v1292_v32 = vsel %vm5854_vm2, %v1288_v48, 0.0  ;;  %v5889_v39 = vld [vmem:[#allocation195_spill] sm:$0xff]  ;;  %v5895_v48 = vld [vmem:[#allocation197_spill] sm:$0xff]  ;;  %s5901_s15 = sld [smem:[#allocation43_spill]] }
 0x70b   : > { %v1260_v11 = vadd.f32 %v1258_v3, %v1242_v55  ;;  %v1306_v43 = vsel %vm5887_vm8, %v5881_v56, %v5886_v46  ;;  %v1294_v15 = vmul.f32 %v1293_v5, %v1291_v14  ;;  %v1309_v60 = vsel %vm5746_vm7, %v1305_v44, 0.0  ;;  %v5896_v14 = vld [vmem:[#allocation168_spill] sm:$0xff] }
 0x70c   : > { %v4382_v45 = vpop.permute.xlu1 %1591  ;;  %v4384_v49 = vpop.permute.xlu0 %1589  ;;  %vm5890_vm5 = vcmask 375808   ;;  %vm5459_vm1 = vcmask 359424   ;;  %v1365_v3 = vstv %s5884_s0  ;;  %vm5460_vm2 = vcmask 351232   ;;  %s5949_s0 = smov 64  }
 0x70d   : > { %v1323_v53 = vsel %vm5890_vm5, %v5889_v39, %v5888_v10  ;;  %vm5894_vm8 = vmmov %vm5890_vm5  ;;  %v1261_v57 = vadd.f32 %v1259_v7, %v1243_v59  ;;  %v1310_v55 = vsel %vm3003_vm11, %v1306_v43, 0.0  ;;  %vm5897_vm5 = vcmask 367616  }
 0x70e   : > { %1916 = vrot.lane.b32.xlu1 %v3846_v58, %s5867_s3  ;;  %1914 = vrot.lane.b32.xlu0 %v3836_v52, %s5867_s3  ;;  %v1341_v56 = vsel %vm5897_vm5, %v5896_v14, %v5895_v48  ;;  %v1295_v39 = vmul.f32 %v1293_v5, %v1292_v32  ;;  %v1383_v7 = vstv %s5892_s13  ;;  %v1313_v5 = vmul.f32 %v1311_v41, %v1310_v55  ;;  %v5902_v32 = vld [vmem:[#allocation169_spill] sm:$0xff]  ;;  %s5919_s3 = sld [smem:[#allocation46_spill]]  ;;  %s5954_s13 = sld [smem:[#allocation50_spill]] }
 0x70f   : > { %v1345_v43 = vsel %vm5797_vm3, %v1341_v56, 0.0 }
 0x710   : > { %v4408_v38 = vpop.permute.xlu1 %1606  ;;  %v4410_v36 = vpop.permute.xlu0 %1593 }
 0x711   : > { %5876 = vst [vmem:[#allocation112_spill] sm:$0xff] %v4408_v38  ;;  %v1277_v38 = vmul.f32 %v1275_v4, %v1274_v16  ;;  %v5893_v4 = vld [vmem:[#allocation196_spill] sm:$0xff]  ;;  %v1278_v16 = vadd.f32 %v1276_v1, %v1260_v11 }
 0x712   : > { %1931 = vrot.lane.b32.xlu1 %v3836_v52, %s5878_s5  ;;  %1929 = vrot.lane.b32.xlu0 %v3832_v63, %s5878_s5  ;;  %v1324_v51 = vsel %vm5894_vm8, %v5888_v10, %v5893_v4  ;;  %v1327_v10 = vsel %vm5748_vm0, %v1323_v53, 0.0  ;;  %v5903_v53 = vld [vmem:[#allocation171_spill] sm:$0xff]  ;;  %vm5917_vm8 = vcmask 343040  }
 0x713   : > { %v1279_v1 = vadd.f32 %v1277_v38, %v1261_v57  ;;  %v1296_v59 = vadd.f32 %v1294_v15, %v1278_v16  ;;  %v1328_v11 = vsel %vm3029_vm4, %v1324_v51, 0.0  ;;  %v1342_v38 = vsel %vm5897_vm5, %v5895_v48, %v5902_v32  ;;  %v5904_v15 = vld [vmem:[#allocation198_spill] sm:$0xff]  ;;  %v5910_v57 = vld [vmem:[#allocation200_spill] sm:$0xff] }
 0x714   : > { %v4432_v62 = vpop.permute.xlu1 %1610  ;;  %v4434_v8 = vpop.permute.xlu0 %1608  ;;  %v1330_v4 = vmul.f32 %v1329_v17, %v1327_v10  ;;  %v1401_v51 = vstv %s5900_s14  ;;  %v1331_v56 = vmul.f32 %v1329_v17, %v1328_v11  ;;  %v5909_v32 = vstv %s5877_s29  ;;  %v5915_v11 = vld [vmem:[#allocation176_spill] sm:$0xff]  ;;  %s5955_s14 = sld [smem:[#allocation51_spill]] }
 0x715   : > { %5885 = vst [vmem:[#allocation105_spill] sm:$0xff] %v4432_v62  ;;  %v1312_v62 = vmul.f32 %v1311_v41, %v1309_v60  ;;  %v1359_v60 = vsel %vm5459_vm1, %v5904_v15, %v5903_v53  ;;  %v1297_v41 = vadd.f32 %v1295_v39, %v1279_v1  ;;  %v1346_v10 = vsel %vm5765_vm15, %v1342_v38, 0.0  ;;  %v5914_v1 = vld [vmem:[#allocation174_spill] sm:$0xff] }
 0x716   : > { %1946 = vrot.lane.b32.xlu1 %v3832_v63, %s5891_s12  ;;  %1933 = vrot.lane.b32.xlu0 %v3846_v58, %s5878_s5  ;;  %v1363_v15 = vsel %vm5752_vm14, %v1359_v60, 0.0  ;;  %vm5924_vm5 = vcmask 261120   ;;  %s5944_s5 = sld [smem:[#allocation48_spill]] }
 0x717   : > { %v1314_v55 = vadd.f32 %v1312_v62, %v1296_v59  ;;  %v1315_v17 = vadd.f32 %v1313_v5, %v1297_v41  ;;  %v1437_v62 = vstv %s5905_s6  ;;  %v1378_v59 = vsel %vm5460_vm2, %v5910_v57, %v5914_v1 }
 0x718   : > { %v4459_v44 = vpop.permute.xlu1 %1625  ;;  %v4461_v46 = vpop.permute.xlu0 %1623  ;;  %v5918_v5 = vmov %v5909_v32  ;;  %v1366_v41 = vmul.f32 %v1365_v3, %v1363_v15  ;;  %v1382_v15 = vsel %vm3089_vm12, %v1378_v59, 0.0  ;;  %v1473_v1 = vstv %s5919_s3 }
 0x719   : > { %5898 = vst [vmem:[#allocation106_spill] sm:$0xff] %v4459_v44  ;;  %5899 = vst [vmem:[#allocation107_spill] sm:$0xff] %v4461_v46  ;;  %v5908_v46 = vld [vmem:[#allocation199_spill] sm:$0xff]  ;;  %v1348_v44 = vmul.f32 %v5909_v32, %v1345_v43  ;;  %v5916_v43 = vld [vmem:[#allocation201_spill] sm:$0xff] }
 0x71a   : > { %1950 = vrot.lane.b32.xlu1 %v3846_v58, %s5891_s12  ;;  %1948 = vrot.lane.b32.xlu0 %v3836_v52, %s5891_s12  ;;  %v1360_v48 = vsel %vm5459_vm1, %v5903_v53, %v5908_v46  ;;  %v1332_v46 = vadd.f32 %v1330_v4, %v1314_v55  ;;  %v1395_v38 = vsel %vm5917_vm8, %v5916_v43, %v5915_v11  ;;  %v1455_v55 = vstv %s5913_s4  ;;  %s5950_s12 = sld [smem:[#allocation49_spill]]  ;;  %s5959_s4 = sld [smem:[#allocation52_spill]] }
 0x71b   : > { %v1364_v39 = vsel %vm5753_vm6, %v1360_v48, 0.0  ;;  %v1333_v48 = vadd.f32 %v1331_v56, %v1315_v17  ;;  %vm5931_vm1 = vnez %v5502_v20 }
 0x71c   : > { %v4482_v16 = vpop.permute.xlu1 %1640  ;;  %v4484_v14 = vpop.permute.xlu0 %1627  ;;  %v1350_v32 = vadd.f32 %v1348_v44, %v1332_v46  ;;  %v5923_v44 = vld [vmem:[#allocation178_spill] sm:$0xff] }
 0x71d   : > { %5906 = vst [vmem:[#allocation115_spill] sm:$0xff] %v4482_v16  ;;  %5907 = vst [vmem:[#allocation117_spill] sm:$0xff] %v4484_v14  ;;  %v5911_v16 = vld [vmem:[#allocation173_spill] sm:$0xff]  ;;  %v1413_v56 = vsel %vm5924_vm5, %v5923_v44, %v3983_v35 }
 0x71e   : > { %v1377_v14 = vsel %vm5460_vm2, %v5911_v16, %v5910_v57  ;;  %1965 = vrot.lane.b32.xlu1 %v3836_v52, %s5912_s24  ;;  %1963 = vrot.lane.b32.xlu0 %v3832_v63, %s5912_s24  ;;  %v1349_v16 = vmul.f32 %v5918_v5, %v1346_v10  ;;  %vm5920_vm2 = vmmov %vm5917_vm8  ;;  %v1367_v10 = vmul.f32 %v1365_v3, %v1364_v39 }
 0x71f   : > { %v1381_v4 = vsel %vm3079_vm10, %v1377_v14, 0.0  ;;  %v1396_v57 = vsel %vm5920_vm2, %v5915_v11, %v3951_v37  ;;  %vm5922_vm8 = vnez %v5544_v30  ;;  %v5925_v37 = vld [vmem:[#allocation179_spill] sm:$0xff]  ;;  %vm5926_vm2 = vmmov %vm5924_vm5  ;;  %v1368_v59 = vadd.f32 %v1366_v41, %v1350_v32 }
 0x720   : > { %v4511_v53 = vpop.permute.xlu1 %1644  ;;  %v4513_v60 = vpop.permute.xlu0 %1642  ;;  %v1399_v14 = vsel %vm5922_vm8, %v1395_v38, 0.0  ;;  %v1384_v17 = vmul.f32 %v1383_v7, %v1381_v4  ;;  %v1414_v46 = vsel %vm5926_vm2, %v3983_v35, %v5925_v37  ;;  %v1351_v39 = vadd.f32 %v1349_v16, %v1333_v48  ;;  %v5928_v38 = vld [vmem:[#allocation181_spill] sm:$0xff] }
 0x721   : > { %v1400_v43 = vsel %vm3107_vm9, %v1396_v57, 0.0  ;;  %vm5929_vm5 = vcmask 252928   ;;  %v1385_v4 = vmul.f32 %v1383_v7, %v1382_v15  ;;  %v1402_v44 = vmul.f32 %v1401_v51, %v1399_v14  ;;  %v5932_v7 = vld [vmem:[#allocation183_spill] sm:$0xff]  ;;  %v5934_v15 = vld [vmem:[#allocation184_spill] sm:$0xff] }
 0x722   : > { %1980 = vrot.lane.b32.xlu1 %v3832_v63, %s5921_s28  ;;  %1967 = vrot.lane.b32.xlu0 %v3846_v58, %s5912_s24  ;;  %v1431_v5 = vsel %vm5929_vm5, %v4015_v34, %v5928_v38  ;;  %v1417_v35 = vsel %vm5880_vm13, %v1413_v56, 0.0  ;;  %vm5930_vm2 = vmmov %vm5929_vm5  ;;  %v1369_v16 = vadd.f32 %v1367_v10, %v1351_v39  ;;  %v1418_v34 = vsel %vm5931_vm1, %v1414_v46, 0.0  ;;  %s5957_s24 = smov 63  }
 0x723   : > { %v1432_v37 = vsel %vm5930_vm2, %v5928_v38, %v4050_v9  ;;  %vm5933_vm5 = vcmask 244736   ;;  %v1491_v48 = vstv %s5927_s27  ;;  %v1386_v32 = vadd.f32 %v1384_v17, %v1368_v59  ;;  %v5937_v17 = vld [vmem:[#allocation186_spill] sm:$0xff]  ;;  %s5965_s27 = smov 62  }
 0x724   : > { %v4538_v11 = vpop.permute.xlu1 %1659  ;;  %v4540_v3 = vpop.permute.xlu0 %1657  ;;  %v1449_v41 = vsel %vm5933_vm5, %v5932_v7, %v4086_v0  ;;  %v1403_v57 = vmul.f32 %v1401_v51, %v1400_v43  ;;  %v1435_v9 = vsel %vm5746_vm7, %v1431_v5, 0.0  ;;  %vm5935_vm2 = vmmov %vm5933_vm5  ;;  %v5936_v46 = vstv %s5901_s15 }
 0x725   : > { %v1450_v14 = vsel %vm5935_vm2, %v4086_v0, %v5934_v15  ;;  %v1420_v39 = vmul.f32 %v5936_v46, %v1417_v35  ;;  %v1436_v38 = vsel %vm3003_vm11, %v1432_v37, 0.0  ;;  %vm5938_vm5 = vcmask 236544  }
 0x726   : > { %1984 = vrot.lane.b32.xlu1 %v3846_v58, %s5921_s28  ;;  %1982 = vrot.lane.b32.xlu0 %v3836_v52, %s5921_s28  ;;  %v1467_v51 = vsel %vm5938_vm5, %v4111_v6, %v5937_v17  ;;  %v1387_v59 = vadd.f32 %v1385_v4, %v1369_v16  ;;  %v1404_v43 = vadd.f32 %v1402_v44, %v1386_v32  ;;  %v1453_v0 = vsel %vm5748_vm0, %v1449_v41, 0.0  ;;  %vm5941_vm2 = vmmov %vm5938_vm5  ;;  %v5942_v4 = vld [vmem:[#allocation188_spill] sm:$0xff]  ;;  %s5961_s28 = sld [smem:[#allocation53_spill]] }
 0x727   : > { %v5939_v5 = vmov %v5936_v46  ;;  %v1438_v35 = vmul.f32 %v1437_v62, %v1435_v9  ;;  %v1454_v37 = vsel %vm3029_vm4, %v1450_v14, 0.0  ;;  %v1468_v6 = vsel %vm5941_vm2, %v5937_v17, %v4153_v2  ;;  %v5945_v2 = vld [vmem:[#allocation189_spill] sm:$0xff]  ;;  %v5947_v17 = vld [vmem:[#allocation190_spill] sm:$0xff] }
 0x728   : > { %v4567_v10 = vpop.permute.xlu1 %1674  ;;  %v4569_v56 = vpop.permute.xlu0 %1661  ;;  %v1421_v7 = vmul.f32 %v5939_v5, %v1418_v34  ;;  %vm5943_vm5 = vcmask 228352   ;;  %v1405_v16 = vadd.f32 %v1403_v57, %v1387_v59  ;;  %v1439_v34 = vmul.f32 %v1437_v62, %v1436_v38 }
 0x729   : > { %v1485_v44 = vsel %vm5943_vm5, %v5942_v4, %v4182_v61  ;;  %v1471_v41 = vsel %vm5797_vm3, %v1467_v51, 0.0  ;;  %vm5461_vm1 = vcmask 211968   ;;  %v1422_v15 = vadd.f32 %v1420_v39, %v1404_v43  ;;  %vm5946_vm2 = vmmov %vm5943_vm5 }
 0x72a   : > { %1999 = vrot.lane.b32.xlu1 %v3836_v52, %s5940_s26  ;;  %1997 = vrot.lane.b32.xlu0 %v3832_v63, %s5940_s26  ;;  %v1456_v14 = vmul.f32 %v1455_v55, %v1453_v0  ;;  %v1486_v46 = vsel %vm5946_vm2, %v4182_v61, %v5945_v2  ;;  %vm5948_vm5 = vcmask 220160   ;;  %v1423_v57 = vadd.f32 %v1421_v7, %v1405_v16  ;;  %v5952_v0 = vld [vmem:[#allocation191_spill] sm:$0xff] }
 0x72b   : > { %v1503_v62 = vsel %vm5948_vm5, %v4216_v33, %v5947_v17  ;;  %v1457_v38 = vmul.f32 %v1455_v55, %v1454_v37  ;;  %v1472_v51 = vsel %vm5765_vm15, %v1468_v6, 0.0  ;;  %v1489_v59 = vsel %vm5752_vm14, %v1485_v44, 0.0  ;;  %vm5951_vm2 = vmmov %vm5948_vm5 }
 0x72c   : > { %v4600_v32 = vpop.permute.xlu1 %1678  ;;  %v4602_v9 = vpop.permute.xlu0 %1676  ;;  %v1440_v61 = vadd.f32 %v1438_v35, %v1422_v15  ;;  %v1474_v39 = vmul.f32 %v1473_v1, %v1471_v41  ;;  %v1509_v33 = vstv %s5944_s5  ;;  %v1504_v55 = vsel %vm5951_vm2, %v5947_v17, %v4250_v13  ;;  %v5953_v13 = vld [vmem:[#allocation192_spill] sm:$0xff]  ;;  %s5970_s5 = sld [smem:[#allocation55_spill]] }
 0x72d   : > { %v1441_v43 = vadd.f32 %v1439_v34, %v1423_v57  ;;  %v1490_v5 = vsel %vm5753_vm6, %v1486_v46, 0.0  ;;  %v1507_v7 = vsel %vm3079_vm10, %v1503_v62, 0.0  ;;  %v1521_v37 = vsel %vm5461_vm1, %v5952_v0, %v4284_v40 }
 0x72e   : > { %2014 = vrot.lane.b32.xlu1 %v3832_v63, %s5949_s0  ;;  %2001 = vrot.lane.b32.xlu0 %v3846_v58, %s5940_s26  ;;  %v1458_v4 = vadd.f32 %v1456_v14, %v1440_v61  ;;  %v1475_v44 = vmul.f32 %v1473_v1, %v1472_v51  ;;  %v1492_v16 = vmul.f32 %v1491_v48, %v1489_v59  ;;  %v1508_v15 = vsel %vm3089_vm12, %v1504_v55, 0.0  ;;  %s5966_s26 = sld [smem:[#allocation54_spill]] }
 0x72f   : > { %v1522_v34 = vsel %vm5461_vm1, %v4284_v40, %v5953_v13  ;;  %v1459_v41 = vadd.f32 %v1457_v38, %v1441_v43  ;;  %v1527_v2 = vstv %s5950_s12  ;;  %v1493_v46 = vmul.f32 %v1491_v48, %v1490_v5  ;;  %s5980_s12 = smov 61  }
 0x730   : > { %v4631_v35 = vpop.permute.xlu1 %1693  ;;  %v4633_v6 = vpop.permute.xlu0 %1691  ;;  %v1476_v14 = vadd.f32 %v1474_v39, %v1458_v4  ;;  %v1510_v1 = vmul.f32 %v1509_v33, %v1507_v7  ;;  %v1525_v17 = vsel %vm5922_vm8, %v1521_v37, 0.0  ;;  %v1526_v40 = vsel %vm3107_vm9, %v1522_v34, 0.0 }
 0x731   : > { %v1477_v38 = vadd.f32 %v1475_v44, %v1459_v41  ;;  %v1511_v59 = vmul.f32 %v1509_v33, %v1508_v15  ;;  %vm5956_vm5 = vcmask 1039360   ;;  %v1546_v48 = vstv %s5954_s13  ;;  %v5962_v41 = vld [vmem:[#allocation110_spill] sm:$0xff]  ;;  %s5981_s13 = sld [smem:[#allocation57_spill]] }
 0x732   : > { %2018 = vrot.lane.b32.xlu1 %v3846_v58, %s5949_s0  ;;  %2016 = vrot.lane.b32.xlu0 %v3836_v52, %s5949_s0  ;;  %v1494_v51 = vadd.f32 %v1492_v16, %v1476_v14  ;;  %v1561_v61 = vsel %vm5956_vm5, %v4304_v54, %v4302_v50  ;;  %v1528_v39 = vmul.f32 %v1527_v2, %v1525_v17  ;;  %v1544_v55 = vsel %vm5880_vm13, %v3832_v63, 0.0  ;;  %s5976_s0 = sld [smem:[#allocation56_spill]] }
 0x733   : > { %v1495_v43 = vadd.f32 %v1493_v46, %v1477_v38  ;;  %v1529_v7 = vmul.f32 %v1527_v2, %v1526_v40  ;;  %vm5958_vm2 = vnez %v5502_v20  ;;  %v1567_v54 = vstv %s5955_s14  ;;  %s5982_s14 = sld [smem:[#allocation58_spill]] }
 0x734   : > { %v4651_v62 = vpop.permute.xlu1 %1708  ;;  %v4653_v57 = vpop.permute.xlu0 %1695  ;;  %v1512_v5 = vadd.f32 %v1510_v1, %v1494_v51  ;;  %v1545_v33 = vsel %vm5958_vm2, %v3836_v52, 0.0  ;;  %v1565_v0 = vsel %vm5746_vm7, %v1561_v61, 0.0  ;;  %v1562_v37 = vsel %vm5956_vm5, %v4302_v50, %v4333_v12 }
 0x735   : > { %vm5960_vm1 = vcmask 1031168   ;;  %v1513_v13 = vadd.f32 %v1511_v59, %v1495_v43  ;;  %v1547_v34 = vmul.f32 %v1546_v48, %v1544_v55  ;;  %v1548_v14 = vmul.f32 %v1546_v48, %v1545_v33  ;;  %v5968_v48 = vld [vmem:[#allocation112_spill] sm:$0xff] }
 0x736   : > { %2033 = vrot.lane.b32.xlu1 %v3836_v52, %s5957_s24  ;;  %2031 = vrot.lane.b32.xlu0 %v3832_v63, %s5957_s24  ;;  %v1578_v4 = vsel %vm5960_vm1, %v4331_v42, %v4356_v47  ;;  %vm5963_vm2 = vmmov %vm5960_vm1  ;;  %v1530_v2 = vadd.f32 %v1528_v39, %v1512_v5  ;;  %vm5964_vm5 = vcmask 1022976   ;;  %v1568_v42 = vmul.f32 %v1567_v54, %v1565_v0 }
 0x737   : > { %v1579_v15 = vsel %vm5963_vm2, %v4356_v47, %v5962_v41  ;;  %v1595_v50 = vsel %vm5964_vm5, %v4384_v49, %v4382_v45  ;;  %v1566_v12 = vsel %vm3003_vm11, %v1562_v37, 0.0  ;;  %v1584_v46 = vstv %s5959_s4  ;;  %vm5967_vm1 = vmmov %vm5964_vm5  ;;  %v5971_v37 = vld [vmem:[#allocation106_spill] sm:$0xff]  ;;  %s5986_s4 = sld [smem:[#allocation59_spill]] }
 0x738   : > { %v4678_v44 = vpop.permute.xlu1 %1712  ;;  %v4680_v16 = vpop.permute.xlu0 %1710  ;;  %v1582_v47 = vsel %vm5748_vm0, %v1578_v4, 0.0  ;;  %v1531_v1 = vadd.f32 %v1529_v7, %v1513_v13  ;;  %v1583_v17 = vsel %vm3029_vm4, %v1579_v15, 0.0  ;;  %v1601_v49 = vstv %s5961_s28  ;;  %v5972_v4 = vld [vmem:[#allocation107_spill] sm:$0xff]  ;;  %s5988_s28 = sld [smem:[#allocation60_spill]] }
 0x739   : > { %v1549_v51 = vadd.f32 %v1547_v34, %v1530_v2  ;;  %v1599_v59 = vsel %vm5797_vm3, %v1595_v50, 0.0  ;;  %v1596_v61 = vsel %vm5967_vm1, %v4382_v45, %v4410_v36  ;;  %vm5969_vm2 = vcmask 1014784   ;;  %v5974_v34 = vld [vmem:[#allocation105_spill] sm:$0xff]  ;;  %v5977_v50 = vld [vmem:[#allocation115_spill] sm:$0xff] }
 0x73a   : > { %2048 = vrot.lane.b32.xlu1 %v3832_v63, %s5965_s27  ;;  %2035 = vrot.lane.b32.xlu0 %v3846_v58, %s5957_s24  ;;  %v1612_v39 = vsel %vm5969_vm2, %v5968_v48, %v4434_v8  ;;  %v1550_v55 = vadd.f32 %v1548_v14, %v1531_v1  ;;  %v1569_v43 = vmul.f32 %v1567_v54, %v1566_v12  ;;  %v1618_v0 = vstv %s5966_s26  ;;  %vm5975_vm1 = vmmov %vm5969_vm2  ;;  %v5979_v1 = vld [vmem:[#allocation117_spill] sm:$0xff]  ;;  %s5985_s24 = smov 60   ;;  %s5994_s26 = smov 59  }
 0x73b   : > { %v1585_v5 = vmul.f32 %v1584_v46, %v1582_v47  ;;  %v1570_v7 = vadd.f32 %v1568_v42, %v1549_v51  ;;  %v1586_v33 = vmul.f32 %v1584_v46, %v1583_v17  ;;  %vm5973_vm5 = vcmask 1006592  }
 0x73c   : > { %v4700_v40 = vpop.permute.xlu1 %1727  ;;  %v4702_v38 = vpop.permute.xlu0 %1725  ;;  %v1629_v45 = vsel %vm5973_vm5, %v5972_v4, %v5971_v37  ;;  %v1602_v36 = vmul.f32 %v1601_v49, %v1599_v59  ;;  %v1600_v13 = vsel %vm5765_vm15, %v1596_v61, 0.0  ;;  %v1613_v54 = vsel %vm5975_vm1, %v4434_v8, %v5974_v34 }
 0x73d   : > { %v1616_v41 = vsel %vm5752_vm14, %v1612_v39, 0.0  ;;  %v1635_v14 = vstv %s5970_s5  ;;  %vm5978_vm2 = vcmask 998400   ;;  %v1571_v12 = vadd.f32 %v1569_v43, %v1550_v55  ;;  %s5995_s5 = sld [smem:[#allocation62_spill]] }
 0x73e   : > { %2052 = vrot.lane.b32.xlu1 %v3846_v58, %s5965_s27  ;;  %2050 = vrot.lane.b32.xlu0 %v3836_v52, %s5965_s27  ;;  %v1646_v42 = vsel %vm5978_vm2, %v5977_v50, %v4513_v60  ;;  %v1587_v46 = vadd.f32 %v1585_v5, %v1570_v7  ;;  %v1633_v47 = vsel %vm3079_vm10, %v1629_v45, 0.0  ;;  %v1630_v8 = vsel %vm5973_vm5, %v5971_v37, %v5979_v1  ;;  %s5991_s27 = sld [smem:[#allocation61_spill]] }
 0x73f   : > { %v1603_v17 = vmul.f32 %v1601_v49, %v1600_v13  ;;  %v1617_v51 = vsel %vm5753_vm6, %v1613_v54, 0.0  ;;  %v1619_v59 = vmul.f32 %v1618_v0, %v1616_v41  ;;  %vm5983_vm1 = vcmask 916480  }
 0x740   : > { %v4727_v15 = vpop.permute.xlu1 %1742  ;;  %v4729_v2 = vpop.permute.xlu0 %1729  ;;  %v1663_v61 = vsel %vm5983_vm1, %v4540_v3, %v4538_v11  ;;  %v1588_v48 = vadd.f32 %v1586_v33, %v1571_v12  ;;  %v1604_v39 = vadd.f32 %v1602_v36, %v1587_v46  ;;  %v1652_v55 = vstv %s5976_s0  ;;  %s5998_s0 = sld [smem:[#allocation63_spill]] }
 0x741   : > { %v1650_v43 = vsel %vm5922_vm8, %v1646_v42, 0.0  ;;  %v1636_v49 = vmul.f32 %v1635_v14, %v1633_v47  ;;  %v1634_v37 = vsel %vm3089_vm12, %v1630_v8, 0.0  ;;  %v1647_v4 = vsel %vm5978_vm2, %v4513_v60, %v4511_v53 }
 0x742   : > { %2067 = vrot.lane.b32.xlu1 %v3836_v52, %s5980_s12  ;;  %2065 = vrot.lane.b32.xlu0 %v3832_v63, %s5980_s12  ;;  %vm5984_vm5 = vcmask 908288   ;;  %v1620_v33 = vmul.f32 %v1618_v0, %v1617_v51  ;;  %v1669_v45 = vstv %s5981_s13  ;;  %v1667_v36 = vsel %vm5880_vm13, %v1663_v61, 0.0  ;;  %s6001_s13 = sld [smem:[#allocation64_spill]] }
 0x743   : > { %v1680_v3 = vsel %vm5984_vm5, %v4567_v10, %v4602_v9  ;;  %v1686_v13 = vstv %s5982_s14  ;;  %v1605_v34 = vadd.f32 %v1603_v17, %v1588_v48  ;;  %v1621_v54 = vadd.f32 %v1619_v59, %v1604_v39  ;;  %s6003_s14 = sld [smem:[#allocation65_spill]] }
 0x744   : > { %v4752_v5 = vpop.permute.xlu1 %1746  ;;  %v4754_v7 = vpop.permute.xlu0 %1744  ;;  %v1653_v53 = vmul.f32 %v1652_v55, %v1650_v43  ;;  %v1664_v60 = vsel %vm5983_vm1, %v4538_v11, %v4569_v56  ;;  %v1637_v10 = vmul.f32 %v1635_v14, %v1634_v37  ;;  %v1651_v0 = vsel %vm3107_vm9, %v1647_v4, 0.0 }
 0x745   : > { %v1684_v41 = vsel %vm5746_vm7, %v1680_v3, 0.0  ;;  %vm5987_vm2 = vcmask 900096   ;;  %v1638_v46 = vadd.f32 %v1636_v49, %v1621_v54  ;;  %v1670_v47 = vmul.f32 %v1669_v45, %v1667_v36 }
 0x746   : > { %2082 = vrot.lane.b32.xlu1 %v3832_v63, %s5985_s24  ;;  %2069 = vrot.lane.b32.xlu0 %v3846_v58, %s5980_s12  ;;  %v1697_v50 = vsel %vm5987_vm2, %v4633_v6, %v4631_v35  ;;  %v1681_v11 = vsel %vm5984_vm5, %v4602_v9, %v4600_v32  ;;  %v1622_v56 = vadd.f32 %v1620_v33, %v1605_v34  ;;  %v1703_v1 = vstv %s5986_s4  ;;  %s6000_s12 = smov 58   ;;  %s6007_s4 = smov 48  }
 0x747   : > { %vm5989_vm1 = vnez %v5502_v20  ;;  %vm5990_vm7 = vcmask 891904   ;;  %v1654_v6 = vmul.f32 %v1652_v55, %v1651_v0  ;;  %v1655_v17 = vadd.f32 %v1653_v53, %v1638_v46 }
 0x748   : > { %v4782_v42 = vpop.permute.xlu1 %1761  ;;  %v1760_v12 = vpop.permute.xlu0 %1759  ;;  %v1668_v14 = vsel %vm5989_vm1, %v1664_v60, 0.0  ;;  %v1714_v8 = vsel %vm5990_vm7, %v4651_v62, %v4680_v16  ;;  %v1687_v51 = vmul.f32 %v1686_v13, %v1684_v41  ;;  %v1701_v32 = vsel %vm5748_vm0, %v1697_v50, 0.0  ;;  %vm5992_vm7 = vmmov %vm5987_vm2 }
 0x749   : > { %v1639_v9 = vadd.f32 %v1637_v10, %v1622_v56  ;;  %v1685_v59 = vsel %vm3003_vm11, %v1681_v11, 0.0  ;;  %v1698_v62 = vsel %vm5992_vm7, %v4631_v35, %v4653_v57  ;;  %v1720_v61 = vstv %s5988_s28  ;;  %s6008_s28 = sld [smem:[#allocation67_spill]] }
 0x74a   : > { %2086 = vrot.lane.b32.xlu1 %v3846_v58, %s5985_s24  ;;  %2084 = vrot.lane.b32.xlu0 %v3836_v52, %s5985_s24  ;;  %v1672_v43 = vadd.f32 %v1670_v47, %v1655_v17  ;;  %v1671_v49 = vmul.f32 %v1669_v45, %v1668_v14  ;;  %v1718_v55 = vsel %vm5797_vm3, %v1714_v8, 0.0  ;;  %vm5993_vm2 = vcmask 883712   ;;  %s6005_s24 = sld [smem:[#allocation66_spill]] }
 0x74b   : > { %v1731_v37 = vsel %vm5993_vm2, %v4702_v38, %v4700_v40  ;;  %v1704_v4 = vmul.f32 %v1703_v1, %v1701_v32  ;;  %v1737_v3 = vstv %s5991_s27  ;;  %v1656_v35 = vadd.f32 %v1654_v6, %v1639_v9  ;;  %s6011_s27 = smov 47  }
 0x74c   : > { %v1777_v48 = vpop.permute.xlu1 %1776  ;;  %v1764_v39 = vpop.permute.xlu0 %1763  ;;  %v1688_v57 = vmul.f32 %v1686_v13, %v1685_v59  ;;  %v1689_v33 = vadd.f32 %v1687_v51, %v1672_v43  ;;  %v1702_v45 = vsel %vm3029_vm4, %v1698_v62, 0.0  ;;  %vm5996_vm5 = vcmask 891904  }
 0x74d   : > { %v1715_v36 = vsel %vm5996_vm5, %v4680_v16, %v4678_v44  ;;  %v1721_v38 = vmul.f32 %v1720_v61, %v1718_v55  ;;  %v1735_v34 = vsel %vm5752_vm14, %v1731_v37, 0.0  ;;  %vm5997_vm7 = vcmask 875520  }
 0x74e   : > { %2101 = vrot.lane.b32.xlu1 %v3836_v52, %s5994_s26  ;;  %2099 = vrot.lane.b32.xlu0 %v3832_v63, %s5994_s26  ;;  %v1748_v54 = vsel %vm5997_vm7, %v4727_v15, %v4754_v7  ;;  %v1673_v13 = vadd.f32 %v1671_v49, %v1656_v35  ;;  %v1706_v10 = vadd.f32 %v1704_v4, %v1689_v33  ;;  %v1754_v41 = vstv %s5995_s5  ;;  %s6015_s5 = smov 46  }
 0x74f   : > { %v1732_v0 = vsel %vm5993_vm2, %v4700_v40, %v4729_v2  ;;  %vm5999_vm5 = vcmask 867328   ;;  %v1705_v16 = vmul.f32 %v1703_v1, %v1702_v45  ;;  %v1719_v15 = vsel %vm5765_vm15, %v1715_v36, 0.0 }
 0x750   : > { %v1781_v53 = vpop.permute.xlu1 %1780  ;;  %v1779_v60 = vpop.permute.xlu0 %1778  ;;  %v1765_v44 = vsel %vm5999_vm5, %v1760_v12, %v4782_v42  ;;  %v1738_v50 = vmul.f32 %v1737_v3, %v1735_v34  ;;  %v1752_v46 = vsel %vm3079_vm10, %v1748_v54, 0.0  ;;  %v1690_v40 = vadd.f32 %v1688_v57, %v1673_v13 }
 0x751   : > { %v1723_v2 = vadd.f32 %v1721_v38, %v1706_v10  ;;  %v1771_v47 = vstv %s5998_s0  ;;  %v1736_v56 = vsel %vm5753_vm6, %v1732_v0, 0.0  ;;  %v1749_v14 = vsel %vm5997_vm7, %v4754_v7, %v4752_v5  ;;  %s6016_s0 = sld [smem:[#allocation69_spill]] }
 0x752   : > { %2116 = vrot.lane.b32.xlu1 %v3832_v63, %s6000_s12  ;;  %2103 = vrot.lane.b32.xlu0 %v3846_v58, %s5994_s26  ;;  %v1769_v1 = vsel %vm5922_vm8, %v1765_v44, 0.0  ;;  %vm6002_vm2 = vcmask 785408   ;;  %v1722_v6 = vmul.f32 %v1720_v61, %v1719_v15  ;;  %v1755_v17 = vmul.f32 %v1754_v41, %v1752_v46  ;;  %s6013_s26 = sld [smem:[#allocation68_spill]] }
 0x753   : > { %v1782_v8 = vsel %vm6002_vm2, %v1777_v48, %v1779_v60  ;;  %v1788_v51 = vstv %s6001_s13  ;;  %v1707_v32 = vadd.f32 %v1705_v16, %v1690_v40  ;;  %v1740_v9 = vadd.f32 %v1738_v50, %v1723_v2  ;;  %s6020_s13 = sld [smem:[#allocation70_spill]] }
 0x754   : > { %v1796_v11 = vpop.permute.xlu1 %1795  ;;  %v1794_v12 = vpop.permute.xlu0 %1793  ;;  %v1766_v5 = vsel %vm5999_vm5, %v4782_v42, %v1764_v39  ;;  %vm6004_vm7 = vcmask 777216   ;;  %v1739_v59 = vmul.f32 %v1737_v3, %v1736_v56  ;;  %v1753_v62 = vsel %vm3089_vm12, %v1749_v14, 0.0 }
 0x755   : > { %v1799_v7 = vsel %vm6004_vm7, %v1794_v12, %v1796_v11  ;;  %v1772_v61 = vmul.f32 %v1771_v47, %v1769_v1  ;;  %v1786_v48 = vsel %vm5880_vm13, %v1782_v8, 0.0  ;;  %v1783_v55 = vsel %vm6002_vm2, %v1779_v60, %v1781_v53 }
 0x756   : > { %2120 = vrot.lane.b32.xlu1 %v3846_v58, %s6000_s12  ;;  %2118 = vrot.lane.b32.xlu0 %v3836_v52, %s6000_s12  ;;  %v1805_v37 = vstv %s6003_s14  ;;  %v1724_v4 = vadd.f32 %v1722_v6, %v1707_v32  ;;  %v1757_v35 = vadd.f32 %v1755_v17, %v1740_v9  ;;  %v1770_v42 = vsel %vm3107_vm9, %v1766_v5, 0.0  ;;  %s6019_s12 = smov 45   ;;  %s6023_s14 = smov 44  }
 0x757   : > { %vm6006_vm5 = vnez %v5498_v19  ;;  %v1756_v3 = vmul.f32 %v1754_v41, %v1753_v62  ;;  %v1789_v57 = vmul.f32 %v1788_v51, %v1786_v48  ;;  %v1787_v38 = vsel %vm5989_vm1, %v1783_v55, 0.0 }
 0x758   : > { %v1811_v43 = vpop.permute.xlu1 %1810  ;;  %v1798_v49 = vpop.permute.xlu0 %1797  ;;  %v1803_v39 = vsel %vm6006_vm5, %v1799_v7, 0.0  ;;  %v1741_v45 = vadd.f32 %v1739_v59, %v1724_v4  ;;  %v1774_v36 = vadd.f32 %v1772_v61, %v1757_v35  ;;  %v1822_v54 = vstv %s6005_s24  ;;  %s6024_s24 = sld [smem:[#allocation71_spill]] }
 0x759   : > { %v1800_v33 = vsel %vm6004_vm7, %v1796_v11, %v1798_v49  ;;  %v1773_v60 = vmul.f32 %v1771_v47, %v1770_v42  ;;  %v1806_v13 = vmul.f32 %v1805_v37, %v1803_v39  ;;  %vm6009_vm2 = vcmask 769024  }
 0x75a   : > { %2135 = vrot.lane.b32.xlu1 %v3836_v52, %s6007_s4  ;;  %2133 = vrot.lane.b32.xlu0 %v3832_v63, %s6007_s4  ;;  %vm6010_vm5 = vmmov %vm6009_vm2  ;;  %v1804_v41 = vsel %vm3003_vm11, %v1800_v33, 0.0  ;;  %v1758_v16 = vadd.f32 %v1756_v3, %v1741_v45  ;;  %v1790_v15 = vmul.f32 %v1788_v51, %v1787_v38  ;;  %v1791_v50 = vadd.f32 %v1789_v57, %v1774_v36 }
 0x75b   : > { %v1839_v47 = vstv %s6008_s28  ;;  %v1807_v14 = vmul.f32 %v1805_v37, %v1804_v41  ;;  %v1856_v55 = vstv %s6013_s26  ;;  %v1873_v36 = vstv %s6016_s0  ;;  %s6028_s28 = sld [smem:[#allocation72_spill]]  ;;  %s6032_s26 = sld [smem:[#allocation73_spill]] }
 0x75c   : > { %v1815_v34 = vpop.permute.xlu1 %1814  ;;  %v1813_v53 = vpop.permute.xlu0 %1812  ;;  %v1775_v12 = vadd.f32 %v1773_v60, %v1758_v16  ;;  %v1808_v56 = vadd.f32 %v1806_v13, %v1791_v50  ;;  %s6039_s0 = sld [smem:[#allocation75_spill]] }
 0x75d   : > { %v1816_v10 = vsel %vm6009_vm2, %v1811_v43, %v1813_v53  ;;  %v1817_v0 = vsel %vm6010_vm5, %v1813_v53, %v1815_v34  ;;  %vm6012_vm5 = vcmask 760832   ;;  %vm6017_vm2 = vcmask 752640  }
 0x75e   : > { %v1820_v44 = vsel %vm5748_vm0, %v1816_v10, 0.0  ;;  %2150 = vrot.lane.b32.xlu1 %v3832_v63, %s6011_s27  ;;  %2137 = vrot.lane.b32.xlu0 %v3846_v58, %s6007_s4  ;;  %v1821_v40 = vsel %vm3029_vm4, %v1817_v0, 0.0  ;;  %v1792_v6 = vadd.f32 %v1790_v15, %v1775_v12  ;;  %vm6014_vm7 = vmmov %vm6012_vm5  ;;  %s6027_s4 = smov 43  }
 0x75f   : > { %v1823_v46 = vmul.f32 %v1822_v54, %v1820_v44  ;;  %v1824_v17 = vmul.f32 %v1822_v54, %v1821_v40 }
 0x760   : > { %v1830_v2 = vpop.permute.xlu1 %1829  ;;  %v1828_v11 = vpop.permute.xlu0 %1827  ;;  %v1809_v7 = vadd.f32 %v1807_v14, %v1792_v6  ;;  %v1907_v6 = vstv %s6024_s24  ;;  %s6053_s24 = smov 27  }
 0x761   : > { %v1833_v1 = vsel %vm6012_vm5, %v1828_v11, %v1830_v2  ;;  %v1825_v51 = vadd.f32 %v1823_v46, %v1808_v56  ;;  %vm6018_vm5 = vmmov %vm6017_vm2  ;;  %v1890_v46 = vstv %s6020_s13  ;;  %s6047_s13 = sld [smem:[#allocation77_spill]] }
 0x762   : > { %v1837_v8 = vsel %vm5797_vm3, %v1833_v1, 0.0  ;;  %2154 = vrot.lane.b32.xlu1 %v3846_v58, %s6011_s27  ;;  %2152 = vrot.lane.b32.xlu0 %v3836_v52, %s6011_s27  ;;  %v1826_v48 = vadd.f32 %v1824_v17, %v1809_v7  ;;  %s6031_s27 = smov 42  }
 0x763   : > { %v1840_v32 = vmul.f32 %v1839_v47, %v1837_v8 }
 0x764   : > { %v1845_v9 = vpop.permute.xlu1 %1844  ;;  %v1832_v5 = vpop.permute.xlu0 %1831 }
 0x765   : > { %v1842_v59 = vadd.f32 %v1840_v32, %v1825_v51  ;;  %v1834_v62 = vsel %vm6014_vm7, %v1830_v2, %v1832_v5  ;;  %vm6021_vm7 = vcmask 744448  }
 0x766   : > { %v1838_v61 = vsel %vm5765_vm15, %v1834_v62, 0.0  ;;  %2169 = vrot.lane.b32.xlu1 %v3836_v52, %s6015_s5  ;;  %2167 = vrot.lane.b32.xlu0 %v3832_v63, %s6015_s5 }
 0x767   : > { %v1841_v43 = vmul.f32 %v1839_v47, %v1838_v61 }
 0x768   : > { %v1849_v49 = vpop.permute.xlu1 %1848  ;;  %v1847_v37 = vpop.permute.xlu0 %1846 }
 0x769   : > { %v1843_v4 = vadd.f32 %v1841_v43, %v1826_v48  ;;  %v1850_v35 = vsel %vm6017_vm2, %v1845_v9, %v1847_v37  ;;  %v1851_v42 = vsel %vm6018_vm5, %v1847_v37, %v1849_v49  ;;  %vm6022_vm2 = vmmov %vm6021_vm7  ;;  %vm6025_vm5 = vcmask 736256  }
 0x76a   : > { %v1854_v39 = vsel %vm5752_vm14, %v1850_v35, 0.0  ;;  %v1855_v3 = vsel %vm5753_vm6, %v1851_v42, 0.0  ;;  %2184 = vrot.lane.b32.xlu1 %v3832_v63, %s6019_s12  ;;  %2171 = vrot.lane.b32.xlu0 %v3846_v58, %s6015_s5  ;;  %v1924_v37 = vstv %s6028_s28  ;;  %s6036_s5 = sld [smem:[#allocation74_spill]]  ;;  %s6058_s28 = sld [smem:[#allocation80_spill]] }
 0x76b   : > { %v1857_v57 = vmul.f32 %v1856_v55, %v1854_v39  ;;  %v1858_v33 = vmul.f32 %v1856_v55, %v1855_v3 }
 0x76c   : > { %v1864_v45 = vpop.permute.xlu1 %1863  ;;  %v1862_v38 = vpop.permute.xlu0 %1861 }
 0x76d   : > { %v1859_v34 = vadd.f32 %v1857_v57, %v1842_v59  ;;  %v1860_v54 = vadd.f32 %v1858_v33, %v1843_v4  ;;  %v1867_v53 = vsel %vm6021_vm7, %v1862_v38, %v1864_v45  ;;  %vm6026_vm7 = vmmov %vm6025_vm5  ;;  %v1941_v38 = vstv %s6032_s26  ;;  %s6065_s26 = sld [smem:[#allocation82_spill]] }
 0x76e   : > { %v1871_v60 = vsel %vm3079_vm10, %v1867_v53, 0.0  ;;  %2188 = vrot.lane.b32.xlu1 %v3846_v58, %s6019_s12  ;;  %2186 = vrot.lane.b32.xlu0 %v3836_v52, %s6019_s12  ;;  %s6043_s12 = sld [smem:[#allocation76_spill]] }
 0x76f   : > { %v1874_v13 = vmul.f32 %v1873_v36, %v1871_v60 }
 0x770   : > { %v1879_v10 = vpop.permute.xlu1 %1878  ;;  %v1866_v0 = vpop.permute.xlu0 %1865 }
 0x771   : > { %v1876_v41 = vadd.f32 %v1874_v13, %v1859_v34  ;;  %v1868_v44 = vsel %vm6022_vm2, %v1864_v45, %v1866_v0  ;;  %vm6029_vm2 = vcmask 654336  }
 0x772   : > { %v1872_v16 = vsel %vm3089_vm12, %v1868_v44, 0.0  ;;  %2203 = vrot.lane.b32.xlu1 %v3836_v52, %s6023_s14  ;;  %2201 = vrot.lane.b32.xlu0 %v3832_v63, %s6023_s14 }
 0x773   : > { %v1875_v15 = vmul.f32 %v1873_v36, %v1872_v16 }
 0x774   : > { %v1883_v50 = vpop.permute.xlu1 %1882  ;;  %v1881_v40 = vpop.permute.xlu0 %1880 }
 0x775   : > { %v1877_v2 = vadd.f32 %v1875_v15, %v1860_v54  ;;  %v1884_v47 = vsel %vm6025_vm5, %v1879_v10, %v1881_v40  ;;  %v1885_v11 = vsel %vm6026_vm7, %v1881_v40, %v1883_v50  ;;  %vm6030_vm5 = vmmov %vm6029_vm2  ;;  %vm6033_vm7 = vcmask 646144  }
 0x776   : > { %v1888_v12 = vsel %vm5922_vm8, %v1884_v47, 0.0  ;;  %v1889_v56 = vsel %vm3107_vm9, %v1885_v11, 0.0  ;;  %2218 = vrot.lane.b32.xlu1 %v3832_v63, %s6027_s4  ;;  %2205 = vrot.lane.b32.xlu0 %v3846_v58, %s6023_s14  ;;  %v1958_v40 = vstv %s6036_s5  ;;  %s6050_s14 = sld [smem:[#allocation78_spill]]  ;;  %s6070_s5 = sld [smem:[#allocation83_spill]] }
 0x777   : > { %v1891_v14 = vmul.f32 %v1890_v46, %v1888_v12  ;;  %v1892_v1 = vmul.f32 %v1890_v46, %v1889_v56 }
 0x778   : > { %v1898_v8 = vpop.permute.xlu1 %1897  ;;  %v1896_v17 = vpop.permute.xlu0 %1895 }
 0x779   : > { %v1893_v51 = vadd.f32 %v1891_v14, %v1876_v41  ;;  %v1894_v32 = vadd.f32 %v1892_v1, %v1877_v2  ;;  %v1901_v9 = vsel %vm6029_vm2, %v1896_v17, %v1898_v8  ;;  %vm6034_vm2 = vmmov %vm6033_vm7  ;;  %v1975_v17 = vstv %s6039_s0  ;;  %s6071_s0 = sld [smem:[#allocation84_spill]] }
 0x77a   : > { %v1905_v5 = vsel %vm5880_vm13, %v1901_v9, 0.0  ;;  %2222 = vrot.lane.b32.xlu1 %v3846_v58, %s6027_s4  ;;  %2220 = vrot.lane.b32.xlu0 %v3836_v52, %s6027_s4  ;;  %s6054_s4 = sld [smem:[#allocation79_spill]] }
 0x77b   : > { %v1908_v7 = vmul.f32 %v1907_v6, %v1905_v5 }
 0x77c   : > { %v1913_v59 = vpop.permute.xlu1 %1912  ;;  %v1900_v62 = vpop.permute.xlu0 %1899 }
 0x77d   : > { %v1910_v61 = vadd.f32 %v1908_v7, %v1893_v51  ;;  %v1902_v48 = vsel %vm6030_vm5, %v1898_v8, %v1900_v62  ;;  %vm6035_vm5 = vnez %v5498_v19 }
 0x77e   : > { %v1906_v43 = vsel %vm5989_vm1, %v1902_v48, 0.0  ;;  %2237 = vrot.lane.b32.xlu1 %v3836_v52, %s6031_s27  ;;  %2235 = vrot.lane.b32.xlu0 %v3832_v63, %s6031_s27 }
 0x77f   : > { %v1909_v49 = vmul.f32 %v1907_v6, %v1906_v43 }
 0x780   : > { %v1917_v55 = vpop.permute.xlu1 %1916  ;;  %v1915_v4 = vpop.permute.xlu0 %1914 }
 0x781   : > { %v1911_v35 = vadd.f32 %v1909_v49, %v1894_v32  ;;  %v1918_v42 = vsel %vm6033_vm7, %v1913_v59, %v1915_v4  ;;  %v1919_v39 = vsel %vm6034_vm2, %v1915_v4, %v1917_v55  ;;  %vm6037_vm7 = vcmask 637952  }
 0x782   : > { %v1922_v3 = vsel %vm6035_vm5, %v1918_v42, 0.0  ;;  %v1923_v57 = vsel %vm3003_vm11, %v1919_v39, 0.0  ;;  %2252 = vrot.lane.b32.xlu1 %v3832_v63, %s5662_s30  ;;  %2239 = vrot.lane.b32.xlu0 %v3846_v58, %s6031_s27  ;;  %vm6038_vm2 = vmmov %vm6037_vm7  ;;  %v1992_v4 = vstv %s6043_s12  ;;  %s6060_s27 = sld [smem:[#allocation81_spill]]  ;;  %s6077_s12 = sld [smem:[#allocation86_spill]] }
 0x783   : > { %v1925_v33 = vmul.f32 %v1924_v37, %v1922_v3  ;;  %v1926_v45 = vmul.f32 %v1924_v37, %v1923_v57 }
 0x784   : > { %v1932_v36 = vpop.permute.xlu1 %1931  ;;  %v1930_v34 = vpop.permute.xlu0 %1929 }
 0x785   : > { %v1927_v54 = vadd.f32 %v1925_v33, %v1910_v61  ;;  %v1928_v53 = vadd.f32 %v1926_v45, %v1911_v35  ;;  %v1935_v60 = vsel %vm6037_vm7, %v1930_v34, %v1932_v36  ;;  %vm6040_vm7 = vcmask 629760  }
 0x786   : > { %v1939_v13 = vsel %vm5748_vm0, %v1935_v60, 0.0  ;;  %2256 = vrot.lane.b32.xlu1 %v3846_v58, %s5662_s30  ;;  %2254 = vrot.lane.b32.xlu0 %v3836_v52, %s5662_s30  ;;  %vm6041_vm0 = vmmov %vm6040_vm7  ;;  %s6042_s30 = smov 30   ;;  %v2009_v34 = vstv %s6047_s13  ;;  %s6086_s13 = sld [smem:[#allocation88_spill]] }
 0x787   : > { %v1942_v10 = vmul.f32 %v1941_v38, %v1939_v13 }
 0x788   : > { %v1947_v0 = vpop.permute.xlu1 %1946  ;;  %v1934_v41 = vpop.permute.xlu0 %1933 }
 0x789   : > { %v1944_v44 = vadd.f32 %v1942_v10, %v1927_v54  ;;  %v1936_v16 = vsel %vm6038_vm2, %v1932_v36, %v1934_v41 }
 0x78a   : > { %v1940_v15 = vsel %vm3029_vm4, %v1936_v16, 0.0  ;;  %2271 = vrot.lane.b32.xlu1 %v3836_v52, %s5666_s9  ;;  %2269 = vrot.lane.b32.xlu0 %v3832_v63, %s5666_s9 }
 0x78b   : > { %v1943_v50 = vmul.f32 %v1941_v38, %v1940_v15 }
 0x78c   : > { %v1951_v46 = vpop.permute.xlu1 %1950  ;;  %v1949_v2 = vpop.permute.xlu0 %1948 }
 0x78d   : > { %v1945_v47 = vadd.f32 %v1943_v50, %v1928_v53  ;;  %v1952_v11 = vsel %vm6040_vm7, %v1947_v0, %v1949_v2  ;;  %v1953_v12 = vsel %vm6041_vm0, %v1949_v2, %v1951_v46  ;;  %vm6044_vm0 = vcmask 621568  }
 0x78e   : > { %v1956_v56 = vsel %vm5797_vm3, %v1952_v11, 0.0  ;;  %v1957_v14 = vsel %vm5765_vm15, %v1953_v12, 0.0  ;;  %2286 = vrot.lane.b32.xlu1 %v3832_v63, %s6042_s30  ;;  %2273 = vrot.lane.b32.xlu0 %v3846_v58, %s5666_s9  ;;  %vm6045_vm2 = vmmov %vm6044_vm0  ;;  %s6046_s9 = smov 29   ;;  %vm6048_vm7 = vcmask 613376   ;;  %v2026_v2 = vstv %s6050_s14  ;;  %s6088_s14 = sld [smem:[#allocation89_spill]] }
 0x78f   : > { %v1959_v1 = vmul.f32 %v1958_v40, %v1956_v56  ;;  %v1960_v8 = vmul.f32 %v1958_v40, %v1957_v14 }
 0x790   : > { %v1966_v6 = vpop.permute.xlu1 %1965  ;;  %v1964_v51 = vpop.permute.xlu0 %1963 }
 0x791   : > { %v1961_v32 = vadd.f32 %v1959_v1, %v1944_v44  ;;  %v1962_v9 = vadd.f32 %v1960_v8, %v1945_v47  ;;  %v1969_v5 = vsel %vm6044_vm0, %v1964_v51, %v1966_v6  ;;  %vm6049_vm0 = vmmov %vm6048_vm7  ;;  %v2043_v51 = vstv %s6054_s4  ;;  %s6095_s4 = sld [smem:[#allocation91_spill]] }
 0x792   : > { %v1973_v7 = vsel %vm5752_vm14, %v1969_v5, 0.0  ;;  %2290 = vrot.lane.b32.xlu1 %v3846_v58, %s6042_s30  ;;  %2288 = vrot.lane.b32.xlu0 %v3836_v52, %s6042_s30  ;;  %s6075_s30 = sld [smem:[#allocation85_spill]] }
 0x793   : > { %v1976_v59 = vmul.f32 %v1975_v17, %v1973_v7 }
 0x794   : > { %v1981_v62 = vpop.permute.xlu1 %1980  ;;  %v1968_v61 = vpop.permute.xlu0 %1967 }
 0x795   : > { %v1978_v48 = vadd.f32 %v1976_v59, %v1961_v32  ;;  %v1970_v43 = vsel %vm6045_vm2, %v1966_v6, %v1968_v61  ;;  %vm6051_vm2 = vcmask 605184  }
 0x796   : > { %v1974_v49 = vsel %vm5753_vm6, %v1970_v43, 0.0  ;;  %2305 = vrot.lane.b32.xlu1 %v3836_v52, %s6046_s9  ;;  %2303 = vrot.lane.b32.xlu0 %v3832_v63, %s6046_s9 }
 0x797   : > { %v1977_v55 = vmul.f32 %v1975_v17, %v1974_v49 }
 0x798   : > { %v1985_v37 = vpop.permute.xlu1 %1984  ;;  %v1983_v35 = vpop.permute.xlu0 %1982 }
 0x799   : > { %v1979_v42 = vadd.f32 %v1977_v55, %v1962_v9  ;;  %v1986_v39 = vsel %vm6048_vm7, %v1981_v62, %v1983_v35  ;;  %v1987_v3 = vsel %vm6049_vm0, %v1983_v35, %v1985_v37  ;;  %vm6052_vm7 = vmmov %vm6051_vm2  ;;  %vm6055_vm0 = vcmask 523264  }
 0x79a   : > { %v1990_v57 = vsel %vm3079_vm10, %v1986_v39, 0.0  ;;  %v1991_v33 = vsel %vm3089_vm12, %v1987_v3, 0.0  ;;  %2320 = vrot.lane.b32.xlu1 %v3832_v63, %s5676_s25  ;;  %2307 = vrot.lane.b32.xlu0 %v3846_v58, %s6046_s9  ;;  %s6081_s9 = sld [smem:[#allocation87_spill]] }
 0x79b   : > { %v1993_v45 = vmul.f32 %v1992_v4, %v1990_v57  ;;  %v1994_v36 = vmul.f32 %v1992_v4, %v1991_v33  ;;  %v2060_v4 = vstv %s6058_s28  ;;  %s6100_s28 = sld [smem:[#allocation93_spill]] }
 0x79c   : > { %v2000_v38 = vpop.permute.xlu1 %1999  ;;  %v1998_v54 = vpop.permute.xlu0 %1997 }
 0x79d   : > { %v1995_v53 = vadd.f32 %v1993_v45, %v1978_v48  ;;  %v1996_v60 = vadd.f32 %v1994_v36, %v1979_v42  ;;  %v2003_v13 = vsel %vm6051_vm2, %v1998_v54, %v2000_v38  ;;  %vm6056_vm2 = vmmov %vm6055_vm0  ;;  %v2077_v36 = vstv %s6060_s27  ;;  %s6103_s27 = sld [smem:[#allocation94_spill]] }
 0x79e   : > { %v2007_v10 = vsel %vm5922_vm8, %v2003_v13, 0.0  ;;  %2324 = vrot.lane.b32.xlu1 %v3846_v58, %s5676_s25  ;;  %2322 = vrot.lane.b32.xlu0 %v3836_v52, %s5676_s25  ;;  %s6057_s25 = smov 26  }
 0x79f   : > { %v2010_v0 = vmul.f32 %v2009_v34, %v2007_v10 }
 0x7a0   : > { %v2015_v41 = vpop.permute.xlu1 %2014  ;;  %v2002_v44 = vpop.permute.xlu0 %2001 }
 0x7a1   : > { %v2012_v16 = vadd.f32 %v2010_v0, %v1995_v53  ;;  %v2004_v15 = vsel %vm6052_vm7, %v2000_v38, %v2002_v44  ;;  %vm6059_vm7 = vcmask 515072  }
 0x7a2   : > { %v2008_v50 = vsel %vm3107_vm9, %v2004_v15, 0.0  ;;  %2339 = vrot.lane.b32.xlu1 %v3836_v52, %s6053_s24  ;;  %2337 = vrot.lane.b32.xlu0 %v3832_v63, %s6053_s24 }
 0x7a3   : > { %v2011_v46 = vmul.f32 %v2009_v34, %v2008_v50 }
 0x7a4   : > { %v2019_v40 = vpop.permute.xlu1 %2018  ;;  %v2017_v47 = vpop.permute.xlu0 %2016 }
 0x7a5   : > { %v2013_v11 = vadd.f32 %v2011_v46, %v1996_v60  ;;  %v2020_v12 = vsel %vm6055_vm0, %v2015_v41, %v2017_v47  ;;  %v2021_v56 = vsel %vm6056_vm2, %v2017_v47, %v2019_v40  ;;  %vm6061_vm0 = vmmov %vm6059_vm7  ;;  %vm6062_vm2 = vcmask 506880  }
 0x7a6   : > { %v2024_v14 = vsel %vm5880_vm13, %v2020_v12, 0.0  ;;  %v2025_v1 = vsel %vm5989_vm1, %v2021_v56, 0.0  ;;  %2354 = vrot.lane.b32.xlu1 %v3832_v63, %s6057_s25  ;;  %2341 = vrot.lane.b32.xlu0 %v3846_v58, %s6053_s24  ;;  %v2094_v46 = vstv %s6065_s26  ;;  %s6091_s24 = sld [smem:[#allocation90_spill]]  ;;  %s6107_s26 = sld [smem:[#allocation95_spill]] }
 0x7a7   : > { %v2027_v8 = vmul.f32 %v2026_v2, %v2024_v14  ;;  %v2028_v6 = vmul.f32 %v2026_v2, %v2025_v1 }
 0x7a8   : > { %v2034_v17 = vpop.permute.xlu1 %2033  ;;  %v2032_v32 = vpop.permute.xlu0 %2031 }
 0x7a9   : > { %v2029_v9 = vadd.f32 %v2027_v8, %v2012_v16  ;;  %v2030_v5 = vadd.f32 %v2028_v6, %v2013_v11  ;;  %v2037_v7 = vsel %vm6059_vm7, %v2032_v32, %v2034_v17  ;;  %vm6063_vm7 = vmmov %vm6062_vm2 }
 0x7aa   : > { %v2041_v59 = vsel %vm6035_vm5, %v2037_v7, 0.0  ;;  %2358 = vrot.lane.b32.xlu1 %v3846_v58, %s6057_s25  ;;  %2356 = vrot.lane.b32.xlu0 %v3836_v52, %s6057_s25  ;;  %vm6064_vm5 = vnez %v5512_v22  ;;  %s6096_s25 = sld [smem:[#allocation92_spill]] }
 0x7ab   : > { %v2044_v63 = vmul.f32 %v2043_v51, %v2041_v59 }
 0x7ac   : > { %v2049_v62 = vpop.permute.xlu1 %2048  ;;  %v2036_v61 = vpop.permute.xlu0 %2035 }
 0x7ad   : > { %v2046_v48 = vadd.f32 %v2044_v63, %v2029_v9  ;;  %v2038_v43 = vsel %vm6061_vm0, %v2034_v17, %v2036_v61  ;;  %vm6066_vm0 = vcmask 498688  }
 0x7ae   : > { %v2042_v49 = vsel %vm3003_vm11, %v2038_v43, 0.0 }
 0x7af   : > { %v2045_v55 = vmul.f32 %v2043_v51, %v2042_v49 }
 0x7b0   : > { %v2053_v37 = vpop.permute.xlu1 %2052  ;;  %v2051_v35 = vpop.permute.xlu0 %2050 }
 0x7b1   : > { %v2047_v42 = vadd.f32 %v2045_v55, %v2030_v5  ;;  %v2054_v58 = vsel %vm6062_vm2, %v2049_v62, %v2051_v35  ;;  %v2055_v39 = vsel %vm6063_vm7, %v2051_v35, %v2053_v37  ;;  %vm6067_vm2 = vmmov %vm6066_vm0  ;;  %vm6068_vm7 = vcmask 490496  }
 0x7b2   : > { %v2058_v52 = vsel %vm6064_vm5, %v2054_v58, 0.0  ;;  %v2059_v3 = vsel %vm3029_vm4, %v2055_v39, 0.0 }
 0x7b3   : > { %v2061_v57 = vmul.f32 %v2060_v4, %v2058_v52  ;;  %v2062_v33 = vmul.f32 %v2060_v4, %v2059_v3 }
 0x7b4   : > { %v2068_v45 = vpop.permute.xlu1 %2067  ;;  %v2066_v38 = vpop.permute.xlu0 %2065 }
 0x7b5   : > { %v2063_v34 = vadd.f32 %v2061_v57, %v2046_v48  ;;  %v2064_v54 = vadd.f32 %v2062_v33, %v2047_v42  ;;  %v2071_v53 = vsel %vm6066_vm0, %v2066_v38, %v2068_v45  ;;  %vm6069_vm0 = vmmov %vm6068_vm7 }
 0x7b6   : > { %v2075_v60 = vsel %vm5797_vm3, %v2071_v53, 0.0 }
 0x7b7   : > { %v2078_v13 = vmul.f32 %v2077_v36, %v2075_v60 }
 0x7b8   : > { %v2083_v10 = vpop.permute.xlu1 %2082  ;;  %v2070_v0 = vpop.permute.xlu0 %2069 }
 0x7b9   : > { %v2080_v41 = vadd.f32 %v2078_v13, %v2063_v34  ;;  %v2072_v44 = vsel %vm6067_vm2, %v2068_v45, %v2070_v0  ;;  %vm6072_vm2 = vcmask 482304  }
 0x7ba   : > { %v2076_v16 = vsel %vm5765_vm15, %v2072_v44, 0.0  ;;  %v2128_v44 = vstv %s6071_s0  ;;  %s6114_s0 = sld [smem:[#allocation97_spill]] }
 0x7bb   : > { %v2079_v15 = vmul.f32 %v2077_v36, %v2076_v16 }
 0x7bc   : > { %v2087_v50 = vpop.permute.xlu1 %2086  ;;  %v2085_v40 = vpop.permute.xlu0 %2084 }
 0x7bd   : > { %v2081_v2 = vadd.f32 %v2079_v15, %v2064_v54  ;;  %v2088_v47 = vsel %vm6068_vm7, %v2083_v10, %v2085_v40  ;;  %v2089_v11 = vsel %vm6069_vm0, %v2085_v40, %v2087_v50  ;;  %vm6073_vm7 = vmmov %vm6072_vm2  ;;  %vm6074_vm0 = vcmask 474112  }
 0x7be   : > { %v2092_v12 = vsel %vm5752_vm14, %v2088_v47, 0.0  ;;  %v2093_v56 = vsel %vm5753_vm6, %v2089_v11, 0.0  ;;  %vm6076_vm6 = vmmov %vm6074_vm0  ;;  %v2111_v10 = vstv %s6070_s5  ;;  %s6111_s5 = sld [smem:[#allocation96_spill]] }
 0x7bf   : > { %v2095_v14 = vmul.f32 %v2094_v46, %v2092_v12  ;;  %v2096_v1 = vmul.f32 %v2094_v46, %v2093_v56  ;;  %v2145_v56 = vstv %s6075_s30  ;;  %s6117_s30 = sld [smem:[#allocation98_spill]] }
 0x7c0   : > { %v2102_v8 = vpop.permute.xlu1 %2101  ;;  %v2100_v6 = vpop.permute.xlu0 %2099 }
 0x7c1   : > { %v2097_v17 = vadd.f32 %v2095_v14, %v2080_v41  ;;  %v2098_v51 = vadd.f32 %v2096_v1, %v2081_v2  ;;  %v2105_v38 = vsel %vm6072_vm2, %v2100_v6, %v2102_v8 }
 0x7c2   : > { %v2109_v0 = vsel %vm3079_vm10, %v2105_v38, 0.0 }
 0x7c3   : > { %v2112_v47 = vmul.f32 %v2111_v10, %v2109_v0 }
 0x7c4   : > { %v2117_v32 = vpop.permute.xlu1 %2116  ;;  %v2104_v9 = vpop.permute.xlu0 %2103 }
 0x7c5   : > { %v2106_v34 = vsel %vm6073_vm7, %v2102_v8, %v2104_v9  ;;  %vm6080_vm7 = vcmask 384000  }
 0x7c6   : > { %v2110_v41 = vsel %vm3089_vm12, %v2106_v34, 0.0 }
 0x7c7   : > { %v2113_v11 = vmul.f32 %v2111_v10, %v2110_v41  ;;  %v2179_v10 = vstv %s6081_s9 }
 0x7c8   : > { %v2121_v5 = vpop.permute.xlu1 %2120  ;;  %v2119_v7 = vpop.permute.xlu0 %2118 }
 0x7c9   : > { %v2122_v60 = vsel %vm6074_vm0, %v2117_v32, %v2119_v7  ;;  %v2123_v13 = vsel %vm6076_vm6, %v2119_v7, %v2121_v5  ;;  %vm6078_vm6 = vcmask 392192   ;;  %vm6082_vm0 = vmmov %vm6080_vm7  ;;  %v2162_v7 = vstv %s6077_s12  ;;  %s6121_s12 = sld [smem:[#allocation99_spill]] }
 0x7ca   : > { %v2126_v16 = vsel %vm5922_vm8, %v2122_v60, 0.0  ;;  %v2127_v46 = vsel %vm3107_vm9, %v2123_v13, 0.0  ;;  %vm6079_vm2 = vmmov %vm6078_vm6 }
 0x7cb   : > { %v2129_v12 = vmul.f32 %v2128_v44, %v2126_v16  ;;  %v2130_v1 = vmul.f32 %v2128_v44, %v2127_v46  ;;  %v2196_v16 = vstv %s6086_s13 }
 0x7cc   : > { %v2136_v59 = vpop.permute.xlu1 %2135  ;;  %v2134_v63 = vpop.permute.xlu0 %2133 }
 0x7cd   : > { %v2139_v40 = vsel %vm6078_vm6, %v2134_v63, %v2136_v59  ;;  %vm6083_vm6 = vcmask 375808   ;;  %v2114_v63 = vadd.f32 %v2112_v47, %v2097_v17 }
 0x7ce   : > { %v2143_v8 = vsel %vm5880_vm13, %v2139_v40, 0.0 }
 0x7cf   : > { %v2146_v34 = vmul.f32 %v2145_v56, %v2143_v8  ;;  %s6127_s9 = sshll.u32 %s6121_s12, 5 }
 0x7d0   : > { %v2151_v62 = vpop.permute.xlu1 %2150  ;;  %v2138_v61 = vpop.permute.xlu0 %2137  ;;  %s2396_s13 = scalar_lea.vmem [#allocation8], %s6127_s9 }
 0x7d1   : > { %v2140_v2 = vsel %vm6079_vm2, %v2136_v59, %v2138_v61  ;;  %v2115_v61 = vadd.f32 %v2113_v11, %v2098_v51  ;;  %vm6084_vm2 = vnez %v5498_v19 }
 0x7d2   : > { %v2144_v6 = vsel %vm5989_vm1, %v2140_v2, 0.0 }
 0x7d3   : > { %v2147_v60 = vmul.f32 %v2145_v56, %v2144_v6  ;;  %v2132_v13 = vadd.f32 %v2130_v1, %v2115_v61  ;;  %v2213_v1 = vstv %s6088_s14  ;;  %v2230_v61 = vstv %s6091_s24 }
 0x7d4   : > { %v2155_v48 = vpop.permute.xlu1 %2154  ;;  %v2153_v43 = vpop.permute.xlu0 %2152 }
 0x7d5   : > { %v2156_v14 = vsel %vm6080_vm7, %v2151_v62, %v2153_v43  ;;  %v2157_v32 = vsel %vm6082_vm0, %v2153_v43, %v2155_v48  ;;  %vm6085_vm7 = vmmov %vm6083_vm6  ;;  %v2131_v43 = vadd.f32 %v2129_v12, %v2114_v63  ;;  %vm6087_vm0 = vcmask 367616  }
 0x7d6   : > { %v2160_v62 = vsel %vm6084_vm2, %v2156_v14, 0.0  ;;  %v2161_v48 = vsel %vm3003_vm11, %v2157_v32, 0.0  ;;  %v2149_v40 = vadd.f32 %v2147_v60, %v2132_v13  ;;  %v2264_v13 = vstv %s6096_s25 }
 0x7d7   : > { %v2163_v51 = vmul.f32 %v2162_v7, %v2160_v62  ;;  %v2164_v44 = vmul.f32 %v2162_v7, %v2161_v48  ;;  %v2148_v46 = vadd.f32 %v2146_v34, %v2131_v43  ;;  %v2247_v43 = vstv %s6095_s4  ;;  %s208_s4 = sadd.s32 1, %s6121_s12  }
 0x7d8   : > { %v2170_v49 = vpop.permute.xlu1 %2169  ;;  %v2168_v55 = vpop.permute.xlu0 %2167  ;;  %p205_p13 = scmp.ge.s32.totalorder %s208_s4, 2  }
 0x7d9   : > { %v2173_v59 = vsel %vm6083_vm6, %v2168_v55, %v2170_v49  ;;  %vm6089_vm6 = vmmov %vm6087_vm0  ;;  %v2165_v14 = vadd.f32 %v2163_v51, %v2148_v46  ;;  %v2166_v8 = vadd.f32 %v2164_v44, %v2149_v40  ;;  %v2281_v40 = vstv %s6100_s28  ;;  %s2835_s14 = smov (%p205_p13), [#allocation8]  }
 0x7da   : > { %v2177_v0 = vsel %vm6064_vm5, %v2173_v59, 0.0  ;;  %s2406_s24 = sshll.u32 (%p205_p13), %s2835_s14, 4  ;;  %s2407_s24 = int_to_ptr.vmem [resolvable:$true] %s2406_s24 }
 0x7db   : > { %v2180_v2 = vmul.f32 %v2179_v10, %v2177_v0  ;;  %s2739_s25 = scalar_lea.vmem (%p205_p13), %s2407_s24, 1024  ;;  %p2744_p1 = scmp.lt.s32.totalorder (%p205_p13), %s2407_s24, %s2407_s24 }
 0x7dc   : > { %v2185_v37 = vpop.permute.xlu1 %2184  ;;  %v2172_v4 = vpop.permute.xlu0 %2171  ;;  %p2740_p0 = scmp.ne.s32.totalorder (%p205_p13), %s2407_s24, %s2739_s25  ;;  %p2745_p2 = scmp.lt.s32.totalorder (%p205_p13), %s2739_s25, %s2739_s25 }
 0x7dd   : > { %v2174_v38 = vsel %vm6085_vm7, %v2170_v49, %v2172_v4  ;;  %vm6090_vm7 = vcmask 359424   ;;  %v2182_v59 = vadd.f32 %v2180_v2, %v2165_v14 }
 0x7de   : > { %v2178_v41 = vsel %vm3029_vm4, %v2174_v38, 0.0  ;;  %p2746_p3 = por (%p205_p13), %p2745_p2, %p2744_p1 }
 0x7df   : > { %v2181_v11 = vmul.f32 %v2179_v10, %v2178_v41 }
 0x7e0   : > { %v2189_v35 = vpop.permute.xlu1 %2188  ;;  %v2187_v42 = vpop.permute.xlu0 %2186  ;;  %p2747_p4 = pnand (%p205_p13), %p2746_p3, %p2740_p0 }
 0x7e1   : > { %v2190_v49 = vsel %vm6087_vm0, %v2185_v37, %v2187_v42  ;;  %v2191_v4 = vsel %vm6089_vm6, %v2187_v42, %v2189_v35  ;;  %vm6092_vm0 = vmmov %vm6090_vm7  ;;  %vm6093_vm6 = vcmask 351232   ;;  %v2183_v63 = vadd.f32 %v2181_v11, %v2166_v8 }
 0x7e2   : > { %v2194_v12 = vsel %vm5797_vm3, %v2190_v49, 0.0  ;;  %v2195_v56 = vsel %vm5765_vm15, %v2191_v4, 0.0 }
 0x7e3   : > { %v2197_v7 = vmul.f32 %v2196_v16, %v2194_v12 }
 0x7e4   : > { %v5074_v58 = vpop.permute.xlu1 %2203  ;;  %v2202_v39 = vpop.permute.xlu0 %2201 }
 0x7e5   : > { %v2207_v47 = vsel %vm6090_vm7, %v2202_v39, %v5074_v58  ;;  %vm6094_vm7 = vmmov %vm6093_vm6  ;;  %v2199_v10 = vadd.f32 %v2197_v7, %v2182_v59 }
 0x7e6   : > { %v2211_v6 = vsel %vm5752_vm14, %v2207_v47, 0.0  ;;  %vm6098_vm14 = vcmask 343040  }
 0x7e7   : > { %v2214_v34 = vmul.f32 %v2213_v1, %v2211_v6 }
 0x7e8   : > { %v5076_v52 = vpop.permute.xlu1 %2218  ;;  %v2206_v3 = vpop.permute.xlu0 %2205 }
 0x7e9   : > { %v2208_v37 = vsel %vm6092_vm0, %v5074_v58, %v2206_v3  ;;  %v2198_v58 = vmul.f32 %v2196_v16, %v2195_v56  ;;  %vm6097_vm0 = vnez %v5532_v27  ;;  %v2216_v16 = vadd.f32 %v2214_v34, %v2199_v10 }
 0x7ea   : > { %v2212_v3 = vsel %vm6097_vm0, %v2208_v37, 0.0  ;;  %v2298_v56 = vstv %s6103_s27  ;;  %v2332_v10 = vstv %s6111_s5 }
 0x7eb   : > { %v2215_v48 = vmul.f32 %v2213_v1, %v2212_v3  ;;  %v2200_v0 = vadd.f32 %v2198_v58, %v2183_v63 }
 0x7ec   : > { %v5078_v57 = vpop.permute.xlu1 %2222  ;;  %v5080_v33 = vpop.permute.xlu0 %2220 }
 0x7ed   : > { %v2224_v39 = vsel %vm6093_vm6, %v5076_v52, %v5080_v33  ;;  %v2225_v32 = vsel %vm6094_vm7, %v5080_v33, %v5078_v57  ;;  %vm6099_vm6 = vmmov %vm6098_vm14 }
 0x7ee   : > { %v2228_v60 = vsel %vm3079_vm10, %v2224_v39, 0.0  ;;  %v2229_v57 = vsel %vm3089_vm12, %v2225_v32, 0.0 }
 0x7ef   : > { %v2231_v49 = vmul.f32 %v2230_v61, %v2228_v60 }
 0x7f0   : > { %v5082_v45 = vpop.permute.xlu1 %2237  ;;  %v5084_v36 = vpop.permute.xlu0 %2235 }
 0x7f1   : > { %v2241_v62 = vsel %vm6098_vm14, %v5084_v36, %v5082_v45  ;;  %vm6101_vm14 = vcmask 261120   ;;  %v2233_v14 = vadd.f32 %v2231_v49, %v2216_v16 }
 0x7f2   : > { %v2245_v51 = vsel %vm5922_vm8, %v2241_v62, 0.0  ;;  %vm6102_vm7 = vmmov %vm6101_vm14 }
 0x7f3   : > { %v2248_v2 = vmul.f32 %v2247_v43, %v2245_v51 }
 0x7f4   : > { %v5088_v54 = vpop.permute.xlu1 %2252  ;;  %v5090_v53 = vpop.permute.xlu0 %2239 }
 0x7f5   : > { %v2242_v33 = vsel %vm6099_vm6, %v5082_v45, %v5090_v53  ;;  %v2232_v45 = vmul.f32 %v2230_v61, %v2229_v57  ;;  %vm6104_vm6 = vcmask 252928   ;;  %v2250_v58 = vadd.f32 %v2248_v2, %v2233_v14 }
 0x7f6   : > { %v2246_v53 = vsel %vm3107_vm9, %v2242_v33, 0.0 }
 0x7f7   : > { %v2249_v12 = vmul.f32 %v2247_v43, %v2246_v53 }
 0x7f8   : > { %v5102_v15 = vpop.permute.xlu1 %2256  ;;  %v5104_v50 = vpop.permute.xlu0 %2254 }
 0x7f9   : > { %v2258_v36 = vsel %vm6101_vm14, %v5088_v54, %v5104_v50  ;;  %v2259_v41 = vsel %vm6102_vm7, %v5104_v50, %v5102_v15  ;;  %vm6105_vm14 = vmmov %vm6104_vm6  ;;  %v2217_v50 = vadd.f32 %v2215_v48, %v2200_v0  ;;  %vm6106_vm7 = vcmask 244736  }
 0x7fa   : > { %v2262_v46 = vsel %vm5880_vm13, %v2258_v36, 0.0  ;;  %v2263_v47 = vsel %vm5989_vm1, %v2259_v41, 0.0  ;;  %vm6109_vm13 = vcmask 236544  }
 0x7fb   : > { %v2234_v1 = vadd.f32 %v2232_v45, %v2217_v50  ;;  %v2265_v8 = vmul.f32 %v2264_v13, %v2262_v46  ;;  %v2266_v39 = vmul.f32 %v2264_v13, %v2263_v47  ;;  %vm6110_vm1 = vmmov %vm6109_vm13 }
 0x7fc   : > { %v5117_v9 = vpop.permute.xlu1 %2271  ;;  %v5119_v5 = vpop.permute.xlu0 %2269 }
 0x7fd   : > { %v2275_v4 = vsel %vm6104_vm6, %v5119_v5, %v5117_v9  ;;  %vm6108_vm6 = vmmov %vm6106_vm7  ;;  %v2251_v59 = vadd.f32 %v2249_v12, %v2234_v1  ;;  %v2267_v34 = vadd.f32 %v2265_v8, %v2250_v58 }
 0x7fe   : > { %v2279_v5 = vsel %vm6084_vm2, %v2275_v4, 0.0  ;;  %vm6112_vm2 = vcmask 228352   ;;  %v2349_v4 = vstv %s6114_s0 }
 0x7ff   : > { %v2282_v3 = vmul.f32 %v2281_v40, %v2279_v5  ;;  %v2268_v48 = vadd.f32 %v2266_v39, %v2251_v59 }
 0x800   : > { %v2287_v55 = vpop.permute.xlu1 %2286  ;;  %v2274_v17 = vpop.permute.xlu0 %2273 }
 0x801   : > { %v2276_v15 = vsel %vm6105_vm14, %v5117_v9, %v2274_v17  ;;  %vm6113_vm14 = vmmov %vm6112_vm2  ;;  %v2284_v36 = vadd.f32 %v2282_v3, %v2267_v34 }
 0x802   : > { %v2280_v9 = vsel %vm3003_vm11, %v2276_v15, 0.0 }
 0x803   : > { %v2283_v63 = vmul.f32 %v2281_v40, %v2280_v9 }
 0x804   : > { %v2291_v35 = vpop.permute.xlu1 %2290  ;;  %v2289_v42 = vpop.permute.xlu0 %2288 }
 0x805   : > { %v2292_v11 = vsel %vm6106_vm7, %v2287_v55, %v2289_v42  ;;  %v2293_v37 = vsel %vm6108_vm6, %v2289_v42, %v2291_v35  ;;  %v2315_v42 = vstv %s6107_s26  ;;  %vm6116_vm7 = vnez %v5528_v26 }
 0x806   : > { %v2296_v55 = vsel %vm6064_vm5, %v2292_v11, 0.0  ;;  %v2297_v35 = vsel %vm3029_vm4, %v2293_v37, 0.0  ;;  %vm6115_vm5 = vcmask 220160   ;;  %v2285_v41 = vadd.f32 %v2283_v63, %v2268_v48  ;;  %v6123_v48 = vld [vmem:[#allocation102_spill] sm:$0xff] }
 0x807   : > { %v2299_v60 = vmul.f32 %v2298_v56, %v2296_v55  ;;  %v2300_v43 = vmul.f32 %v2298_v56, %v2297_v35  ;;  %vm6118_vm6 = vmmov %vm6115_vm5  ;;  %v2366_v37 = vstv %s6117_s30 }
 0x808   : > { %v2306_v38 = vpop.permute.xlu1 %2305  ;;  %v2304_v52 = vpop.permute.xlu0 %2303 }
 0x809   : > { %v2309_v32 = vsel %vm6109_vm13, %v2304_v52, %v2306_v38  ;;  %v2301_v53 = vadd.f32 %v2299_v60, %v2284_v36  ;;  %v2302_v46 = vadd.f32 %v2300_v43, %v2285_v41  ;;  %vm6119_vm13 = vcmask 211968  }
 0x80a   : > { %v2313_v52 = vsel %vm5797_vm3, %v2309_v32, 0.0 }
 0x80b   : > { %v2316_v49 = vmul.f32 %v2315_v42, %v2313_v52 }
 0x80c   : > { %v2321_v54 = vpop.permute.xlu1 %2320  ;;  %v2308_v44 = vpop.permute.xlu0 %2307 }
 0x80d   : > { %v2310_v7 = vsel %vm6110_vm1, %v2306_v38, %v2308_v44  ;;  %v2318_v47 = vadd.f32 %v2316_v49, %v2301_v53  ;;  %vm6120_vm1 = vmmov %vm6119_vm13 }
 0x80e   : > { %v2314_v38 = vsel %vm5765_vm15, %v2310_v7, 0.0 }
 0x80f   : > { %v2317_v45 = vmul.f32 %v2315_v42, %v2314_v38  ;;  %v6122_v38 = vld [vmem:[#allocation104_spill] sm:$0xff] }
 0x810   : > { %v2325_v17 = vpop.permute.xlu1 %2324  ;;  %v2323_v6 = vpop.permute.xlu0 %2322 }
 0x811   : > { %v2326_v61 = vsel %vm6112_vm2, %v2321_v54, %v2323_v6  ;;  %v2327_v62 = vsel %vm6113_vm14, %v2323_v6, %v2325_v17  ;;  %v2319_v11 = vadd.f32 %v2317_v45, %v2302_v46 }
 0x812   : > { %v2330_v0 = vsel %vm6116_vm7, %v2326_v61, 0.0  ;;  %v2331_v51 = vsel %vm6097_vm0, %v2327_v62, 0.0 }
 0x813   : > { %v2333_v40 = vmul.f32 %v2332_v10, %v2330_v0  ;;  %v2334_v15 = vmul.f32 %v2332_v10, %v2331_v51  ;;  %v6125_v10 = vld [vmem:[#allocation103_spill] sm:$0xff]  ;;  %v6126_v51 = vld [vmem:[#allocation101_spill] sm:$0xff] }
 0x814   : > { %v2340_v57 = vpop.permute.xlu1 %2339  ;;  %v2338_v33 = vpop.permute.xlu0 %2337 }
 0x815   : > { %v2343_v13 = vsel %vm6115_vm5, %v2338_v33, %v2340_v57  ;;  %v2335_v1 = vadd.f32 %v2333_v40, %v2318_v47  ;;  %v2336_v8 = vadd.f32 %v2334_v15, %v2319_v11 }
 0x816   : > { %v2347_v54 = vsel %vm3079_vm10, %v2343_v13, 0.0  ;;  %v6124_v13 = vld [vmem:[#allocation100_spill] sm:$0xff] }
 0x817   : > { %v2350_v12 = vmul.f32 %v2349_v4, %v2347_v54 }
 0x818   : > { %v2355_v44 = vpop.permute.xlu1 %2354  ;;  %v2342_v16 = vpop.permute.xlu0 %2341 }
 0x819   : > { %v2344_v50 = vsel %vm6118_vm6, %v2340_v57, %v2342_v16  ;;  %v2352_v55 = vadd.f32 %v2350_v12, %v2335_v1 }
 0x81a   : > { %v2348_v2 = vsel %vm3089_vm12, %v2344_v50, 0.0 }
 0x81b   : > { %v2351_v5 = vmul.f32 %v2349_v4, %v2348_v2 }
 0x81c   : > { %v2359_v56 = vpop.permute.xlu1 %2358  ;;  %v2357_v14 = vpop.permute.xlu0 %2356 }
 0x81d   : > { %v2360_v9 = vsel %vm6119_vm13, %v2355_v44, %v2357_v14  ;;  %v2361_v17 = vsel %vm6120_vm1, %v2357_v14, %v2359_v56  ;;  %v2353_v32 = vadd.f32 %v2351_v5, %v2336_v8 }
 0x81e   : > { %v2364_v6 = vsel %vm5922_vm8, %v2360_v9, 0.0  ;;  %v2365_v39 = vsel %vm3107_vm9, %v2361_v17, 0.0 }
 0x81f   : > { %v2367_v7 = vmul.f32 %v2366_v37, %v2364_v6  ;;  %v2368_v58 = vmul.f32 %v2366_v37, %v2365_v39 }
 0x821   : > { %v2369_v3 = vadd.f32 %v2367_v7, %v2352_v55  ;;  %v2370_v35 = vadd.f32 %v2368_v58, %v2353_v32 }
 0x823   : > { %v2534_v42 = vmul.f32 -1.442695, %v2369_v3  ;;  %v2535_v59 = vmul.f32 -1.442695, %v2370_v35 }
 0x825   : > { %2697 = vpow2.f32 %v2534_v42 }
 0x826   : > { %2699 = vpow2.f32 %v2535_v59 }
 0x82f   : > { %v2698_v63 = vpop.eup %2697 }
 0x830   : > { %v2700_v61 = vpop.eup %2699  ;;  %v2377_v62 = vadd.f32 1.0, %v2698_v63 }
 0x831   : > { %v2378_v34 = vadd.f32 1.0, %v2700_v61 }
 0x832   : > { %2701 = vrcp.f32 %v2377_v62 }
 0x833   : > { %2703 = vrcp.f32 %v2378_v34 }
 0x83c   : > { %v2702_v60 = vpop.eup %2701  ;;  %207 = sbr.rel (!%p205_p13) target bundleno = 133 (0x85), region = 54 }
 0x83d   : > { %v2704_v52 = vpop.eup %2703  ;;  %v2386_v57 = vrot.slane %v2702_v60, %v6122_v38 }
 0x83e   : > { %v2390_v33 = vrot.slane %v2704_v52, %v6122_v38 }
 0x83f   : > { %v2391_v43 = vmul.f32 %v2386_v57, %v6123_v48  ;;  %v2393_v36 = vmul.f32 %v2386_v57, %v6124_v13 }
 0x840   : > { %v2392_v0 = vmul.f32 %v2390_v33, %v6125_v10  ;;  %v2394_v41 = vmul.f32 %v2390_v33, %v6126_v51 }
 0x841   : > { %2397 = vst [vmem:[%s2396_s13] sm:$0xff] %v2391_v43  ;;  %2399 = vst [vmem:[%s2396_s13 + $0x10] sm:$0xff] %v2393_v36 }
 0x842   : > { %2398 = vst [vmem:[%s2396_s13 + $0x8] sm:$0xff] %v2392_v0  ;;  %2400 = vst [vmem:[%s2396_s13 + $0x18] sm:$0xff] %v2394_v41 }
 0x843   :  { %2750 = shalt.err (!%p2747_p4)
}
 0x844   :  { %s6128_s26 = sld [smem:[#allocation202_spill]] }
 0x84a   :  { %s2751_s5 = scalar_lea.hbm %s6128_s26, 1024 }
 0x84b   :  { %p2752_p5 = scmp.ne.s32.totalorder %s6128_s26, %s2751_s5  ;;  %p2755_p6 = scmp.lt.u32.totalorder %s2751_s5, %s6128_s26 }
 0x84d   :  { %p2757_p7 = pnand %p2755_p6, %p2752_p5 }
 0x84f   :  { %2760 = shalt.err (!%p2757_p7)
}
 0x850   :  { %s6129_s7 = smov 16   ;;  %s6130_s8 = smov 256  }
 0x851   :  { %2412 = dma.vmem_to_hbm [thread:$0]  %s2407_s24, 1024, %s6128_s26, [#allocation5], %s6130_s8, %s6130_s8, %s6129_s7  }
 0x852   :  { %2769 = dma.done.wait [#allocation5], 1024  }
 0x853   :  { %2770 = vsyncadd [#allocation5], 4294966272 }
 0x854   :  { %2416 = vsyncpa [#allocation4], 1 }
 0x855   :  { %2417 = vsyncpa [#allocation5], 1 }
 0x856   :  { %2418 = vsyncpa [#allocation6], 1 }

</bundles_post_ra>
